<compile_context>
chip_gen: v6e
topology: v6e:2x2x1
jax: 0.10.0
libtpu: 0.0.40
codegen_flags: <defaults>
</compile_context>

<pallas_src>
import math
from functools import partial

import jax
import jax.numpy as jnp
from jax import lax
from jax.experimental import pallas as pl
from jax.experimental.pallas import tpu as pltpu


# ----------------------------------------------------------------------------
# Relative position bias (T5 bucketing + embedding lookup), plain JAX.
# ----------------------------------------------------------------------------
def _relative_position_bucket(relative_position, *, bidirectional, num_buckets,
                              max_distance=128):
    relative_buckets = jnp.zeros_like(relative_position)
    if bidirectional:
        num_buckets //= 2
        relative_buckets = relative_buckets + (
            (relative_position > 0).astype(relative_position.dtype) * num_buckets)
        relative_position = jnp.abs(relative_position)
    else:
        relative_position = -jnp.minimum(relative_position,
                                         jnp.zeros_like(relative_position))
    max_exact = num_buckets // 2
    is_small = relative_position < max_exact
    rel_if_large = max_exact + (
        jnp.log(relative_position.astype(jnp.float32) / max_exact)
        / math.log(max_distance / max_exact)
        * (num_buckets - max_exact)
    ).astype(relative_position.dtype)
    rel_if_large = jnp.minimum(rel_if_large, num_buckets - 1)
    return relative_buckets + jnp.where(is_small, relative_position, rel_if_large)


def compute_position_bias(rel_bias_weight, query_length, key_length, *,
                          bidirectional, num_buckets):
    context_position = jnp.arange(query_length, dtype=jnp.int32)[:, None]
    memory_position = jnp.arange(key_length, dtype=jnp.int32)[None, :]
    relative_position = memory_position - context_position
    buckets = _relative_position_bucket(
        relative_position, bidirectional=bidirectional, num_buckets=num_buckets)
    values = rel_bias_weight[buckets]                 # (q, k, H)
    return jnp.transpose(values, (2, 0, 1))           # (H, q, k)


# ----------------------------------------------------------------------------
# Pallas kernel: one (batch, head-group) step.
# ----------------------------------------------------------------------------
def attention_kernel(mask_ref, bias_ref, x_ref, wq_ref, wk_ref, wv_ref, wo_ref,
                     o_ref, acc_ref, *, heads_per_step, d_kv):
    # Shapes seen by the kernel (leading batch dims squeezed by BlockSpec):
    #   mask_ref (1|S, S) f32      bias_ref (G, S, S) bf16   x_ref (S, D) bf16
    #   wq/wk/wv_ref (D, G*dk) bf16  wo_ref (G*dk, D) bf16
    #   o_ref (S, D)                 acc_ref (S, D) f32
    g_idx = pl.program_id(1)

    @pl.when(g_idx == 0)
    def _():
        acc_ref[...] = jnp.zeros_like(acc_ref)

    x = x_ref[...]                                           # (S, D) bf16

    # Canonical lane-dense (S,D)@(D,G*dk) projections; bf16 MXU, f32 accumulate.
    # 1/sqrt(d_kv) is already folded into wq in the wrapper.
    q = jnp.dot(x, wq_ref[...], preferred_element_type=jnp.float32).astype(x.dtype)
    k = jnp.dot(x, wk_ref[...], preferred_element_type=jnp.float32).astype(x.dtype)
    v = jnp.dot(x, wv_ref[...], preferred_element_type=jnp.float32).astype(x.dtype)

    mask = mask_ref[...].astype(jnp.float32)                 # (1, S) or (S, S)

    # Per-head (S,S) softmax path — the only part that is inherently dk-narrow.
    ctx_parts = []
    for h in range(heads_per_step):
        lo, hi = h * d_kv, (h + 1) * d_kv
        q_h, k_h, v_h = q[:, lo:hi], k[:, lo:hi], v[:, lo:hi]

        scores = lax.dot_general(q_h, k_h, (((1,), (1,)), ((), ())),
                                 preferred_element_type=jnp.float32)   # (S, S)
        scores = scores + mask + bias_ref[h].astype(jnp.float32)

        # Softmax in f32 (dropout is identity at inference).
        m = jnp.max(scores, axis=-1, keepdims=True)
        e = jnp.exp(scores - m)
        denom = jnp.sum(e, axis=-1, keepdims=True)
        probs = (e * pl.reciprocal(denom, approx=True)).astype(x.dtype)

        ctx_parts.append(jnp.dot(probs, v_h,
                                 preferred_element_type=jnp.float32))  # (S, dk)

    ctx = jnp.concatenate(ctx_parts, axis=-1).astype(x.dtype)          # (S, G*dk)

    # Single (S,G*dk)@(G*dk,D) output-projection slab, accumulated over groups.
    acc_ref[...] += jnp.dot(ctx, wo_ref[...],
                            preferred_element_type=jnp.float32)        # (S, D)

    @pl.when(g_idx == pl.num_programs(1) - 1)
    def _():
        o_ref[...] = acc_ref[...].astype(o_ref.dtype)


def _pick_heads_per_step(num_heads, d_kv, target_lanes=256):
    """Smallest head group G (divisor of H) with a legal, MXU-filling lane width:
    G*d_kv a multiple of 128 and >= 256 (v6e/v7x); fall back to >=128 (v5e),
    then to all heads (full-dim block is always legal)."""
    for tgt in (target_lanes, 128):
        for g in range(1, num_heads + 1):
            if num_heads % g == 0 and (g * d_kv) % 128 == 0 and g * d_kv >= tgt:
                return g
    return num_heads


# ----------------------------------------------------------------------------
# Wrapper
# ----------------------------------------------------------------------------
def attention_forward(hidden_states, attention_mask, wq, wk, wv, wo, *,
                      num_heads, d_kv, attn_scale=True,
                      rel_bias_weight=None, position_bias=None,
                      relative_attention_num_buckets=32, is_decoder=False,
                      heads_per_step=None, compute_dtype=jnp.bfloat16):
    """hidden_states (B,S,D). wq/wk/wv: (H*dk, D) PyTorch Linear layout.
    wo: (D, H*dk) PyTorch Linear layout. attention_mask: additive,
    (B,1,1,S) broadcast or (B,1,S,S) per-query."""
    B, S, D = hidden_states.shape
    H, dk = num_heads, d_kv
    d_attn = H * dk
    assert wq.shape == (d_attn, D) and wk.shape == (d_attn, D) and wv.shape == (d_attn, D)
    assert wo.shape == (D, d_attn)
    assert dk % 8 == 0, "d_kv must be a multiple of 8 for sublane alignment"

    if heads_per_step is None:
        heads_per_step = _pick_heads_per_step(H, dk)
    G = heads_per_step
    assert H % G == 0
    Gdk = G * dk
    n_groups = H // G

    # T5-style relative position bias (or zeros), matching the module's forward.
    if position_bias is None:
        if rel_bias_weight is not None:
            position_bias = compute_position_bias(
                rel_bias_weight, S, S, bidirectional=not is_decoder,
                num_buckets=relative_attention_num_buckets)
        else:
            position_bias = jnp.zeros((H, S, S), dtype=jnp.float32)
    position_bias = position_bias.reshape(H, S, S).astype(jnp.float32)

    # Additive mask: broadcast (B,1,S_key) or per-query (B,S_q,S_key).
    if attention_mask is None:
        mask = jnp.zeros((B, 1, S), dtype=jnp.float32)
    elif attention_mask.size == B * S:
        mask = attention_mask.reshape(B, 1, S).astype(jnp.float32)
    else:
        mask = attention_mask.reshape(B, S, S).astype(jnp.float32)
    mask_rows = mask.shape[1]

    scale = (1.0 / math.sqrt(dk)) if attn_scale else 1.0

    # bf16 streams; weights pre-transposed ONCE so the kernel sees canonical
    # (D, G*dk) / (G*dk, D) blocks; attention scale folded into Wq.  In a real
    # model these should be stored pre-transposed / pre-cast outside the hot path.
    x_c = hidden_states.astype(compute_dtype)
    wq_t = (wq.astype(jnp.float32) * scale).T.astype(compute_dtype)   # (D, H*dk)
    wk_t = wk.T.astype(compute_dtype)                                  # (D, H*dk)
    wv_t = wv.T.astype(compute_dtype)                                  # (D, H*dk)
    wo_t = wo.T.astype(compute_dtype)                                  # (H*dk, D)
    bias_c = position_bias.astype(compute_dtype)

    cbytes = jnp.dtype(compute_dtype).itemsize
    obytes = jnp.dtype(hidden_states.dtype).itemsize

    # Real HBM traffic: x fetched once per batch (index depends only on the outer
    # axis); weight + bias blocks re-fetched every (batch, group) step.
    bytes_accessed = (
        B * S * D * cbytes                            # hidden states
        + B * n_groups * 4 * D * Gdk * cbytes         # wq/wk/wv/wo blocks
        + B * H * S * S * cbytes                      # position bias blocks
        + B * mask_rows * S * 4                       # mask
        + B * S * D * obytes                          # output
    )
    flops = 8 * B * S * D * H * dk + 4 * B * H * S * S * dk
    transcendentals = B * H * S * S

    # Double-buffered VMEM footprint of all blocks + the f32 accumulator.
    vmem_need = (
        2 * (mask_rows * S * 4)
        + 2 * (G * S * S * cbytes)
        + 2 * (S * D * cbytes)
        + 2 * 4 * (D * Gdk * cbytes)
        + 2 * (S * D * obytes)
        + S * D * 4
    )
    vmem_limit = int(min(max(32 * 1024 * 1024, vmem_need * 5 // 4),
                         100 * 1024 * 1024))

    out = pl.pallas_call(
        partial(attention_kernel, heads_per_step=G, d_kv=dk),
        out_shape=jax.ShapeDtypeStruct((B, S, D), hidden_states.dtype),
        grid_spec=pltpu.PrefetchScalarGridSpec(
            num_scalar_prefetch=0,
            grid=(B, n_groups),                        # head-group = reduction axis
            in_specs=[
                pl.BlockSpec((None, mask_rows, S), lambda b, g: (b, 0, 0)),  # mask
                pl.BlockSpec((G, S, S), lambda b, g: (g, 0, 0)),             # bias
                pl.BlockSpec((None, S, D), lambda b, g: (b, 0, 0)),          # hidden
                pl.BlockSpec((D, Gdk), lambda b, g: (0, g)),                 # Wq^T cols
                pl.BlockSpec((D, Gdk), lambda b, g: (0, g)),                 # Wk^T cols
                pl.BlockSpec((D, Gdk), lambda b, g: (0, g)),                 # Wv^T cols
                pl.BlockSpec((Gdk, D), lambda b, g: (g, 0)),                 # Wo^T rows
            ],
            out_specs=pl.BlockSpec((None, S, D), lambda b, g: (b, 0, 0)),
            scratch_shapes=[pltpu.VMEM((S, D), jnp.float32)],
        ),
        compiler_params=pltpu.CompilerParams(
            dimension_semantics=("parallel", "arbitrary"),
            vmem_limit_bytes=vmem_limit,
        ),
        cost_estimate=pl.CostEstimate(
            flops=flops, transcendentals=transcendentals,
            bytes_accessed=bytes_accessed),
    )(mask, bias_c, x_c, wq_t, wk_t, wv_t, wo_t)

    # Mirrors the module's outputs (attn_output, present_key_value, position_bias);
    # present_key_value is None (use_cache path not kernelized).
    return out, position_bias.reshape(1, H, S, S)


# ----------------------------------------------------------------------------
# Pure-JAX reference (f32) for validation.
# ----------------------------------------------------------------------------
def _reference(x, attention_mask, position_bias, wq, wk, wv, wo, *,
               num_heads, d_kv, attn_scale):
    B, S, D = x.shape
    H, dk = num_heads, d_kv
    q = x @ wq.T
    k = x @ wk.T
    v = x @ wv.T

    def split(t):
        return jnp.transpose(t.reshape(B, S, H, dk), (0, 2, 1, 3))   # (B,H,S,dk)

    q, k, v = split(q), split(k), split(v)
    scores = jnp.einsum("bhqd,bhkd->bhqk", q, k)
    if attn_scale:
        scores = scores / math.sqrt(dk)
    scores = scores + attention_mask.reshape(B, 1, 1, S) + position_bias
    probs = jax.nn.softmax(scores, axis=-1)
    ctx = jnp.einsum("bhqk,bhkd->bhqd", probs, v)
    ctx = jnp.transpose(ctx, (0, 2, 1, 3)).reshape(B, S, H * dk)
    return ctx @ wo.T


if __name__ == "__main__":
    key = jax.random.PRNGKey(0)
    B, S = 2, 128
    d_model, num_heads, d_kv = 128, 4, 32
    num_buckets = 32
    d_attn = num_heads * d_kv

    ks = jax.random.split(key, 6)
    x = jax.random.normal(ks[0], (B, S, d_model), dtype=jnp.float32)
    wq = jax.random.normal(ks[1], (d_attn, d_model), dtype=jnp.float32) * 0.05
    wk = jax.random.normal(ks[2], (d_attn, d_model), dtype=jnp.float32) * 0.05
    wv = jax.random.normal(ks[3], (d_attn, d_model), dtype=jnp.float32) * 0.05
    wo = jax.random.normal(ks[4], (d_model, d_attn), dtype=jnp.float32) * 0.05
    rel_bias = jax.random.normal(ks[5], (num_buckets, num_heads),
                                 dtype=jnp.float32) * 0.02

    # Additive extended mask: batch 0 attends everywhere; batch 1 masks the last
    # 32 key positions.
    mask = jnp.zeros((B, 1, 1, S), dtype=jnp.float32)
    mask = mask.at[1, :, :, S - 32:].set(-1e9)

    out, pos_bias = attention_forward(
        x, mask, wq, wk, wv, wo,
        num_heads=num_heads, d_kv=d_kv, attn_scale=True,
        rel_bias_weight=rel_bias,
        relative_attention_num_buckets=num_buckets,
        is_decoder=False, compute_dtype=jnp.bfloat16)
    out = jax.block_until_ready(out)

    ref = _reference(x, mask, pos_bias, wq, wk, wv, wo,
                     num_heads=num_heads, d_kv=d_kv, attn_scale=True)

    assert out.shape == (B, S, d_model)
    # bf16 MXU operands / bf16 bias with f32 accumulation -> loose tolerance.
    max_err = jnp.max(jnp.abs(out - ref))
    assert jnp.allclose(out, ref, atol=2e-2, rtol=2e-2), f"max abs err {max_err}"

    print("KERNEL_OK")
</pallas_src>

<mosaic_0001>
module attributes {stable_mosaic.version = 11 : i64} {
  func.func @attention_kernel(%arg0: i32, %arg1: i32, %arg2: memref<1x1x128xf32, #tpu.memory_space<vmem>>, %arg3: memref<4x128x128xbf16, #tpu.memory_space<vmem>>, %arg4: memref<1x128x128xbf16, #tpu.memory_space<vmem>>, %arg5: memref<128x128xbf16, #tpu.memory_space<vmem>>, %arg6: memref<128x128xbf16, #tpu.memory_space<vmem>>, %arg7: memref<128x128xbf16, #tpu.memory_space<vmem>>, %arg8: memref<128x128xbf16, #tpu.memory_space<vmem>>, %arg9: memref<1x128x128xf32, #tpu.memory_space<vmem>>, %arg10: memref<128x128xf32, #tpu.memory_space<vmem>>) attributes {dimension_semantics = [#tpu.dimension_semantics<parallel>, #tpu.dimension_semantics<arbitrary>], iteration_bounds = array<i64: 2, 1>, scalar_prefetch = 0 : i64, scratch_operands = 1 : i64, tpu.core_type = #tpu.core_type<tc>, window_params = [{transform_indices = @transform_0, window_bounds = array<i64: 1, 1, 128>}, {transform_indices = @transform_1, window_bounds = array<i64: 4, 128, 128>}, {transform_indices = @transform_2, window_bounds = array<i64: 1, 128, 128>}, {transform_indices = @transform_3, window_bounds = array<i64: 128, 128>}, {transform_indices = @transform_4, window_bounds = array<i64: 128, 128>}, {transform_indices = @transform_5, window_bounds = array<i64: 128, 128>}, {transform_indices = @transform_6, window_bounds = array<i64: 128, 128>}, {transform_indices = @transform_7, window_bounds = array<i64: 1, 128, 128>}]} {
    %c0_i32 = arith.constant 0 : i32
    %0 = arith.cmpi eq, %arg1, %c0_i32 : i32
    %1 = arith.extui %0 : i1 to i32
    %c0_i32_0 = arith.constant 0 : i32
    %2 = arith.cmpi ne, %1, %c0_i32_0 : i32
    scf.if %2 {
      %cst_48 = arith.constant 0.000000e+00 : f32
      %114 = vector.broadcast %cst_48 : f32 to vector<128x128xf32>
      %c0_49 = arith.constant 0 : index
      %c0_50 = arith.constant 0 : index
      %115 = vector.load %arg10[%c0_49, %c0_50] : memref<128x128xf32, #tpu.memory_space<vmem>>, vector<128x128xf32>
      tpu.vector_store %arg10[%c0_49, %c0_50], %114 {strides = array<i32>} : memref<128x128xf32, #tpu.memory_space<vmem>>, vector<128x128xf32>,
    } else {
    }
    %c0 = arith.constant 0 : index
    %c0_1 = arith.constant 0 : index
    %c0_2 = arith.constant 0 : index
    %3 = vector.load %arg4[%c0, %c0_1, %c0_2] : memref<1x128x128xbf16, #tpu.memory_space<vmem>>, vector<1x128x128xbf16>
    %4 = vector.shape_cast %3 : vector<1x128x128xbf16> to vector<128x128xbf16>
    %c0_3 = arith.constant 0 : index
    %c0_4 = arith.constant 0 : index
    %5 = vector.load %arg5[%c0_3, %c0_4] : memref<128x128xbf16, #tpu.memory_space<vmem>>, vector<128x128xbf16>
    %cst = arith.constant dense<0.000000e+00> : vector<128x128xf32>
    %6 = tpu.matmul %4, %5, %cst {dimension_numbers = #tpu.dot_dimension_numbers<[1], [0], [0], [1], [0, 0, 1, 1], [], []>} : vector<128x128xbf16>, vector<128x128xbf16>, vector<128x128xf32> -> vector<128x128xf32>
    %7 = arith.truncf %6 : vector<128x128xf32> to vector<128x128xbf16>
    %c0_5 = arith.constant 0 : index
    %c0_6 = arith.constant 0 : index
    %8 = vector.load %arg6[%c0_5, %c0_6] : memref<128x128xbf16, #tpu.memory_space<vmem>>, vector<128x128xbf16>
    %cst_7 = arith.constant dense<0.000000e+00> : vector<128x128xf32>
    %9 = tpu.matmul %4, %8, %cst_7 {dimension_numbers = #tpu.dot_dimension_numbers<[1], [0], [0], [1], [0, 0, 1, 1], [], []>} : vector<128x128xbf16>, vector<128x128xbf16>, vector<128x128xf32> -> vector<128x128xf32>
    %10 = arith.truncf %9 : vector<128x128xf32> to vector<128x128xbf16>
    %c0_8 = arith.constant 0 : index
    %c0_9 = arith.constant 0 : index
    %11 = vector.load %arg7[%c0_8, %c0_9] : memref<128x128xbf16, #tpu.memory_space<vmem>>, vector<128x128xbf16>
    %cst_10 = arith.constant dense<0.000000e+00> : vector<128x128xf32>
    %12 = tpu.matmul %4, %11, %cst_10 {dimension_numbers = #tpu.dot_dimension_numbers<[1], [0], [0], [1], [0, 0, 1, 1], [], []>} : vector<128x128xbf16>, vector<128x128xbf16>, vector<128x128xf32> -> vector<128x128xf32>
    %13 = arith.truncf %12 : vector<128x128xf32> to vector<128x128xbf16>
    %c0_11 = arith.constant 0 : index
    %c0_12 = arith.constant 0 : index
    %c0_13 = arith.constant 0 : index
    %14 = vector.load %arg2[%c0_11, %c0_12, %c0_13] : memref<1x1x128xf32, #tpu.memory_space<vmem>>, vector<1x1x128xf32>
    %15 = vector.shape_cast %14 : vector<1x1x128xf32> to vector<1x128xf32>
    %16 = vector.extract_strided_slice %7 {offsets = [0, 0], sizes = [128, 32], strides = [1, 1]} : vector<128x128xbf16> to vector<128x32xbf16>
    %17 = vector.extract_strided_slice %10 {offsets = [0, 0], sizes = [128, 32], strides = [1, 1]} : vector<128x128xbf16> to vector<128x32xbf16>
    %18 = vector.extract_strided_slice %13 {offsets = [0, 0], sizes = [128, 32], strides = [1, 1]} : vector<128x128xbf16> to vector<128x32xbf16>
    %cst_14 = arith.constant dense<0.000000e+00> : vector<128x128xf32>
    %19 = tpu.matmul %16, %17, %cst_14 {dimension_numbers = #tpu.dot_dimension_numbers<[1], [1], [0], [0], [0, 0, 1, 0], [], []>} : vector<128x32xbf16>, vector<128x32xbf16>, vector<128x128xf32> -> vector<128x128xf32>
    %20 = vector.broadcast %15 : vector<1x128xf32> to vector<128x128xf32>
    %21 = arith.addf %19, %20 : vector<128x128xf32>
    %c0_15 = arith.constant 0 : index
    %c0_16 = arith.constant 0 : index
    %c0_17 = arith.constant 0 : index
    %22 = vector.load %arg3[%c0_15, %c0_16, %c0_17] : memref<4x128x128xbf16, #tpu.memory_space<vmem>>, vector<1x128x128xbf16>
    %23 = vector.shape_cast %22 : vector<1x128x128xbf16> to vector<128x128xbf16>
    %24 = arith.extf %23 : vector<128x128xbf16> to vector<128x128xf32>
    %25 = arith.addf %21, %24 : vector<128x128xf32>
    %cst_18 = arith.constant dense<0xFF800000> : vector<128xf32>
    %26 = vector.multi_reduction <maximumf>, %25, %cst_18 [1] : vector<128x128xf32> to vector<128xf32>
    %27 = vector.shape_cast %26 : vector<128xf32> to vector<128x1xf32>
    %28 = vector.broadcast %27 : vector<128x1xf32> to vector<128x128xf32>
    %29 = arith.subf %25, %28 : vector<128x128xf32>
    %30 = math.exp %29 : vector<128x128xf32>
    %cst_19 = arith.constant dense<0.000000e+00> : vector<128xf32>
    %31 = vector.multi_reduction <add>, %30, %cst_19 [1] : vector<128x128xf32> to vector<128xf32>
    %32 = vector.shape_cast %31 : vector<128xf32> to vector<128x1xf32>
    %33 = tpu.reciprocal %32 {approx = true} : vector<128x1xf32> -> vector<128x1xf32>
    %34 = vector.broadcast %33 : vector<128x1xf32> to vector<128x128xf32>
    %35 = arith.mulf %30, %34 : vector<128x128xf32>
    %36 = arith.truncf %35 : vector<128x128xf32> to vector<128x128xbf16>
    %cst_20 = arith.constant dense<0.000000e+00> : vector<128x32xf32>
    %37 = tpu.matmul %36, %18, %cst_20 {dimension_numbers = #tpu.dot_dimension_numbers<[1], [0], [0], [1], [0, 0, 1, 1], [], []>} : vector<128x128xbf16>, vector<128x32xbf16>, vector<128x32xf32> -> vector<128x32xf32>
    %38 = vector.extract_strided_slice %7 {offsets = [0, 32], sizes = [128, 32], strides = [1, 1]} : vector<128x128xbf16> to vector<128x32xbf16>
    %39 = vector.extract_strided_slice %10 {offsets = [0, 32], sizes = [128, 32], strides = [1, 1]} : vector<128x128xbf16> to vector<128x32xbf16>
    %40 = vector.extract_strided_slice %13 {offsets = [0, 32], sizes = [128, 32], strides = [1, 1]} : vector<128x128xbf16> to vector<128x32xbf16>
    %cst_21 = arith.constant dense<0.000000e+00> : vector<128x128xf32>
    %41 = tpu.matmul %38, %39, %cst_21 {dimension_numbers = #tpu.dot_dimension_numbers<[1], [1], [0], [0], [0, 0, 1, 0], [], []>} : vector<128x32xbf16>, vector<128x32xbf16>, vector<128x128xf32> -> vector<128x128xf32>
    %42 = vector.broadcast %15 : vector<1x128xf32> to vector<128x128xf32>
    %43 = arith.addf %41, %42 : vector<128x128xf32>
    %c1 = arith.constant 1 : index
    %c0_22 = arith.constant 0 : index
    %c0_23 = arith.constant 0 : index
    %44 = vector.load %arg3[%c1, %c0_22, %c0_23] : memref<4x128x128xbf16, #tpu.memory_space<vmem>>, vector<1x128x128xbf16>
    %45 = vector.shape_cast %44 : vector<1x128x128xbf16> to vector<128x128xbf16>
    %46 = arith.extf %45 : vector<128x128xbf16> to vector<128x128xf32>
    %47 = arith.addf %43, %46 : vector<128x128xf32>
    %cst_24 = arith.constant dense<0xFF800000> : vector<128xf32>
    %48 = vector.multi_reduction <maximumf>, %47, %cst_24 [1] : vector<128x128xf32> to vector<128xf32>
    %49 = vector.shape_cast %48 : vector<128xf32> to vector<128x1xf32>
    %50 = vector.broadcast %49 : vector<128x1xf32> to vector<128x128xf32>
    %51 = arith.subf %47, %50 : vector<128x128xf32>
    %52 = math.exp %51 : vector<128x128xf32>
    %cst_25 = arith.constant dense<0.000000e+00> : vector<128xf32>
    %53 = vector.multi_reduction <add>, %52, %cst_25 [1] : vector<128x128xf32> to vector<128xf32>
    %54 = vector.shape_cast %53 : vector<128xf32> to vector<128x1xf32>
    %55 = tpu.reciprocal %54 {approx = true} : vector<128x1xf32> -> vector<128x1xf32>
    %56 = vector.broadcast %55 : vector<128x1xf32> to vector<128x128xf32>
    %57 = arith.mulf %52, %56 : vector<128x128xf32>
    %58 = arith.truncf %57 : vector<128x128xf32> to vector<128x128xbf16>
    %cst_26 = arith.constant dense<0.000000e+00> : vector<128x32xf32>
    %59 = tpu.matmul %58, %40, %cst_26 {dimension_numbers = #tpu.dot_dimension_numbers<[1], [0], [0], [1], [0, 0, 1, 1], [], []>} : vector<128x128xbf16>, vector<128x32xbf16>, vector<128x32xf32> -> vector<128x32xf32>
    %60 = vector.extract_strided_slice %7 {offsets = [0, 64], sizes = [128, 32], strides = [1, 1]} : vector<128x128xbf16> to vector<128x32xbf16>
    %61 = vector.extract_strided_slice %10 {offsets = [0, 64], sizes = [128, 32], strides = [1, 1]} : vector<128x128xbf16> to vector<128x32xbf16>
    %62 = vector.extract_strided_slice %13 {offsets = [0, 64], sizes = [128, 32], strides = [1, 1]} : vector<128x128xbf16> to vector<128x32xbf16>
    %cst_27 = arith.constant dense<0.000000e+00> : vector<128x128xf32>
    %63 = tpu.matmul %60, %61, %cst_27 {dimension_numbers = #tpu.dot_dimension_numbers<[1], [1], [0], [0], [0, 0, 1, 0], [], []>} : vector<128x32xbf16>, vector<128x32xbf16>, vector<128x128xf32> -> vector<128x128xf32>
    %64 = vector.broadcast %15 : vector<1x128xf32> to vector<128x128xf32>
    %65 = arith.addf %63, %64 : vector<128x128xf32>
    %c2 = arith.constant 2 : index
    %c0_28 = arith.constant 0 : index
    %c0_29 = arith.constant 0 : index
    %66 = vector.load %arg3[%c2, %c0_28, %c0_29] : memref<4x128x128xbf16, #tpu.memory_space<vmem>>, vector<1x128x128xbf16>
    %67 = vector.shape_cast %66 : vector<1x128x128xbf16> to vector<128x128xbf16>
    %68 = arith.extf %67 : vector<128x128xbf16> to vector<128x128xf32>
    %69 = arith.addf %65, %68 : vector<128x128xf32>
    %cst_30 = arith.constant dense<0xFF800000> : vector<128xf32>
    %70 = vector.multi_reduction <maximumf>, %69, %cst_30 [1] : vector<128x128xf32> to vector<128xf32>
    %71 = vector.shape_cast %70 : vector<128xf32> to vector<128x1xf32>
    %72 = vector.broadcast %71 : vector<128x1xf32> to vector<128x128xf32>
    %73 = arith.subf %69, %72 : vector<128x128xf32>
    %74 = math.exp %73 : vector<128x128xf32>
    %cst_31 = arith.constant dense<0.000000e+00> : vector<128xf32>
    %75 = vector.multi_reduction <add>, %74, %cst_31 [1] : vector<128x128xf32> to vector<128xf32>
    %76 = vector.shape_cast %75 : vector<128xf32> to vector<128x1xf32>
    %77 = tpu.reciprocal %76 {approx = true} : vector<128x1xf32> -> vector<128x1xf32>
    %78 = vector.broadcast %77 : vector<128x1xf32> to vector<128x128xf32>
    %79 = arith.mulf %74, %78 : vector<128x128xf32>
    %80 = arith.truncf %79 : vector<128x128xf32> to vector<128x128xbf16>
    %cst_32 = arith.constant dense<0.000000e+00> : vector<128x32xf32>
    %81 = tpu.matmul %80, %62, %cst_32 {dimension_numbers = #tpu.dot_dimension_numbers<[1], [0], [0], [1], [0, 0, 1, 1], [], []>} : vector<128x128xbf16>, vector<128x32xbf16>, vector<128x32xf32> -> vector<128x32xf32>
    %82 = vector.extract_strided_slice %7 {offsets = [0, 96], sizes = [128, 32], strides = [1, 1]} : vector<128x128xbf16> to vector<128x32xbf16>
    %83 = vector.extract_strided_slice %10 {offsets = [0, 96], sizes = [128, 32], strides = [1, 1]} : vector<128x128xbf16> to vector<128x32xbf16>
    %84 = vector.extract_strided_slice %13 {offsets = [0, 96], sizes = [128, 32], strides = [1, 1]} : vector<128x128xbf16> to vector<128x32xbf16>
    %cst_33 = arith.constant dense<0.000000e+00> : vector<128x128xf32>
    %85 = tpu.matmul %82, %83, %cst_33 {dimension_numbers = #tpu.dot_dimension_numbers<[1], [1], [0], [0], [0, 0, 1, 0], [], []>} : vector<128x32xbf16>, vector<128x32xbf16>, vector<128x128xf32> -> vector<128x128xf32>
    %86 = vector.broadcast %15 : vector<1x128xf32> to vector<128x128xf32>
    %87 = arith.addf %85, %86 : vector<128x128xf32>
    %c3 = arith.constant 3 : index
    %c0_34 = arith.constant 0 : index
    %c0_35 = arith.constant 0 : index
    %88 = vector.load %arg3[%c3, %c0_34, %c0_35] : memref<4x128x128xbf16, #tpu.memory_space<vmem>>, vector<1x128x128xbf16>
    %89 = vector.shape_cast %88 : vector<1x128x128xbf16> to vector<128x128xbf16>
    %90 = arith.extf %89 : vector<128x128xbf16> to vector<128x128xf32>
    %91 = arith.addf %87, %90 : vector<128x128xf32>
    %cst_36 = arith.constant dense<0xFF800000> : vector<128xf32>
    %92 = vector.multi_reduction <maximumf>, %91, %cst_36 [1] : vector<128x128xf32> to vector<128xf32>
    %93 = vector.shape_cast %92 : vector<128xf32> to vector<128x1xf32>
    %94 = vector.broadcast %93 : vector<128x1xf32> to vector<128x128xf32>
    %95 = arith.subf %91, %94 : vector<128x128xf32>
    %96 = math.exp %95 : vector<128x128xf32>
    %cst_37 = arith.constant dense<0.000000e+00> : vector<128xf32>
    %97 = vector.multi_reduction <add>, %96, %cst_37 [1] : vector<128x128xf32> to vector<128xf32>
    %98 = vector.shape_cast %97 : vector<128xf32> to vector<128x1xf32>
    %99 = tpu.reciprocal %98 {approx = true} : vector<128x1xf32> -> vector<128x1xf32>
    %100 = vector.broadcast %99 : vector<128x1xf32> to vector<128x128xf32>
    %101 = arith.mulf %96, %100 : vector<128x128xf32>
    %102 = arith.truncf %101 : vector<128x128xf32> to vector<128x128xbf16>
    %cst_38 = arith.constant dense<0.000000e+00> : vector<128x32xf32>
    %103 = tpu.matmul %102, %84, %cst_38 {dimension_numbers = #tpu.dot_dimension_numbers<[1], [0], [0], [1], [0, 0, 1, 1], [], []>} : vector<128x128xbf16>, vector<128x32xbf16>, vector<128x32xf32> -> vector<128x32xf32>
    %104 = tpu.concatenate %37, %59, %81, %103 in 1 : vector<128x32xf32>, vector<128x32xf32>, vector<128x32xf32>, vector<128x32xf32> -> vector<128x128xf32>
    %105 = arith.truncf %104 : vector<128x128xf32> to vector<128x128xbf16>
    %c0_39 = arith.constant 0 : index
    %c0_40 = arith.constant 0 : index
    %106 = vector.load %arg10[%c0_39, %c0_40] : memref<128x128xf32, #tpu.memory_space<vmem>>, vector<128x128xf32>
    %c0_41 = arith.constant 0 : index
    %c0_42 = arith.constant 0 : index
    %107 = vector.load %arg8[%c0_41, %c0_42] : memref<128x128xbf16, #tpu.memory_space<vmem>>, vector<128x128xbf16>
    %cst_43 = arith.constant dense<0.000000e+00> : vector<128x128xf32>
    %108 = tpu.matmul %105, %107, %cst_43 {dimension_numbers = #tpu.dot_dimension_numbers<[1], [0], [0], [1], [0, 0, 1, 1], [], []>} : vector<128x128xbf16>, vector<128x128xbf16>, vector<128x128xf32> -> vector<128x128xf32>
    %109 = arith.addf %106, %108 : vector<128x128xf32>
    %c0_44 = arith.constant 0 : index
    %c0_45 = arith.constant 0 : index
    %110 = vector.load %arg10[%c0_44, %c0_45] : memref<128x128xf32, #tpu.memory_space<vmem>>, vector<128x128xf32>
    tpu.vector_store %arg10[%c0_44, %c0_45], %109 {strides = array<i32>} : memref<128x128xf32, #tpu.memory_space<vmem>>, vector<128x128xf32>,
    %c0_i32_46 = arith.constant 0 : i32
    %111 = arith.cmpi eq, %arg1, %c0_i32_46 : i32
    %112 = arith.extui %111 : i1 to i32
    %c0_i32_47 = arith.constant 0 : i32
    %113 = arith.cmpi ne, %112, %c0_i32_47 : i32
    scf.if %113 {
      %c0_48 = arith.constant 0 : index
      %c0_49 = arith.constant 0 : index
      %114 = vector.load %arg10[%c0_48, %c0_49] : memref<128x128xf32, #tpu.memory_space<vmem>>, vector<128x128xf32>
      %c0_50 = arith.constant 0 : index
      %c0_51 = arith.constant 0 : index
      %c0_52 = arith.constant 0 : index
      %115 = vector.load %arg9[%c0_50, %c0_51, %c0_52] : memref<1x128x128xf32, #tpu.memory_space<vmem>>, vector<1x128x128xf32>
      %116 = vector.shape_cast %115 : vector<1x128x128xf32> to vector<128x128xf32>
      %117 = vector.shape_cast %114 : vector<128x128xf32> to vector<1x128x128xf32>
      tpu.vector_store %arg9[%c0_50, %c0_51, %c0_52], %117 {strides = array<i32>} : memref<1x128x128xf32, #tpu.memory_space<vmem>>, vector<1x128x128xf32>,
    } else {
    }
    return
  }
  func.func @transform_0(%arg0: i32, %arg1: i32) -> (i32, i32, i32) {
    %c0_i32 = arith.constant 0 : i32
    %c0_i32_0 = arith.constant 0 : i32
    %c0_i32_1 = arith.constant 0 : i32
    return %arg0, %c0_i32, %c0_i32_0 : i32, i32, i32
  }
  func.func @transform_1(%arg0: i32, %arg1: i32) -> (i32, i32, i32) {
    %c0_i32 = arith.constant 0 : i32
    %c0_i32_0 = arith.constant 0 : i32
    %c0_i32_1 = arith.constant 0 : i32
    return %arg1, %c0_i32, %c0_i32_0 : i32, i32, i32
  }
  func.func @transform_2(%arg0: i32, %arg1: i32) -> (i32, i32, i32) {
    %c0_i32 = arith.constant 0 : i32
    %c0_i32_0 = arith.constant 0 : i32
    %c0_i32_1 = arith.constant 0 : i32
    return %arg0, %c0_i32, %c0_i32_0 : i32, i32, i32
  }
  func.func @transform_3(%arg0: i32, %arg1: i32) -> (i32, i32) {
    %c0_i32 = arith.constant 0 : i32
    %c0_i32_0 = arith.constant 0 : i32
    return %c0_i32, %arg1 : i32, i32
  }
  func.func @transform_4(%arg0: i32, %arg1: i32) -> (i32, i32) {
    %c0_i32 = arith.constant 0 : i32
    %c0_i32_0 = arith.constant 0 : i32
    return %c0_i32, %arg1 : i32, i32
  }
  func.func @transform_5(%arg0: i32, %arg1: i32) -> (i32, i32) {
    %c0_i32 = arith.constant 0 : i32
    %c0_i32_0 = arith.constant 0 : i32
    return %c0_i32, %arg1 : i32, i32
  }
  func.func @transform_6(%arg0: i32, %arg1: i32) -> (i32, i32) {
    %c0_i32 = arith.constant 0 : i32
    %c0_i32_0 = arith.constant 0 : i32
    return %arg1, %c0_i32 : i32, i32
  }
  func.func @transform_7(%arg0: i32, %arg1: i32) -> (i32, i32, i32) {
    %c0_i32 = arith.constant 0 : i32
    %c0_i32_0 = arith.constant 0 : i32
    %c0_i32_1 = arith.constant 0 : i32
    return %arg0, %c0_i32, %c0_i32_0 : i32, i32, i32
  }
}

</mosaic_0001>

<bundles_post_ra>
// kernel: tpu_custom_call.1
= control target key start
LH: loop header
LB: loop body
LE: loop exit
PB: predicated region body
PF: predicated region fallthrough
CT: control target
= control target key end

     0   :  { %s6959_s0 = inlined_call_operand.hbm [shape: f32[2,1,128], index: 0, kind: input, shape index: {}]   ;;  %s6960_s1 = inlined_call_operand.hbm [shape: bf16[4,128,128], index: 1, kind: input, shape index: {}]   ;;  %s6961_s2 = inlined_call_operand.hbm [shape: bf16[2,128,128], index: 2, kind: input, shape index: {}]   ;;  %s6962_s3 = inlined_call_operand.hbm [shape: bf16[128,128], index: 3, kind: input, shape index: {}]   ;;  %s6963_s4 = inlined_call_operand.hbm [shape: bf16[128,128], index: 4, kind: input, shape index: {}]   ;;  %s6964_s5 = inlined_call_operand.hbm [shape: bf16[128,128], index: 5, kind: input, shape index: {}]   ;;  %s6965_s6 = inlined_call_operand.hbm [shape: bf16[128,128], index: 6, kind: input, shape index: {}]   ;;  %s6966_s7 = inlined_call_operand.hbm [shape: f32[2,128,128], index: 7, kind: output, shape index: {}]  }
   0x1   :  { %6982 = sst [smem:[#allocation47_spill]] %s6960_s1 }
   0x2   :  { %6983 = sst [smem:[#allocation48_spill]] %s6963_s4 }
   0x3   :  { %12 = vsyncpa [#allocation4], 0 }
   0x4   :  { %14 = vsyncpa [#allocation4 + $0x1], 0 }
   0x5   :  { %15 = vsyncpa [#allocation7], 0 }
   0x6   :  { %16 = vsyncpa [#allocation11], 0 }
   0x7   :  { %17 = vsyncpa [#allocation14], 0 }
   0x8   :  { %18 = vsyncpa [#allocation5], 0 }
   0x9   :  { %20 = vsyncpa [#allocation5 + $0x1], 0  ;;  %s5430_s24 = smov 0   ;;  %s5432_s25 = smov 0  }
   0xa   :  { %s5434_s26 = smov 0   ;;  %s5436_s27 = smov 0  }
   0xb   :  { %s5438_s28 = smov 0   ;;  %s5440_s29 = smov 0  }
   0xc LB: > { %6984 = sst [smem:[#allocation23_spill]] %s5361_s26  ;;  %s5461_s30 = sadd.s32 4294967295, %s5373_s29   ;;  %s5373_s29 = sphi %s5440_s29, %s26_s29   ;;  %s5369_s28 = sphi %s5438_s28, %s7072_s28   ;;  %s5365_s27 = sphi %s5436_s27, %s7071_s27   ;;  %s5361_s26 = sphi %s5434_s26, %s7067_s26   ;;  %s5357_s25 = sphi %s5432_s25, %s7070_s25   ;;  %s5353_s24 = sphi %s5430_s24, %s7069_s24  }
   0xd   : > { %6985 = sst [smem:[#allocation24_spill]] %s5373_s29  ;;  %p3682_p0 = scmp.ge.s32.totalorder %s5373_s29, 1 }
   0xe   : > { %p6976_p1 = scmp.eq.s32.totalorder %s5461_s30, 0  ;;  %p251_p2 = scmp.lt.s32.totalorder %s5373_s29, 3 }
   0xf   : > { %s5375_s9 = smov [#allocation6]   ;;  %s5376_s12 = smov [#allocation10]  }
  0x10   : > { %p5466_p3 = pnand %p3682_p0, %p251_p2  ;;  %s267_s10 = sshll.u32 %s5375_s9, 4  ;;  %s268_s10 = int_to_ptr.vmem [resolvable:$true] %s267_s10 }
  0x11   : > { %s297_s13 = sshll.u32 %s5376_s12, 4  ;;  %s5098_s15 = scalar_lea.vmem %s268_s10, 4096  ;;  %s298_s13 = int_to_ptr.vmem [resolvable:$true] %s297_s13 }
  0x12   : > { %p4571_p4 = pneg %p5466_p3  ;;  %p5099_p8 = scmp.ne.s32.totalorder %s268_s10, %s5098_s15 }
  0x13   : > { %p5106_p11 = scmp.lt.s32.totalorder %s268_s10, %s268_s10  ;;  %p5107_p12 = scmp.lt.s32.totalorder %s5098_s15, %s5098_s15 }
  0x14   : > { %p5475_p6 = pnand %p4571_p4, %p6976_p1 }
  0x15   : > { %p5108_p13 = por %p5107_p12, %p5106_p11 }
  0x16   : > { %p5481_p7 = pneg %p5475_p6 }
  0x18   : > { %p5101_p9 = pnand %p5099_p8, %p5481_p7 }
  0x1a   : > { %p5102_p10 = pneg %p5101_p9 }
  0x1c   : > { %p5109_p0 = pnand %p5108_p13, %p5102_p10 }
  0x1e   : > { %5112 = shalt.err (!%p5109_p0)
}
  0x1f   : > { %s6967_s16 = smov 64   ;;  %s6969_s17 = smov 4  }
  0x20   : > { %s6989_s1 = sld [smem:[#allocation47_spill]]  ;;  %s5124_s20 = scalar_lea.vmem %s298_s13, 1024 }
  0x21   : > { %p5125_p2 = scmp.ne.s32.totalorder %s298_s13, %s5124_s20  ;;  %p5132_p9 = scmp.lt.s32.totalorder %s298_s13, %s298_s13 }
  0x22   : > { %p5133_p10 = scmp.lt.s32.totalorder %s5124_s20, %s5124_s20 }
  0x23   : > { %p5127_p4 = pnand %p5125_p2, %p5481_p7 }
  0x24   : > { %p5134_p11 = por %p5133_p10, %p5132_p9 }
  0x25   : > { %p5128_p8 = pneg %p5127_p4 }
  0x26   : > { %4574 = dma.hbm_to_vmem [thread:$0]  (!%p5475_p6), %s6989_s1, 4096, %s268_s10, [#allocation7], %s6967_s16, %s6967_s16, %s6969_s17  }
  0x27   : > { %p5135_p12 = pnand %p5134_p11, %p5128_p8 }
  0x29   : > { %5138 = shalt.err (!%p5135_p12)
}
  0x2a   : > { %s6990_s4 = sld [smem:[#allocation48_spill]]  ;;  %s3681_s23 = sadd.s32 4294967294, %s5373_s29  }
  0x2b   : > { %s38_s9 = sadd.s32 1, %s5369_s28  ;;  %s45_s10 = sadd.s32 1, %s5361_s26 }
  0x2c   : > { %p40_p13 = scmp.ge.s32.totalorder %s38_s9, 2  ;;  %p52_p0 = scmp.ne.s32.totalorder %s5361_s26, %s5357_s25 }
  0x2d   : > { %p53_p2 = scmp.eq.s32.totalorder %s5373_s29, 0  ;;  %p58_p8 = scmp.ne.s32.totalorder %s5357_s25, %s5353_s24 }
  0x2e   : > { %s7074_s9 = smov (%p40_p13, %s38_s9), 0  ;;  %p238_p9 = scmp.eq.s32.totalorder %s5461_s30, 1 }
  0x2f   : > { %6991 = sst [smem:[#allocation25_spill]] %s7074_s9  ;;  %p5513_p4 = por %p53_p2, %p52_p0 }
  0x30   : > { %4580 = dma.hbm_to_vmem [thread:$0]  (!%p5475_p6), %s6990_s4, 1024, %s298_s13, [#allocation11], %s6967_s16, %s6967_s16, %s6969_s17  }
  0x31   : > { %s42_s13 = ssub.s32 %s5369_s28, %s7074_s9  ;;  %p5524_p11 = por %p6976_p1, %p58_p8 }
  0x32   : > { %p43_p10 = scmp.eq.s32.totalorder %s42_s13, 0  ;;  %p5528_p12 = por %p238_p9, %p52_p0 }
  0x33   : > { %p244_p13 = scmp.eq.s32.totalorder %s3681_s23, 1  ;;  %p4603_p5 = scmp.lt.s32.totalorder %s5373_s29, 2 }
  0x34   : > { %s6994_s18 = scalar_select %p5528_p12, 1, 0 }
  0x35   : > { %s5533_s19 = scalar_select %p43_p10, %s5361_s26, %s45_s10  }
  0x36   : > { %p5535_p2 = por %p244_p13, %p58_p8  ;;  %s342_s21 = sand.u32 1, %s5373_s29  }
  0x37   : > { %6995 = sst [smem:[#allocation26_spill]] %s5533_s19  ;;  %s344_s22 = sand.u32 1, %s5361_s26  }
  0x38   : > { %s6996_s20 = scalar_select %p5535_p2, 1, 0 }
  0x39   : > { %s3689_s13 = sshll.u32 %s5369_s28, 4  ;;  %s345_s16 = scalar_lea.vmem [#allocation3], %s344_s22 }
  0x3a   : > { %6997 = sst [smem:[#allocation27_spill]] %s6996_s20  ;;  %s352_s17 = sshll.u32 %s345_s16, 4  ;;  %s353_s17 = int_to_ptr.vmem [resolvable:$true] %s352_s17 }
  0x3b   : > { %s350_s9 = scalar_lea.hbm %s6959_s0, %s3689_s13  ;;  %p5548_p0 = pnand %p4603_p5, %p5513_p4 }
  0x3c   : > { %s3690_s10 = sshll.u32 %s344_s22, 6  ;;  %s3779_s19 = sshll.u32 %s5369_s28, 10 }
  0x3d   : > { %s363_s20 = scalar_lea.vmem [#allocation8], %s3690_s10  ;;  %s5553_s26 = scalar_lea.sflag [#allocation4], %s342_s21 }
  0x3e   : > { %s370_s29 = sshll.u32 %s363_s20, 4  ;;  %p6977_p8 = pneg %p5548_p0  ;;  %s5563_s29 = int_to_ptr.vmem [resolvable:$true] %s370_s29 }
  0x3f   : > { %s5152_s16 = scalar_lea.vmem %s353_s17, 16  ;;  %s5379_s1 = smov [#allocation3]  }
  0x40   : > { %p5153_p9 = scmp.ne.s32.totalorder %s353_s17, %s5152_s16  ;;  %s5157_s4 = sshll.u32 %s5379_s1, 4  ;;  %s5158_s4 = int_to_ptr.vmem [resolvable:$false] %s5157_s4 }
  0x41   : > { %s5159_s12 = scalar_lea.vmem %s5158_s4, 32  ;;  %p5160_p5 = scmp.lt.s32.totalorder %s353_s17, %s5158_s4 }
  0x42   : > { %p5155_p10 = pnand %p5153_p9, %p6977_p8  ;;  %p5161_p4 = scmp.lt.s32.totalorder %s5159_s12, %s5152_s16 }
  0x44   : > { %p5156_p13 = pneg %p5155_p10  ;;  %p5162_p1 = por %p5161_p4, %p5160_p5 }
  0x46   : > { %p5163_p2 = pnand %p5162_p1, %p5156_p13 }
  0x48   : > { %5166 = shalt.err (!%p5163_p2)
}
  0x49   : > { %4590 = dma.hbm_to_vmem [thread:$0]  (!%p5548_p0), %s350_s9, 16, %s353_s17, %s5553_s26  }
  0x4a   : > { %s5380_s20 = smov [#allocation9]   ;;  %s5381_s22 = smov [#allocation12]  }
  0x4b   : > { %s282_s21 = sshll.u32 %s5380_s20, 4  ;;  %s312_s13 = sshll.u32 %s5381_s22, 4  ;;  %s283_s21 = int_to_ptr.vmem [resolvable:$true] %s282_s21  ;;  %s313_s13 = int_to_ptr.vmem [resolvable:$true] %s312_s13 }
  0x4c   : > { %s5178_s10 = scalar_lea.vmem %s283_s21, 1024  ;;  %p5186_p5 = scmp.lt.s32.totalorder %s283_s21, %s283_s21 }
  0x4d   : > { %p5179_p9 = scmp.ne.s32.totalorder %s283_s21, %s5178_s10  ;;  %p5187_p1 = scmp.lt.s32.totalorder %s5178_s10, %s5178_s10 }
  0x4f   : > { %p5181_p10 = pnand %p5179_p9, %p5481_p7  ;;  %p5188_p2 = por %p5187_p1, %p5186_p5 }
  0x51   : > { %p5182_p8 = pneg %p5181_p10 }
  0x53   : > { %p5189_p13 = pnand %p5188_p2, %p5182_p8 }
  0x55   : > { %5192 = shalt.err (!%p5189_p13)
}
  0x56   : > { %s6999_s17 = smov 4   ;;  %s7000_s9 = smov 64  }
  0x57   : > { %4577 = dma.hbm_to_vmem [thread:$0]  (!%p5475_p6), %s6962_s3, 1024, %s283_s21, [#allocation7], %s7000_s9, %s7000_s9, %s6999_s17  }
  0x58   : > { %s5204_s4 = scalar_lea.vmem %s313_s13, 1024  ;;  %p5212_p12 = scmp.lt.s32.totalorder %s313_s13, %s313_s13 }
  0x59   : > { %p5205_p4 = scmp.ne.s32.totalorder %s313_s13, %s5204_s4  ;;  %p5213_p5 = scmp.lt.s32.totalorder %s5204_s4, %s5204_s4 }
  0x5b   : > { %p5207_p9 = pnand %p5205_p4, %p5481_p7  ;;  %p5214_p8 = por %p5213_p5, %p5212_p12 }
  0x5d   : > { %p5208_p10 = pneg %p5207_p9 }
  0x5f   : > { %p5215_p1 = pnand %p5214_p8, %p5208_p10 }
  0x61   : > { %5218 = shalt.err (!%p5215_p1)
}
  0x62   : > { %4583 = dma.hbm_to_vmem [thread:$0]  (!%p5475_p6), %s6964_s5, 1024, %s313_s13, [#allocation11], %s7000_s9, %s7000_s9, %s6999_s17  }
  0x63   : > { %s5382_s21 = smov [#allocation13]   ;;  %s5590_s1 = scalar_lea.hbm %s6961_s2, %s3779_s19 }
  0x64   : > { %s328_s22 = sshll.u32 %s5382_s21, 4  ;;  %s329_s22 = int_to_ptr.vmem [resolvable:$true] %s328_s22 }
  0x65   : > { %s5230_s4 = scalar_lea.vmem %s329_s22, 1024  ;;  %p5238_p4 = scmp.lt.s32.totalorder %s329_s22, %s329_s22 }
  0x66   : > { %p5231_p12 = scmp.ne.s32.totalorder %s329_s22, %s5230_s4  ;;  %p5239_p9 = scmp.lt.s32.totalorder %s5230_s4, %s5230_s4 }
  0x68   : > { %p5233_p2 = pnand %p5231_p12, %p5481_p7  ;;  %p5240_p10 = por %p5239_p9, %p5238_p4 }
  0x6a   : > { %p5234_p13 = pneg %p5233_p2 }
  0x6c   : > { %p5241_p5 = pnand %p5240_p10, %p5234_p13 }
  0x6e   : > { %5244 = shalt.err (!%p5241_p5)
}
  0x6f   : > { %4586 = dma.hbm_to_vmem [thread:$0]  (!%p5475_p6), %s6965_s6, 1024, %s329_s22, [#allocation14], %s7000_s9, %s7000_s9, %s6999_s17  }
  0x70   : > { %s5258_s14 = scalar_lea.vmem %s5563_s29, 1024  ;;  %p7001_p8 = pneg %p5548_p0 }
  0x71   : > { %p5259_p7 = scmp.ne.s32.totalorder %s5563_s29, %s5258_s14  ;;  %s5383_s19 = smov [#allocation8]  }
  0x72   : > { %s5263_s20 = sshll.u32 %s5383_s19, 4  ;;  %s5264_s20 = int_to_ptr.vmem [resolvable:$false] %s5263_s20 }
  0x73   : > { %p5261_p1 = pnand %p5259_p7, %p7001_p8  ;;  %s5265_s11 = scalar_lea.vmem %s5264_s20, 2048 }
  0x74   : > { %p5266_p2 = scmp.lt.s32.totalorder %s5563_s29, %s5264_s20  ;;  %p5267_p13 = scmp.lt.s32.totalorder %s5265_s11, %s5258_s14 }
  0x75   : > { %p5262_p12 = pneg %p5261_p1 }
  0x76   : > { %p5268_p4 = por %p5267_p13, %p5266_p2 }
  0x78   : > { %p5269_p9 = pnand %p5268_p4, %p5262_p12 }
  0x7a   : > { %5272 = shalt.err (!%p5269_p9)
}
  0x7b   : > { %4593 = dma.hbm_to_vmem [thread:$0]  (!%p5548_p0), %s5590_s1, 1024, %s5563_s29, %s5553_s26, %s7000_s9, %s7000_s9, %s6999_s17  }
  0x7c   : > { %382 = sbr.rel (%p5466_p3) target bundleno = 3422 (0xd5e), region = 48 }
  0x81   : > { %s384_s21 = sand.u32 1, %s5461_s30   ;;  %s5620_s22 = sand.u32 1, %s5357_s25  }
  0x82   : > { %s385_s10 = scalar_lea.sflag [#allocation4], %s384_s21  ;;  %s387_s16 = scalar_lea.vmem [#allocation3], %s5620_s22 }
  0x83   : > { %5324 = dma.done.wait (%p5524_p11), %s385_s10, 16  }
  0x84   : > { %5326 = vsyncadd (%p5524_p11), %s385_s10, 4294967280  ;;  %p7002_p6 = scmp.eq.s32.totalorder %s5461_s30, 0 }
  0x86   : > { %5328 = dma.done.wait (%p7002_p6), [#allocation7], 4096   ;;  %p7003_p0 = pmov %p7002_p6 }
  0x87   : > { %s3695_s26 = sshll.u32 %s5620_s22, 6 }
  0x88   : > { %5330 = vsyncadd (%p7003_p0), [#allocation7], 4294963200  ;;  %s5632_s29 = scalar_lea.vmem [#allocation8], %s3695_s26 }
  0x89   : > { %5332 = dma.done.wait (%p5524_p11), %s385_s10, 1024  }
  0x8a   : > { %5334 = vsyncadd (%p5524_p11), %s385_s10, 4294966272  ;;  %p7004_p3 = pmov %p7003_p0 }
  0x8b   : > { %p7005_p10 = pmov %p7003_p0 }
  0x8c   : > { %5336 = dma.done.wait (%p7004_p3), [#allocation7], 1024  }
  0x8d   : > { %5338 = vsyncadd (%p7005_p10), [#allocation7], 4294966272  ;;  %p7006_p5 = pmov %p7003_p0 }
  0x8e   : > { %p7007_p7 = pmov %p7003_p0 }
  0x8f   : > { %5340 = dma.done.wait (%p7006_p5), [#allocation11], 2048  }
  0x90   : > { %5342 = vsyncadd (%p7007_p7), [#allocation11], 4294965248  ;;  %p7008_p8 = pmov %p7003_p0 }
  0x91   : > { %p7009_p1 = pmov %p7003_p0 }
  0x92   : > { %5344 = dma.done.wait (%p7008_p8), [#allocation14], 1024  }
  0x93   : > { %5346 = vsyncadd (%p7009_p1), [#allocation14], 4294966272  ;;  %v4790_v0 = vld [vmem:[#allocation10 + $0x38] sm:$0xff]   ;;  %v4791_v1 = vld [vmem:[#allocation10 + $0x30] sm:$0xff]   ;;  %vm1052_vm0 = vcmask 261120   ;;  %s5384_s30 = smov 96  }
  0x94   : > { %4161 = vmatprep.subr.bf16.mxu1 %v4790_v0  ;;  %v4792_v2 = vld [vmem:[#allocation10 + $0x28] sm:$0xff]   ;;  %v4793_v3 = vld [vmem:[#allocation10 + $0x20] sm:$0xff]   ;;  %v4794_v5 = vld [vmem:[#allocation10 + $0x18] sm:$0xff]   ;;  %s5385_s8 = smov 64   ;;  %s5386_s15 = smov 32   ;;  %vm3224_vm1 = vcmask 523264  }
  0x95   : > { %4162 = vmatpush3.bf16.msra.mxu1 %v4790_v0  ;;  %v5651_v4 = vld [vmem:[%s5632_s29] sm:$0xff]   ;;  %v4804_v6 = vld [vmem:[#allocation9 + $0x38] sm:$0xff]   ;;  %v4795_v7 = vld [vmem:[#allocation10 + $0x10] sm:$0xff]   ;;  %vm3241_vm2 = vcmask 785408   ;;  %s3700_s23 = sshll.u32 %s5620_s22, 7  ;;  %s3780_s9 = sshll.u32 %s5365_s27, 11 }
  0x96   : > { %4163 = vmatprep.subr.bf16.mxu1 %v4791_v1  ;;  %4177 = vmatprep.mubr.bf16.mxu1 %v5651_v4  ;;  %v4807_v8 = vld [vmem:[#allocation9 + $0x30] sm:$0xff]   ;;  %v4808_v9 = vld [vmem:[#allocation9 + $0x28] sm:$0xff]   ;;  %v4809_v11 = vld [vmem:[#allocation9 + $0x20] sm:$0xff]   ;;  %s6886_s17 = scalar_lea.vmem [#allocation15], %s3700_s23  ;;  %s6907_s12 = scalar_lea.hbm %s6966_s7, %s3780_s9 }
  0x97   : > { %4145 = vmatprep.mubr.bf16.mxu0 %v5651_v4  ;;  %4129 = vmatprep.subr.bf16.mxu0 %v4804_v6  ;;  %v4796_v10 = vld [vmem:[#allocation10 + $0x8] sm:$0xff]   ;;  %v4797_v12 = vld [vmem:[#allocation10] sm:$0xff]   ;;  %v4810_v13 = vld [vmem:[#allocation9 + $0x18] sm:$0xff]   ;;  %s3524_s1 = sshll.u32 %s6886_s17, 4  ;;  %s3511_s14 = scalar_lea.sflag [#allocation5], %s5620_s22  ;;  %s6909_s1 = int_to_ptr.vmem [resolvable:$true] %s3524_s1 }
  0x98   : > { %4130 = vmatpush3.bf16.msra.mxu0 %v4804_v6  ;;  %v4799_v14 = vld [vmem:[%s5632_s29 + $0x8] sm:$0xff]   ;;  %v4811_v15 = vld [vmem:[#allocation9 + $0x10] sm:$0xff]   ;;  %v4801_v18 = vld [vmem:[%s5632_s29 + $0x18] sm:$0xff]   ;;  %s5273_s19 = scalar_lea.vmem %s6909_s1, 2048  ;;  %p7061_p12 = scmp.ne.s32.totalorder %s6994_s18, 0 }
  0x99   : > { %4164 = vmatpush3.bf16.msra.mxu1 %v4791_v1  ;;  %4131 = vmatprep.subr.bf16.mxu0 %v4807_v8  ;;  %v4800_v16 = vld [vmem:[%s5632_s29 + $0x10] sm:$0xff]   ;;  %v4812_v17 = vld [vmem:[#allocation9 + $0x8] sm:$0xff]   ;;  %v4813_v19 = vld [vmem:[#allocation9] sm:$0xff]   ;;  %p5274_p11 = scmp.ne.s32.totalorder %s6909_s1, %s5273_s19  ;;  %s5387_s27 = smov [#allocation15]  }
  0x9a   : > { %4165 = vmatprep.subr.bf16.mxu1 %v4792_v2  ;;  %v4802_v20 = vld [vmem:[%s5632_s29 + $0x20] sm:$0xff]   ;;  %v4814_v21 = vld [vmem:[#allocation12 + $0x38] sm:$0xff]   ;;  %v4803_v22 = vld [vmem:[%s5632_s29 + $0x28] sm:$0xff]   ;;  %s5277_s20 = sshll.u32 %s5387_s27, 4  ;;  %s5278_s20 = int_to_ptr.vmem [resolvable:$false] %s5277_s20 }
  0x9b   : > { %v4815_v23 = vld [vmem:[#allocation12 + $0x30] sm:$0xff]   ;;  %v4816_v25 = vld [vmem:[#allocation12 + $0x28] sm:$0xff]   ;;  %v4806_v26 = vld [vmem:[%s5632_s29 + $0x38] sm:$0xff]   ;;  %p5275_p2 = pnand %p5274_p11, %p7061_p12  ;;  %s5279_s11 = scalar_lea.vmem %s5278_s20, 4096 }
  0x9c   : > { %4132 = vmatpush3.bf16.msra.mxu0 %v4807_v8  ;;  %v4805_v24 = vld [vmem:[%s5632_s29 + $0x30] sm:$0xff]   ;;  %v4817_v27 = vld [vmem:[#allocation12 + $0x20] sm:$0xff]   ;;  %v4818_v28 = vld [vmem:[#allocation12 + $0x18] sm:$0xff]   ;;  %p5280_p4 = scmp.lt.s32.totalorder %s6909_s1, %s5278_s20  ;;  %p5281_p9 = scmp.lt.s32.totalorder %s5279_s11, %s5273_s19 }
  0x9d   : > { %4166 = vmatpush3.bf16.msra.mxu1 %v4792_v2  ;;  %4133 = vmatprep.subr.bf16.mxu0 %v4808_v9  ;;  %v4819_v29 = vld [vmem:[#allocation12 + $0x10] sm:$0xff]   ;;  %v4820_v30 = vld [vmem:[#allocation12 + $0x8] sm:$0xff]   ;;  %v4821_v31 = vld [vmem:[#allocation12] sm:$0xff]   ;;  %p5276_p13 = pneg %p5275_p2 }
  0x9e   : > { %4167 = vmatprep.subr.bf16.mxu1 %v4793_v3  ;;  %p5282_p6 = por %p5281_p9, %p5280_p4 }
  0xa0   : > { %4134 = vmatpush3.bf16.msra.mxu0 %v4808_v9  ;;  %p5283_p0 = pnand %p5282_p6, %p5276_p13 }
  0xa1   : > { %4168 = vmatpush3.bf16.msra.mxu1 %v4793_v3  ;;  %4135 = vmatprep.subr.bf16.mxu0 %v4809_v11 }
  0xa2   : > { %4169 = vmatprep.subr.bf16.mxu1 %v4794_v5 }
  0xa4   : > { %4136 = vmatpush3.bf16.msra.mxu0 %v4809_v11 }
  0xa5   : > { %4170 = vmatpush3.bf16.msra.mxu1 %v4794_v5  ;;  %4137 = vmatprep.subr.bf16.mxu0 %v4810_v13 }
  0xa6   : > { %4171 = vmatprep.subr.bf16.mxu1 %v4795_v7 }
  0xa8   : > { %4138 = vmatpush3.bf16.msra.mxu0 %v4810_v13 }
  0xa9   : > { %4172 = vmatpush3.bf16.msra.mxu1 %v4795_v7  ;;  %4139 = vmatprep.subr.bf16.mxu0 %v4811_v15 }
  0xaa   : > { %4173 = vmatprep.subr.bf16.mxu1 %v4796_v10 }
  0xac   : > { %4140 = vmatpush3.bf16.msra.mxu0 %v4811_v15 }
  0xad   : > { %4174 = vmatpush3.bf16.msra.mxu1 %v4796_v10  ;;  %4141 = vmatprep.subr.bf16.mxu0 %v4812_v17 }
  0xae   : > { %4175 = vmatprep.subr.bf16.mxu1 %v4797_v12 }
  0xb0   : > { %4142 = vmatpush3.bf16.msra.mxu0 %v4812_v17 }
  0xb1   : > { %4176 = vmatpush3.bf16.msra.mxu1 %v4797_v12  ;;  %4143 = vmatprep.subr.bf16.mxu0 %v4813_v19 }
  0xb4   : > { %4178 = vmatmul.mubr.bf16.vlgmr.msra.gmra.mxu1 %v4799_v14  ;;  %4144 = vmatpush3.bf16.msra.mxu0 %v4813_v19 }
  0xb5   : > { %4181 = vmatprep.mubr.bf16.mxu1 %v4800_v16  ;;  %4193 = vmatprep.subr.bf16.mxu0 %v4814_v21 }
  0xb7   : > { %4146 = vmatmul.mubr.bf16.vlgmr.msra.gmra.mxu0 %v4799_v14 }
  0xb8   : > { %4194 = vmatpush3.bf16.msra.mxu0 %v4814_v21  ;;  %4149 = vmatprep.mubr.bf16.mxu0 %v4800_v16 }
  0xb9   : > { %4195 = vmatprep.subr.bf16.mxu0 %v4815_v23 }
  0xbc   : > { %4182 = vmatmul.mubr.bf16.gmra.mxu1 %v4801_v18  ;;  %4196 = vmatpush3.bf16.msra.mxu0 %v4815_v23 }
  0xbd   : > { %4185 = vmatprep.mubr.bf16.mxu1 %v4802_v20  ;;  %4197 = vmatprep.subr.bf16.mxu0 %v4816_v25 }
  0xbf   : > { %4150 = vmatmul.mubr.bf16.gmra.mxu0 %v4801_v18 }
  0xc0   : > { %4198 = vmatpush3.bf16.msra.mxu0 %v4816_v25  ;;  %4153 = vmatprep.mubr.bf16.mxu0 %v4802_v20 }
  0xc1   : > { %4199 = vmatprep.subr.bf16.mxu0 %v4817_v27 }
  0xc4   : > { %4186 = vmatmul.mubr.bf16.gmra.mxu1 %v4803_v22  ;;  %4200 = vmatpush3.bf16.msra.mxu0 %v4817_v27 }
  0xc5   : > { %4189 = vmatprep.mubr.bf16.mxu1 %v4805_v24  ;;  %4201 = vmatprep.subr.bf16.mxu0 %v4818_v28 }
  0xc7   : > { %4154 = vmatmul.mubr.bf16.gmra.mxu0 %v4803_v22 }
  0xc8   : > { %4202 = vmatpush3.bf16.msra.mxu0 %v4818_v28  ;;  %4157 = vmatprep.mubr.bf16.mxu0 %v4805_v24 }
  0xc9   : > { %4203 = vmatprep.subr.bf16.mxu0 %v4819_v29 }
  0xcc   : > { %4190 = vmatmul.mubr.bf16.gmra.mxu1 %v4806_v26  ;;  %4204 = vmatpush3.bf16.msra.mxu0 %v4819_v29 }
  0xcd   : > { %4205 = vmatprep.subr.bf16.mxu0 %v4820_v30 }
  0xcf   : > { %4158 = vmatmul.mubr.bf16.gmra.mxu0 %v4806_v26 }
  0xd0   : > { %4206 = vmatpush3.bf16.msra.mxu0 %v4820_v30  ;;  %4209 = vmatprep.mubr.bf16.mxu0 %v5651_v4 }
  0xd1   : > { %4207 = vmatprep.subr.bf16.mxu0 %v4821_v31 }
  0xd4   : > { %4208 = vmatpush3.bf16.msra.mxu0 %v4821_v31 }
  0xd7   : > { %4210 = vmatmul.mubr.bf16.vlgmr.msra.gmra.mxu0 %v4799_v14 }
  0xd8   : > { %4213 = vmatprep.mubr.bf16.mxu0 %v4800_v16 }
  0xdf   : > { %4214 = vmatmul.mubr.bf16.gmra.mxu0 %v4801_v18 }
  0xe0   : > { %4217 = vmatprep.mubr.bf16.mxu0 %v4802_v20 }
  0xe7   : > { %4218 = vmatmul.mubr.bf16.gmra.mxu0 %v4803_v22 }
  0xe8   : > { %4221 = vmatprep.mubr.bf16.mxu0 %v4805_v24 }
  0xef   : > { %4222 = vmatmul.mubr.bf16.gmra.mxu0 %v4806_v26 }
 0x174   : > { %v4179_v32 = vpop.f32.mrf.mxu1 }
 0x176   : > { %v805_v33 = vpop.f32.mrf.mxu1 }
 0x177   : > { %v4147_v42 = vpop.f32.mrf.mxu0 }
 0x178   : > { %v4180_v34 = vpop.f32.mrf.mxu1 }
 0x179   : > { %v5663_v35 = vpack.c.bf16 %v4180_v34, %v4179_v32  ;;  %v636_v44 = vpop.f32.mrf.mxu0 }
 0x17a   : > { %v808_v36 = vpop.f32.mrf.mxu1 }
 0x17b   : > { %v5665_v37 = vpack.c.bf16 %v808_v36, %v805_v33  ;;  %v4148_v46 = vpop.f32.mrf.mxu0 }
 0x17c   : > { %v4183_v38 = vpop.f32.mrf.mxu1  ;;  %v5671_v47 = vpack.c.bf16 %v4148_v46, %v4147_v42  ;;  %v1081_v42 = vsel %vm1052_vm0, %v5663_v35, 0 }
 0x17d   : > { %v639_v49 = vpop.f32.mrf.mxu0 }
 0x17e   : > { %v5667_v39 = vpop.f32.mrf.mxu1  ;;  %v5673_v50 = vpack.c.bf16 %v639_v49, %v636_v44 }
 0x17f   : > { %v4151_v52 = vpop.f32.mrf.mxu0 }
 0x180   : > { %v4184_v40 = vpop.f32.mrf.mxu1  ;;  %4241 = vmatprep.mubr.msk.bf16.mxu1 %vm1052_vm0, %v5673_v50 }
 0x181   : > { %v652_v54 = vpop.f32.mrf.mxu0  ;;  %v5715_v22 = vpack.c.bf16 %v4184_v40, %v4183_v38 }
 0x182   : > { %v5669_v41 = vpop.f32.mrf.mxu1 }
 0x183   : > { %v4152_v56 = vpop.f32.mrf.mxu0  ;;  %v5723_v28 = vpack.c.bf16 %v5669_v41, %v5667_v39  ;;  %v1087_v29 = vsel %vm1052_vm0, %v5715_v22, 0 }
 0x184   : > { %v4187_v43 = vpop.f32.mrf.mxu1  ;;  %v5677_v57 = vpack.c.bf16 %v4152_v56, %v4151_v52 }
 0x185   : > { %v655_v59 = vpop.f32.mrf.mxu0  ;;  %v1084_v34 = vsel %vm1052_vm0, %v5723_v28, 0 }
 0x186   : > { %v837_v45 = vpop.f32.mrf.mxu1  ;;  %v5681_v61 = vpack.c.bf16 %v655_v59, %v652_v54  ;;  %v5791_v54 = vld [vmem:[%s387_s16] ss:$0 sm:$0xff] }
 0x187   : > { %v4155_v63 = vpop.f32.mrf.mxu0 }
 0x188   : > { %v4188_v48 = vpop.f32.mrf.mxu1 }
 0x189   : > { %v668_v2 = vpop.f32.mrf.mxu0  ;;  %v5699_v8 = vpack.c.bf16 %v4188_v48, %v4187_v43 }
 0x18a   : > { %v840_v51 = vpop.f32.mrf.mxu1 }
 0x18b   : > { %v4156_v3 = vpop.f32.mrf.mxu0  ;;  %v5709_v16 = vpack.c.bf16 %v840_v51, %v837_v45  ;;  %v1093_v17 = vsel %vm1052_vm0, %v5699_v8, 0  ;;  %v1078_v45 = vsel %vm1052_vm0, %v5665_v37, 0 }
 0x18c   : > { %v4191_v53 = vpop.f32.mrf.mxu1  ;;  %v5695_v4 = vpack.c.bf16 %v4156_v3, %v4155_v63 }
 0x18d   : > { %v671_v5 = vpop.f32.mrf.mxu0  ;;  %v1090_v23 = vsel %vm1052_vm0, %v5709_v16, 0 }
 0x18e   : > { %v853_v55 = vpop.f32.mrf.mxu1  ;;  %v5697_v6 = vpack.c.bf16 %v671_v5, %v668_v2 }
 0x18f   : > { %v4159_v7 = vpop.f32.mrf.mxu0 }
 0x190   : > { %v4192_v58 = vpop.f32.mrf.mxu1 }
 0x191   : > { %v5679_v60 = vpack.c.bf16 %v4192_v58, %v4191_v53  ;;  %v684_v10 = vpop.f32.mrf.mxu0  ;;  %v3909_v53 = vld [vmem:[#allocation6 + $0x8] sm:$0xff]  }
 0x192   : > { %v856_v62 = vpop.f32.mrf.mxu1  ;;  %v3787_v56 = vunpack.c.l.bf16 %v3909_v53  ;;  %v3788_v3 = vunpack.c.h.bf16 %v3909_v53 }
 0x193   : > { %v5683_v0 = vpack.c.bf16 %v856_v62, %v853_v55  ;;  %1541 = vrot.lane.b32.xlu0 %v5679_v60, %s5384_s30  ;;  %4513 = vmatprep.subr.msk.bf16.mxu1 %vm1052_vm0, %v5679_v60  ;;  %v1099_v1 = vsel %vm1052_vm0, %v5679_v60, 0  ;;  %v4160_v11 = vpop.f32.mrf.mxu0  ;;  %v3782_v55 = vld [vmem:[#allocation6] sm:$0xff]  }
 0x194   : > { %4226 = vmatpush3.bf16.xpose.msra.mxu1 %v1099_v1  ;;  %v5705_v12 = vpack.c.bf16 %v4160_v11, %v4159_v7  ;;  %v3783_v62 = vunpack.c.l.bf16 %v3782_v55  ;;  %v3911_v7 = vld [vmem:[#allocation6 + $0x18] sm:$0xff]   ;;  %v3784_v11 = vunpack.c.h.bf16 %v3782_v55 }
 0x195   : > { %1539 = vrot.lane.b32.xlu1 %v5683_v0, %s5384_s30  ;;  %4514 = vmatprep.subr.msk.bf16.mxu1 %vm1052_vm0, %v5683_v0  ;;  %v1096_v9 = vsel %vm1052_vm0, %v5683_v0, 0  ;;  %v687_v13 = vpop.f32.mrf.mxu0 }
 0x196   : > { %v5707_v14 = vpack.c.bf16 %v687_v13, %v684_v10 }
 0x197   : > { %v4211_v15 = vpop.f32.mrf.mxu0 }
 0x199   : > { %v974_v18 = vpop.f32.mrf.mxu0 }
 0x19b   : > { %v4212_v19 = vpop.f32.mrf.mxu0 }
 0x19c   : > { %4228 = vmatpush3.bf16.xpose.msra.mxu1 %v1096_v9  ;;  %v5761_v49 = vpack.c.bf16 %v4212_v19, %v4211_v15 }
 0x19d   : > { %4515 = vmatprep.subr.msk.bf16.mxu1 %vm1052_vm0, %v5699_v8  ;;  %v977_v20 = vpop.f32.mrf.mxu0 }
 0x19e   : > { %v5769_v51 = vpack.c.bf16 %v977_v20, %v974_v18  ;;  %v3795_v18 = vunpack.c.l.bf16 %v3911_v7 }
 0x19f   : > { %v4215_v21 = vpop.f32.mrf.mxu0 }
 0x1a1   : > { %v990_v24 = vpop.f32.mrf.mxu0 }
 0x1a3   : > { %v4216_v25 = vpop.f32.mrf.mxu0 }
 0x1a4   : > { %4230 = vmatpush3.bf16.xpose.msra.mxu1 %v1093_v17  ;;  %v5753_v46 = vpack.c.bf16 %v4216_v25, %v4215_v21 }
 0x1a5   : > { %4516 = vmatprep.subr.msk.bf16.mxu1 %vm1052_vm0, %v5709_v16  ;;  %v993_v26 = vpop.f32.mrf.mxu0 }
 0x1a6   : > { %v5757_v48 = vpack.c.bf16 %v993_v26, %v990_v24  ;;  %v3910_v24 = vld [vmem:[#allocation6 + $0x10] sm:$0xff]   ;;  %v3796_v26 = vunpack.c.h.bf16 %v3911_v7 }
 0x1a7   : > { %v4219_v27 = vpop.f32.mrf.mxu0 }
 0x1a9   : > { %v1006_v30 = vpop.f32.mrf.mxu0 }
 0x1ab   : > { %v4220_v31 = vpop.f32.mrf.mxu0 }
 0x1ac   : > { %4232 = vmatpush3.bf16.xpose.msra.mxu1 %v1090_v23  ;;  %v5741_v43 = vpack.c.bf16 %v4220_v31, %v4219_v27 }
 0x1ad   : > { %4517 = vmatprep.subr.msk.bf16.mxu1 %vm1052_vm0, %v5715_v22  ;;  %v1009_v32 = vpop.f32.mrf.mxu0 }
 0x1ae   : > { %v5747_v44 = vpack.c.bf16 %v1009_v32, %v1006_v30  ;;  %v3791_v32 = vunpack.c.l.bf16 %v3910_v24 }
 0x1af   : > { %v4223_v33 = vpop.f32.mrf.mxu0 }
 0x1b1   : > { %v1022_v36 = vpop.f32.mrf.mxu0 }
 0x1b3   : > { %v4224_v38 = vpop.f32.mrf.mxu0 }
 0x1b4   : > { %4234 = vmatpush3.bf16.xpose.msra.mxu1 %v1087_v29  ;;  %v5733_v39 = vpack.c.bf16 %v4224_v38, %v4223_v33  ;;  %v3913_v29 = vld [vmem:[#allocation6 + $0x28] sm:$0xff]   ;;  %v3792_v38 = vunpack.c.h.bf16 %v3910_v24 }
 0x1b5   : > { %4518 = vmatprep.subr.msk.bf16.mxu1 %vm1052_vm0, %v5723_v28  ;;  %v1025_v40 = vpop.f32.mrf.mxu0 }
 0x1b6   : > { %4257 = vmatprep.subr.bf16.mxu0 %v5733_v39  ;;  %v5736_v41 = vpack.c.bf16 %v1025_v40, %v1022_v36  ;;  %v3803_v40 = vunpack.c.l.bf16 %v3913_v29 }
 0x1b7   : > { %4258 = vmatpush3.bf16.msra.mxu0 %v5733_v39 }
 0x1b8   : > { %4259 = vmatprep.subr.bf16.mxu0 %v5736_v41 }
 0x1bb   : > { %4260 = vmatpush3.bf16.msra.mxu0 %v5736_v41 }
 0x1bc   : > { %4236 = vmatpush3.bf16.xpose.msra.mxu1 %v1084_v34  ;;  %4261 = vmatprep.subr.bf16.mxu0 %v5741_v43 }
 0x1bd   : > { %4519 = vmatprep.subr.msk.bf16.mxu1 %vm1052_vm0, %v5663_v35 }
 0x1bf   : > { %4262 = vmatpush3.bf16.msra.mxu0 %v5741_v43 }
 0x1c0   : > { %4263 = vmatprep.subr.bf16.mxu0 %v5747_v44 }
 0x1c3   : > { %4264 = vmatpush3.bf16.msra.mxu0 %v5747_v44 }
 0x1c4   : > { %4238 = vmatpush3.bf16.xpose.msra.mxu1 %v1081_v42  ;;  %4265 = vmatprep.subr.bf16.mxu0 %v5753_v46 }
 0x1c5   : > { %4520 = vmatprep.subr.msk.bf16.mxu1 %vm1052_vm0, %v5665_v37 }
 0x1c7   : > { %4266 = vmatpush3.bf16.msra.mxu0 %v5753_v46 }
 0x1c8   : > { %4267 = vmatprep.subr.bf16.mxu0 %v5757_v48 }
 0x1cb   : > { %4268 = vmatpush3.bf16.msra.mxu0 %v5757_v48 }
 0x1cc   : > { %4240 = vmatpush3.bf16.xpose.msra.mxu1 %v1078_v45  ;;  %4269 = vmatprep.subr.bf16.mxu0 %v5761_v49 }
 0x1cf   : > { %4270 = vmatpush3.bf16.msra.mxu0 %v5761_v49 }
 0x1d0   : > { %4271 = vmatprep.subr.bf16.mxu0 %v5769_v51 }
 0x1d3   : > { %4242 = vmatmul.mubr.msk.bf16.vlgmr.msra.gmra.mxu1 %vm1052_vm0, %v5671_v47  ;;  %4272 = vmatpush3.bf16.msra.mxu0 %v5769_v51 }
 0x1d4   : > { %4245 = vmatprep.mubr.msk.bf16.mxu1 %vm1052_vm0, %v5681_v61 }
 0x1db   : > { %4246 = vmatmul.mubr.msk.bf16.gmra.mxu1 %vm1052_vm0, %v5677_v57 }
 0x1dc   : > { %4249 = vmatprep.mubr.msk.bf16.mxu1 %vm1052_vm0, %v5697_v6 }
 0x1e3   : > { %4250 = vmatmul.mubr.msk.bf16.gmra.mxu1 %vm1052_vm0, %v5695_v4 }
 0x1e4   : > { %4253 = vmatprep.mubr.msk.bf16.mxu1 %vm1052_vm0, %v5707_v14 }
 0x1eb   : > { %4254 = vmatmul.mubr.msk.bf16.gmra.mxu1 %vm1052_vm0, %v5705_v12 }
 0x205   : > { %v5785_v52 = vpop.permute.xlu0 %1541 }
 0x206   : > { %4521 = vmatprep.subr.msk.bf16.mxu0 %vm1052_vm0, %v5785_v52 }
 0x293   : > { %v4243_v58 = vpop.f32.mrf.mxu1 }
 0x294   : > { %v1144_v59 = vadd.f32 %v4243_v58, %v5791_v54 }
 0x295   : > { %v1135_v63 = vpop.f32.mrf.mxu1 }
 0x296   : > { %v1136_v1 = vadd.f32 %v5791_v54, %v1135_v63  ;;  %v5795_v2 = vadd.f32 %v3787_v56, %v1144_v59  ;;  %v3912_v56 = vld [vmem:[#allocation6 + $0x20] sm:$0xff]  }
 0x297   : > { %v4244_v5 = vpop.f32.mrf.mxu1  ;;  %v3799_v7 = vunpack.c.l.bf16 %v3912_v56 }
 0x298   : > { %v1147_v9 = vadd.f32 %v4244_v5, %v5791_v54  ;;  %1250 = vmax.xlane.f32.xlu1 %v5795_v2  ;;  %v5799_v10 = vadd.f32 %v3783_v62, %v1136_v1  ;;  %v3804_v62 = vunpack.c.h.bf16 %v3913_v29  ;;  %v3915_v1 = vld [vmem:[#allocation6 + $0x38] sm:$0xff]  }
 0x299   : > { %v1138_v13 = vpop.f32.mrf.mxu1 }
 0x29a   : > { %v1139_v15 = vadd.f32 %v5791_v54, %v1138_v13  ;;  %1246 = vmax.xlane.f32.xlu0 %v5799_v10  ;;  %v5803_v17 = vadd.f32 %v3788_v3, %v1147_v9 }
 0x29b   : > { %v4247_v19 = vpop.f32.mrf.mxu1 }
 0x29c   : > { %v1160_v20 = vadd.f32 %v4247_v19, %v5791_v54  ;;  %1252 = vmax.xlane.f32.xlu1 %v5803_v17  ;;  %v5807_v21 = vadd.f32 %v3784_v11, %v1139_v15  ;;  %v3800_v15 = vunpack.c.h.bf16 %v3912_v56 }
 0x29d   : > { %v1151_v23 = vpop.f32.mrf.mxu1 }
 0x29e   : > { %1248 = vmax.xlane.f32.xlu0 %v5807_v21  ;;  %v5810_v25 = vadd.f32 %v3795_v18, %v1160_v20  ;;  %v1152_v30 = vadd.f32 %v5791_v54, %v1151_v23  ;;  %v3811_v18 = vunpack.c.l.bf16 %v3915_v1  ;;  %v3914_v20 = vld [vmem:[#allocation6 + $0x30] sm:$0xff]  }
 0x29f   : > { %v4248_v27 = vpop.f32.mrf.mxu1 }
 0x2a0   : > { %v1163_v31 = vadd.f32 %v4248_v27, %v5791_v54  ;;  %v5820_v53 = vadd.f32 %v3791_v32, %v1152_v30 }
 0x2a1   : > { %v1154_v33 = vpop.f32.mrf.mxu1 }
 0x2a2   : > { %v1155_v34 = vadd.f32 %v5791_v54, %v1154_v33  ;;  %1258 = vmax.xlane.f32.xlu0 %v5810_v25  ;;  %v5816_v36 = vadd.f32 %v3796_v26, %v1163_v31  ;;  %v3807_v31 = vunpack.c.l.bf16 %v3914_v20 }
 0x2a3   : > { %v4251_v42 = vpop.f32.mrf.mxu1 }
 0x2a4   : > { %v1176_v45 = vadd.f32 %v4251_v42, %v5791_v54  ;;  %1260 = vmax.xlane.f32.xlu1 %v5816_v36  ;;  %v5823_v58 = vadd.f32 %v3792_v38, %v1155_v34  ;;  %v3812_v38 = vunpack.c.h.bf16 %v3915_v1 }
 0x2a5   : > { %v1167_v55 = vpop.f32.mrf.mxu1 }
 0x2a6   : > { %1254 = vmax.xlane.f32.xlu0 %v5820_v53  ;;  %v5825_v59 = vadd.f32 %v3803_v40, %v1176_v45  ;;  %v1168_v3 = vadd.f32 %v5791_v54, %v1167_v55  ;;  %v3808_v55 = vunpack.c.h.bf16 %v3914_v20 }
 0x2a7   : > { %v4252_v63 = vpop.f32.mrf.mxu1 }
 0x2a8   : > { %v1179_v5 = vadd.f32 %v4252_v63, %v5791_v54  ;;  %1256 = vmax.xlane.f32.xlu1 %v5823_v58  ;;  %v5836_v24 = vadd.f32 %v3799_v7, %v1168_v3 }
 0x2a9   : > { %v1170_v9 = vpop.f32.mrf.mxu1 }
 0x2aa   : > { %v1171_v11 = vadd.f32 %v5791_v54, %v1170_v9  ;;  %1266 = vmax.xlane.f32.xlu0 %v5825_v59  ;;  %v5832_v13 = vadd.f32 %v3804_v62, %v1179_v5  ;;  %v5861_v62 = vpop.permute.xlu1 %1539 }
 0x2ab   : > { %v4255_v19 = vpop.f32.mrf.mxu1 }
 0x2ac   : > { %1268 = vmax.xlane.f32.xlu1 %v5832_v13  ;;  %v1192_v23 = vadd.f32 %v4255_v19, %v5791_v54  ;;  %v5839_v27 = vadd.f32 %v3800_v15, %v1171_v11 }
 0x2ad   : > { %v1183_v26 = vpop.f32.mrf.mxu1 }
 0x2ae   : > { %1262 = vmax.xlane.f32.xlu0 %v5836_v24  ;;  %v1184_v29 = vadd.f32 %v5791_v54, %v1183_v26  ;;  %v5842_v30 = vadd.f32 %v3811_v18, %v1192_v23 }
 0x2af   : > { %v4256_v33 = vpop.f32.mrf.mxu1 }
 0x2b0   : > { %1264 = vmax.xlane.f32.xlu1 %v5839_v27  ;;  %v5846_v32 = vadd.f32 %v3807_v31, %v1184_v29  ;;  %v1195_v34 = vadd.f32 %v4256_v33, %v5791_v54 }
 0x2b1   : > { %v1186_v40 = vpop.f32.mrf.mxu1 }
 0x2b2   : > { %1274 = vmax.xlane.f32.xlu0 %v5842_v30  ;;  %v1187_v42 = vadd.f32 %v5791_v54, %v1186_v40  ;;  %v5855_v45 = vadd.f32 %v3812_v38, %v1195_v34 }
 0x2b4   : > { %v5858_v56 = vadd.f32 %v3808_v55, %v1187_v42 }
 0x2b6   : > { %1270 = vmax.xlane.f32.xlu0 %v5846_v32 }
 0x2c1   : > { %1535 = vrot.lane.b32.xlu1 %v5709_v16, %s5384_s30 }
 0x2cc   : > { %1537 = vrot.lane.b32.xlu0 %v5699_v8, %s5384_s30 }
 0x2e5   : > { %1276 = vmax.xlane.f32.xlu1 %v5855_v45 }
 0x2e9   : > { %1272 = vmax.xlane.f32.xlu1 %v5858_v56 }
 0x321   : > { %v1251_v63 = vpop.xlane.xlu1 %1250 }
 0x322   : > { %v1280_v3 = vsub.f32 %v5795_v2, %v1251_v63 }
 0x323   : > { %v1247_v5 = vpop.xlane.xlu0 %1246 }
 0x324   : > { %v1298_v7 = vmul.f32 1.442695, %v1280_v3  ;;  %v1278_v1 = vsub.f32 %v5799_v10, %v1247_v5 }
 0x325   : > { %v1253_v9 = vpop.xlane.xlu1 %1252 }
 0x326   : > { %4830 = vpow2.f32 %v1298_v7  ;;  %v1294_v11 = vmul.f32 1.442695, %v1278_v1  ;;  %v1281_v15 = vsub.f32 %v5803_v17, %v1253_v9 }
 0x327   : > { %v1249_v18 = vpop.xlane.xlu0 %1248 }
 0x328   : > { %v1300_v19 = vmul.f32 1.442695, %v1281_v15  ;;  %v1279_v20 = vsub.f32 %v5807_v21, %v1249_v18  ;;  %4832 = vpow2.f32 %v1294_v11 }
 0x32a   : > { %4834 = vpow2.f32 %v1300_v19  ;;  %v1296_v23 = vmul.f32 1.442695, %v1279_v20 }
 0x32b   : > { %v1259_v21 = vpop.xlane.xlu0 %1258 }
 0x32c   : > { %4836 = vpow2.f32 %v1296_v23  ;;  %v1284_v38 = vsub.f32 %v5810_v25, %v1259_v21 }
 0x32d   : > { %v1261_v33 = vpop.xlane.xlu1 %1260 }
 0x32e   : > { %v1306_v63 = vmul.f32 1.442695, %v1284_v38  ;;  %v1285_v5 = vsub.f32 %v5816_v36, %v1261_v33 }
 0x32f   : > { %v1255_v29 = vpop.xlane.xlu0 %1254 }
 0x330   : > { %v1282_v42 = vsub.f32 %v5820_v53, %v1255_v29  ;;  %4838 = vpow2.f32 %v1306_v63  ;;  %v1308_v18 = vmul.f32 1.442695, %v1285_v5 }
 0x331   : > { %v1257_v40 = vpop.xlane.xlu1 %1256 }
 0x332   : > { %v1283_v3 = vsub.f32 %v5823_v58, %v1257_v40  ;;  %v1302_v7 = vmul.f32 1.442695, %v1282_v42 }
 0x333   : > { %v5867_v26 = vpop.eup %4830  ;;  %v1267_v31 = vpop.xlane.xlu0 %1266 }
 0x334   : > { %1330 = vadd.xlane.f32.xlu0 %v5867_v26  ;;  %v1304_v9 = vmul.f32 1.442695, %v1283_v3  ;;  %4840 = vpow2.f32 %v1302_v7  ;;  %v1288_v25 = vsub.f32 %v5825_v59, %v1267_v31 }
 0x335   : > { %v5870_v2 = vpop.eup %4832  ;;  %v1269_v1 = vpop.xlane.xlu1 %1268 }
 0x336   : > { %4842 = vpow2.f32 %v1304_v9  ;;  %v1314_v58 = vmul.f32 1.442695, %v1288_v25  ;;  %v1289_v21 = vsub.f32 %v5832_v13, %v1269_v1 }
 0x337   : > { %v5872_v10 = vpop.eup %4834  ;;  %v1263_v34 = vpop.xlane.xlu0 %1262  ;;  %4844 = vpow2.f32 %v1308_v18 }
 0x338   : > { %1332 = vadd.xlane.f32.xlu1 %v5872_v10  ;;  %1326 = vadd.xlane.f32.xlu0 %v5870_v2  ;;  %v1286_v36 = vsub.f32 %v5836_v24, %v1263_v34  ;;  %v1316_v59 = vmul.f32 1.442695, %v1289_v21 }
 0x339   : > { %v5876_v17 = vpop.eup %4836  ;;  %v1265_v20 = vpop.xlane.xlu1 %1264 }
 0x33a   : > { %v1310_v29 = vmul.f32 1.442695, %v1286_v36  ;;  %v1287_v24 = vsub.f32 %v5839_v27, %v1265_v20 }
 0x33b   : > { %v1275_v55 = vpop.xlane.xlu0 %1274 }
 0x33c   : > { %1328 = vadd.xlane.f32.xlu1 %v5876_v17  ;;  %v1292_v11 = vsub.f32 %v5842_v30, %v1275_v55  ;;  %v1312_v55 = vmul.f32 1.442695, %v1287_v24 }
 0x33d   : > { %v5892_v30 = vpop.permute.xlu1 %1535  ;;  %v5894_v33 = vpop.eup %4838 }
 0x33e   : > { %v1322_v19 = vmul.f32 1.442695, %v1292_v11 }
 0x33f   : > { %v1271_v15 = vpop.xlane.xlu0 %1270 }
 0x340   : > { %v1290_v53 = vsub.f32 %v5846_v32, %v1271_v15  ;;  %4846 = vpow2.f32 %v1322_v19 }
 0x341   : > { %4848 = vpow2.f32 %v1314_v58  ;;  %v5897_v31 = vpop.eup %4840 }
 0x342   : > { %v1318_v23 = vmul.f32 1.442695, %v1290_v53 }
 0x343   : > { %v5901_v38 = vpop.eup %4842  ;;  %v1538_v15 = vpop.permute.xlu0 %1537 }
 0x344   : > { %4850 = vpow2.f32 %v1318_v23  ;;  %v5905_v42 = vpop.eup %4844 }
 0x345   : > { %4852 = vpow2.f32 %v1310_v29 }
 0x346   : > { %4854 = vpow2.f32 %v1316_v59 }
 0x34d   : > { %1531 = vrot.lane.b32.xlu1 %v5723_v28, %s5384_s30  ;;  %v5908_v3 = vpop.eup %4846 }
 0x34e   : > { %1533 = vrot.lane.b32.xlu0 %v5715_v22, %s5384_s30  ;;  %v5912_v27 = vpop.eup %4848 }
 0x351   : > { %v5914_v5 = vpop.eup %4850 }
 0x352   : > { %v5918_v7 = vpop.eup %4852 }
 0x36d   : > { %1338 = vadd.xlane.f32.xlu0 %v5894_v33 }
 0x36e   : > { %v1277_v32 = vpop.xlane.xlu1 %1276 }
 0x36f   : > { %v1293_v34 = vsub.f32 %v5855_v45, %v1277_v32 }
 0x371   : > { %v1324_v13 = vmul.f32 1.442695, %v1293_v34  ;;  %1334 = vadd.xlane.f32.xlu1 %v5897_v31  ;;  %1336 = vadd.xlane.f32.xlu0 %v5901_v38 }
 0x372   : > { %v1273_v40 = vpop.xlane.xlu1 %1272 }
 0x373   : > { %4856 = vpow2.f32 %v1324_v13  ;;  %v1291_v63 = vsub.f32 %v5858_v56, %v1273_v40  ;;  %v5921_v56 = vpop.eup %4854  ;;  %v1589_v13 = vsel %vm1052_vm0, %v5785_v52, 0 }
 0x374   : > { %4858 = vpow2.f32 %v1312_v55 }
 0x375   : > { %1340 = vadd.xlane.f32.xlu1 %v5905_v42  ;;  %1354 = vadd.xlane.f32.xlu0 %v5908_v3  ;;  %v1320_v45 = vmul.f32 1.442695, %v1291_v63 }
 0x377   : > { %4860 = vpow2.f32 %v1320_v45 }
 0x379   : > { %1346 = vadd.xlane.f32.xlu1 %v5912_v27  ;;  %1350 = vadd.xlane.f32.xlu0 %v5914_v5 }
 0x37d   : > { %1342 = vadd.xlane.f32.xlu1 %v5918_v7 }
 0x380   : > { %v5923_v1 = vpop.eup %4856 }
 0x381   : > { %1348 = vadd.xlane.f32.xlu1 %v5921_v56  ;;  %1356 = vadd.xlane.f32.xlu0 %v5923_v1  ;;  %v5927_v9 = vpop.eup %4858 }
 0x384   : > { %v5930_v11 = vpop.eup %4860 }
 0x385   : > { %1344 = vadd.xlane.f32.xlu1 %v5927_v9 }
 0x389   : > { %1352 = vadd.xlane.f32.xlu1 %v5930_v11 }
 0x397   : > { %1529 = vrot.lane.b32.xlu0 %v5663_v35, %s5384_s30 }
 0x39a   : > { %1527 = vrot.lane.b32.xlu1 %v5665_v37, %s5384_s30 }
 0x39b   : > { %1503 = vrot.lane.b32.xlu0 %v5673_v50, %s5384_s30 }
 0x39e   : > { %1505 = vrot.lane.b32.xlu1 %v5671_v47, %s5384_s30 }
 0x39f   : > { %1507 = vrot.lane.b32.xlu0 %v5681_v61, %s5384_s30 }
 0x3a2   : > { %1509 = vrot.lane.b32.xlu1 %v5677_v57, %s5384_s30 }
 0x3a3   : > { %1511 = vrot.lane.b32.xlu0 %v5697_v6, %s5384_s30 }
 0x3a6   : > { %1513 = vrot.lane.b32.xlu1 %v5695_v4, %s5384_s30 }
 0x3a7   : > { %1515 = vrot.lane.b32.xlu0 %v5707_v14, %s5384_s30 }
 0x3aa   : > { %1517 = vrot.lane.b32.xlu1 %v5705_v12, %s5384_s30 }
 0x3ab   : > { %1911 = vrot.lane.b32.xlu0 %v5733_v39, %s5384_s30 }
 0x3ae   : > { %1909 = vrot.lane.b32.xlu1 %v5736_v41, %s5384_s30 }
 0x3af   : > { %1907 = vrot.lane.b32.xlu0 %v5741_v43, %s5384_s30 }
 0x3b2   : > { %1901 = vrot.lane.b32.xlu1 %v5757_v48, %s5384_s30 }
 0x3b3   : > { %1905 = vrot.lane.b32.xlu0 %v5747_v44, %s5384_s30 }
 0x3b6   : > { %1897 = vrot.lane.b32.xlu1 %v5769_v51, %s5384_s30 }
 0x3b7   : > { %1903 = vrot.lane.b32.xlu0 %v5753_v46, %s5384_s30 }
 0x3bd   : > { %v1331_v18 = vpop.xlane.xlu0 %1330 }
 0x3c1   : > { %v1333_v25 = vpop.xlane.xlu1 %1332  ;;  %v1327_v19 = vpop.xlane.xlu0 %1326 }
 0x3c2   : > { %4862 = vrcp.f32 %v1333_v25 }
 0x3c3   : > { %4864 = vrcp.f32 %v1327_v19 }
 0x3c4   : > { %4866 = vrcp.f32 %v1331_v18 }
 0x3c5   : > { %v1329_v53 = vpop.xlane.xlu1 %1328  ;;  %v1534_v52 = vpop.permute.xlu0 %1533 }
 0x3c6   : > { %4868 = vrcp.f32 %v1329_v53 }
 0x3cf   : > { %v4863_v20 = vpop.eup %4862 }
 0x3d0   : > { %v4865_v58 = vpop.eup %4864  ;;  %v1377_v21 = vmul.f32 %v4863_v20, %v5872_v10  ;;  %v1586_v10 = vsel %vm1052_vm0, %v5861_v62, 0 }
 0x3d1   : > { %v4867_v36 = vpop.eup %4866  ;;  %v1374_v29 = vmul.f32 %v4865_v58, %v5870_v2  ;;  %v1583_v2 = vsel %vm1052_vm0, %v1538_v15, 0 }
 0x3d2   : > { %v1376_v32 = vmul.f32 %v4867_v36, %v5867_v26  ;;  %v1580_v26 = vsel %vm1052_vm0, %v5892_v30, 0 }
 0x3d3   : > { %v4869_v23 = vpop.eup %4868 }
 0x3d4   : > { %v1375_v59 = vmul.f32 %v4869_v23, %v5876_v17  ;;  %v1391_v34 = vpack.c.bf16 %v1377_v21, %v1376_v32  ;;  %v1532_v17 = vpop.permute.xlu1 %1531 }
 0x3d6   : > { %v1390_v24 = vpack.c.bf16 %v1375_v59, %v1374_v29 }
 0x3d8   : > { %4273 = vmatprep.mubr.bf16.mxu0 %v1390_v24 }
 0x3d9   : > { %4274 = vmatmul.mubr.bf16.vlgmr.msra.gmra.mxu0 %v1391_v34 }
 0x3da   : > { %4290 = vmatpush3.bf16.xpose.msra.mxu0 %v1589_v13 }
 0x3db   : > { %4522 = vmatprep.subr.msk.bf16.mxu0 %vm1052_vm0, %v5861_v62  ;;  %v1577_v62 = vsel %vm1052_vm0, %v1534_v52, 0 }
 0x3e2   : > { %4292 = vmatpush3.bf16.xpose.msra.mxu0 %v1586_v10 }
 0x3e3   : > { %4523 = vmatprep.subr.msk.bf16.mxu0 %vm1052_vm0, %v1538_v15 }
 0x3ea   : > { %4294 = vmatpush3.bf16.xpose.msra.mxu0 %v1583_v2 }
 0x3eb   : > { %4524 = vmatprep.subr.msk.bf16.mxu0 %vm1052_vm0, %v5892_v30  ;;  %v1574_v30 = vsel %vm1052_vm0, %v1532_v17, 0 }
 0x3f2   : > { %4296 = vmatpush3.bf16.xpose.msra.mxu0 %v1580_v26 }
 0x3f3   : > { %4525 = vmatprep.subr.msk.bf16.mxu0 %vm1052_vm0, %v1534_v52 }
 0x3f6   : > { %v1339_v40 = vpop.xlane.xlu0 %1338 }
 0x3fa   : > { %4298 = vmatpush3.bf16.xpose.msra.mxu0 %v1577_v62  ;;  %v1335_v55 = vpop.xlane.xlu1 %1334  ;;  %v1337_v63 = vpop.xlane.xlu0 %1336 }
 0x3fb   : > { %4870 = vrcp.f32 %v1335_v55  ;;  %4526 = vmatprep.subr.msk.bf16.mxu0 %vm1052_vm0, %v1532_v17 }
 0x3fc   : > { %4872 = vrcp.f32 %v1337_v63 }
 0x3fd   : > { %4874 = vrcp.f32 %v1339_v40 }
 0x3fe   : > { %v1341_v45 = vpop.xlane.xlu1 %1340  ;;  %v1355_v15 = vpop.xlane.xlu0 %1354 }
 0x3ff   : > { %4876 = vrcp.f32 %v1341_v45 }
 0x402   : > { %4300 = vmatpush3.bf16.xpose.msra.mxu0 %v1574_v30  ;;  %v1347_v18 = vpop.xlane.xlu1 %1346  ;;  %v1351_v25 = vpop.xlane.xlu0 %1350 }
 0x406   : > { %v1343_v19 = vpop.xlane.xlu1 %1342 }
 0x408   : > { %v4871_v53 = vpop.eup %4870 }
 0x409   : > { %v4873_v20 = vpop.eup %4872  ;;  %v1378_v58 = vmul.f32 %v4871_v53, %v5897_v31 }
 0x40a   : > { %v4875_v36 = vpop.eup %4874  ;;  %v1349_v23 = vpop.xlane.xlu1 %1348  ;;  %v1379_v29 = vmul.f32 %v4873_v20, %v5901_v38 }
 0x40b   : > { %v1357_v21 = vpop.xlane.xlu0 %1356  ;;  %4878 = vrcp.f32 %v1349_v23  ;;  %v1380_v24 = vmul.f32 %v4875_v36, %v5894_v33 }
 0x40c   : > { %v4877_v59 = vpop.eup %4876  ;;  %v1392_v32 = vpack.c.bf16 %v1379_v29, %v1378_v58  ;;  %4880 = vrcp.f32 %v1343_v19 }
 0x40d   : > { %v1381_v34 = vmul.f32 %v4877_v59, %v5905_v42  ;;  %4882 = vrcp.f32 %v1347_v18 }
 0x40e   : > { %4277 = vmatprep.mubr.bf16.mxu0 %v1392_v32  ;;  %v1345_v13 = vpop.xlane.xlu1 %1344 }
 0x40f   : > { %v1530_v10 = vpop.permute.xlu0 %1529  ;;  %4884 = vrcp.f32 %v1345_v13  ;;  %v1393_v2 = vpack.c.bf16 %v1381_v34, %v1380_v24 }
 0x410   : > { %4527 = vmatprep.subr.msk.bf16.mxu0 %vm1052_vm0, %v1530_v10  ;;  %v1571_v31 = vsel %vm1052_vm0, %v1530_v10, 0  ;;  %4886 = vrcp.f32 %v1351_v25 }
 0x411   : > { %4302 = vmatpush3.bf16.xpose.msra.mxu0 %v1571_v31 }
 0x412   : > { %4278 = vmatmul.mubr.bf16.gmra.mxu0 %v1393_v2  ;;  %v1353_v38 = vpop.xlane.xlu1 %1352 }
 0x413   : > { %v1504_v26 = vpop.permute.xlu0 %1503  ;;  %4888 = vrcp.f32 %v1353_v38 }
 0x414   : > { %4890 = vrcp.f32 %v1357_v21 }
 0x415   : > { %4892 = vrcp.f32 %v1355_v15 }
 0x416   : > { %v1528_v33 = vpop.permute.xlu1 %1527 }
 0x417   : > { %v1508_v42 = vpop.permute.xlu0 %1507  ;;  %4528 = vmatprep.subr.msk.bf16.mxu0 %vm1052_vm0, %v1528_v33  ;;  %v1568_v52 = vsel %vm1052_vm0, %v1528_v33, 0 }
 0x418   : > { %v4879_v17 = vpop.eup %4878 }
 0x419   : > { %4304 = vmatpush3.bf16.xpose.msra.mxu0 %v1568_v52  ;;  %v4881_v40 = vpop.eup %4880  ;;  %v1385_v30 = vmul.f32 %v4879_v17, %v5921_v56 }
 0x41a   : > { %v1506_v62 = vpop.permute.xlu1 %1505  ;;  %v4883_v63 = vpop.eup %4882  ;;  %v1382_v18 = vmul.f32 %v4881_v40, %v5918_v7 }
 0x41b   : > { %v1512_v55 = vpop.permute.xlu0 %1511  ;;  %v1384_v20 = vmul.f32 %v4883_v63, %v5912_v27 }
 0x41c   : > { %v4885_v45 = vpop.eup %4884 }
 0x41d   : > { %v1383_v25 = vmul.f32 %v4885_v45, %v5927_v9  ;;  %v4887_v15 = vpop.eup %4886  ;;  %v1395_v23 = vpack.c.bf16 %v1385_v30, %v1384_v20  ;;  %v3814_v20 = vld [vmem:[#allocation6 + $0x40] sm:$0xff]  }
 0x41e   : > { %v1510_v19 = vpop.permute.xlu1 %1509  ;;  %v1386_v29 = vmul.f32 %v4887_v15, %v5914_v5 }
 0x41f   : > { %v1516_v53 = vpop.permute.xlu0 %1515  ;;  %v1394_v58 = vpack.c.bf16 %v1383_v25, %v1382_v18  ;;  %v3916_v25 = vld [vmem:[#allocation6 + $0x48] sm:$0xff]  }
 0x420   : > { %v4889_v36 = vpop.eup %4888 }
 0x421   : > { %v4891_v21 = vpop.eup %4890  ;;  %4281 = vmatprep.mubr.bf16.mxu0 %v1394_v58  ;;  %v1387_v59 = vmul.f32 %v4889_v36, %v5930_v11 }
 0x422   : > { %v1514_v32 = vpop.permute.xlu1 %1513  ;;  %4282 = vmatmul.mubr.bf16.gmra.mxu0 %v1395_v23  ;;  %v4893_v7 = vpop.eup %4892  ;;  %v1389_v9 = vmul.f32 %v4891_v21, %v5923_v1 }
 0x423   : > { %v1912_v56 = vpop.permute.xlu0 %1911  ;;  %v1396_v24 = vpack.c.bf16 %v1387_v59, %v1386_v29  ;;  %v1388_v34 = vmul.f32 %v4893_v7, %v5908_v3  ;;  %v3815_v29 = vunpack.c.l.bf16 %v3814_v20 }
 0x424   : > { %4321 = vmatprep.subr.bf16.mxu1 %v1912_v56 }
 0x425   : > { %4322 = vmatpush3.bf16.msra.mxu1 %v1912_v56  ;;  %4285 = vmatprep.mubr.bf16.mxu0 %v1396_v24  ;;  %v1397_v10 = vpack.c.bf16 %v1389_v9, %v1388_v34 }
 0x426   : > { %v1518_v27 = vpop.permute.xlu1 %1517 }
 0x427   : > { %v1908_v13 = vpop.permute.xlu0 %1907 }
 0x42a   : > { %v1910_v31 = vpop.permute.xlu1 %1909  ;;  %4286 = vmatmul.mubr.bf16.gmra.mxu0 %v1397_v10 }
 0x42b   : > { %4305 = vmatprep.mubr.msk.bf16.mxu0 %vm1052_vm0, %v1504_v26  ;;  %4323 = vmatprep.subr.bf16.mxu1 %v1910_v31  ;;  %v1906_v5 = vpop.permute.xlu0 %1905 }
 0x42c   : > { %4324 = vmatpush3.bf16.msra.mxu1 %v1910_v31  ;;  %v3918_v31 = vld [vmem:[#allocation6 + $0x58] sm:$0xff]  }
 0x42d   : > { %4325 = vmatprep.subr.bf16.mxu1 %v1908_v13 }
 0x42e   : > { %v1902_v3 = vpop.permute.xlu1 %1901 }
 0x42f   : > { %v1904_v1 = vpop.permute.xlu0 %1903 }
 0x430   : > { %4326 = vmatpush3.bf16.msra.mxu1 %v1908_v13 }
 0x431   : > { %4327 = vmatprep.subr.bf16.mxu1 %v1906_v5 }
 0x432   : > { %4306 = vmatmul.mubr.msk.bf16.vlgmr.msra.gmra.mxu0 %vm1052_vm0, %v1506_v62 }
 0x433   : > { %4309 = vmatprep.mubr.msk.bf16.mxu0 %vm1052_vm0, %v1508_v42 }
 0x434   : > { %4328 = vmatpush3.bf16.msra.mxu1 %v1906_v5 }
 0x435   : > { %4329 = vmatprep.subr.bf16.mxu1 %v1904_v1 }
 0x438   : > { %4330 = vmatpush3.bf16.msra.mxu1 %v1904_v1  ;;  %v3828_v1 = vunpack.c.h.bf16 %v3918_v31 }
 0x439   : > { %4331 = vmatprep.subr.bf16.mxu1 %v1902_v3 }
 0x43a   : > { %4310 = vmatmul.mubr.msk.bf16.gmra.mxu0 %vm1052_vm0, %v1510_v19  ;;  %v3819_v19 = vunpack.c.l.bf16 %v3916_v25 }
 0x43b   : > { %4313 = vmatprep.mubr.msk.bf16.mxu0 %vm1052_vm0, %v1512_v55 }
 0x43c   : > { %4332 = vmatpush3.bf16.msra.mxu1 %v1902_v3 }
 0x442   : > { %4314 = vmatmul.mubr.msk.bf16.gmra.mxu0 %vm1052_vm0, %v1514_v32  ;;  %v3816_v32 = vunpack.c.h.bf16 %v3814_v20  ;;  %v3917_v20 = vld [vmem:[#allocation6 + $0x50] sm:$0xff]  }
 0x443   : > { %4317 = vmatprep.mubr.msk.bf16.mxu0 %vm1052_vm0, %v1516_v53 }
 0x44a   : > { %4318 = vmatmul.mubr.msk.bf16.gmra.mxu0 %vm1052_vm0, %v1518_v27  ;;  %v3820_v27 = vunpack.c.h.bf16 %v3916_v25 }
 0x499   : > { %v6011_v11 = vpop.f32.mrf.mxu0 }
 0x49a   : > { %7010 = vst [vmem:[#allocation28_spill] sm:$0xff] %v6011_v11 }
 0x49b   : > { %v6013_v2 = vpop.f32.mrf.mxu0 }
 0x49c   : > { %7011 = vst [vmem:[#allocation29_spill] sm:$0xff] %v6013_v2  ;;  %v3926_v2 = vld [vmem:[#allocation6 + $0xa0] sm:$0xff]  }
 0x49d   : > { %v6015_v38 = vpop.f32.mrf.mxu0 }
 0x49e   : > { %7012 = vst [vmem:[#allocation30_spill] sm:$0xff] %v6015_v38 }
 0x49f   : > { %v6017_v26 = vpop.f32.mrf.mxu0 }
 0x4a0   : > { %7013 = vst [vmem:[#allocation31_spill] sm:$0xff] %v6017_v26 }
 0x4d2   : > { %v6019_v33 = vpop.f32.mrf.mxu0 }
 0x4d3   : > { %7014 = vst [vmem:[#allocation32_spill] sm:$0xff] %v6019_v33 }
 0x4d4   : > { %v6021_v42 = vpop.f32.mrf.mxu0 }
 0x4d5   : > { %7015 = vst [vmem:[#allocation33_spill] sm:$0xff] %v6021_v42 }
 0x4d6   : > { %v6023_v52 = vpop.f32.mrf.mxu0 }
 0x4d7   : > { %7016 = vst [vmem:[#allocation34_spill] sm:$0xff] %v6023_v52 }
 0x4d8   : > { %v6025_v17 = vpop.f32.mrf.mxu0 }
 0x4d9   : > { %7017 = vst [vmem:[#allocation35_spill] sm:$0xff] %v6025_v17 }
 0x4e2   : > { %v6027_v40 = vpop.f32.mrf.mxu0 }
 0x4e3   : > { %7018 = vst [vmem:[#allocation36_spill] sm:$0xff] %v6027_v40 }
 0x4e4   : > { %v6029_v62 = vpop.f32.mrf.mxu0 }
 0x4e5   : > { %7019 = vst [vmem:[#allocation37_spill] sm:$0xff] %v6029_v62 }
 0x4e6   : > { %v6031_v55 = vpop.f32.mrf.mxu0 }
 0x4e7   : > { %7020 = vst [vmem:[#allocation38_spill] sm:$0xff] %v6031_v55 }
 0x4e8   : > { %v6033_v63 = vpop.f32.mrf.mxu0 }
 0x4e9   : > { %7021 = vst [vmem:[#allocation39_spill] sm:$0xff] %v6033_v63 }
 0x4ea   : > { %v6035_v45 = vpop.f32.mrf.mxu0 }
 0x4eb   : > { %7022 = vst [vmem:[#allocation40_spill] sm:$0xff] %v6035_v45 }
 0x4ec   : > { %v6037_v30 = vpop.f32.mrf.mxu0 }
 0x4ed   : > { %7023 = vst [vmem:[#allocation41_spill] sm:$0xff] %v6037_v30 }
 0x4ee   : > { %v6039_v18 = vpop.f32.mrf.mxu0 }
 0x4ef   : > { %7024 = vst [vmem:[#allocation42_spill] sm:$0xff] %v6039_v18 }
 0x4f0   : > { %v6041_v15 = vpop.f32.mrf.mxu0 }
 0x4f1   : > { %7025 = vst [vmem:[#allocation43_spill] sm:$0xff] %v6041_v15 }
 0x4f2   : > { %v4307_v53 = vpop.f32.mrf.mxu0 }
 0x4f3   : > { %v1634_v58 = vadd.f32 %v4307_v53, %v5791_v54 }
 0x4f4   : > { %v1625_v36 = vpop.f32.mrf.mxu0 }
 0x4f5   : > { %v1626_v23 = vadd.f32 %v5791_v54, %v1625_v36  ;;  %v6045_v21 = vadd.f32 %v3819_v19, %v1634_v58  ;;  %v3824_v36 = vunpack.c.h.bf16 %v3917_v20 }
 0x4f6   : > { %v4308_v59 = vpop.f32.mrf.mxu0 }
 0x4f7   : > { %1741 = vmax.xlane.f32.xlu0 %v6045_v21  ;;  %v1637_v7 = vadd.f32 %v4308_v59, %v5791_v54  ;;  %v6050_v9 = vadd.f32 %v3815_v29, %v1626_v23  ;;  %v3920_v59 = vld [vmem:[#allocation6 + $0x68] sm:$0xff]  }
 0x4f8   : > { %v1628_v56 = vpop.f32.mrf.mxu0 }
 0x4f9   : > { %v1629_v24 = vadd.f32 %v5791_v54, %v1628_v56  ;;  %v6056_v5 = vadd.f32 %v3820_v27, %v1637_v7  ;;  %v3836_v56 = vunpack.c.h.bf16 %v3920_v59 }
 0x4fa   : > { %v4311_v34 = vpop.f32.mrf.mxu0 }
 0x4fb   : > { %1737 = vmax.xlane.f32.xlu0 %v6050_v9  ;;  %v6053_v13 = vadd.f32 %v3816_v32, %v1629_v24 }
 0x4fc   : > { %v1641_v10 = vpop.f32.mrf.mxu0 }
 0x4fd   : > { %1739 = vmax.xlane.f32.xlu1 %v6053_v13 }
 0x4fe   : > { %v4312_v3 = vpop.f32.mrf.mxu0 }
 0x4ff   : > { %v1653_v19 = vadd.f32 %v4312_v3, %v5791_v54  ;;  %1743 = vmax.xlane.f32.xlu0 %v6056_v5  ;;  %v3919_v3 = vld [vmem:[#allocation6 + $0x60] sm:$0xff]  }
 0x500   : > { %v1644_v53 = vpop.f32.mrf.mxu0 }
 0x501   : > { %v1645_v25 = vadd.f32 %v5791_v54, %v1644_v53  ;;  %v6061_v58 = vadd.f32 %v3828_v1, %v1653_v19  ;;  %v3832_v19 = vunpack.c.h.bf16 %v3919_v3 }
 0x502   : > { %v4315_v23 = vpop.f32.mrf.mxu0 }
 0x503   : > { %1751 = vmax.xlane.f32.xlu1 %v6061_v58  ;;  %v6064_v32 = vadd.f32 %v3824_v36, %v1645_v25  ;;  %v1650_v25 = vadd.f32 %v4311_v34, %v5791_v54  ;;  %v3827_v36 = vunpack.c.l.bf16 %v3918_v31  ;;  %v3831_v34 = vunpack.c.l.bf16 %v3919_v3 }
 0x504   : > { %v1657_v29 = vpop.f32.mrf.mxu0 }
 0x505   : > { %v1658_v45 = vadd.f32 %v5791_v54, %v1657_v29 }
 0x506   : > { %v4316_v7 = vpop.f32.mrf.mxu0 }
 0x507   : > { %v1669_v24 = vadd.f32 %v4316_v7, %v5791_v54  ;;  %1747 = vmax.xlane.f32.xlu1 %v6064_v32  ;;  %v6083_v7 = vadd.f32 %v3827_v36, %v1650_v25  ;;  %v6095_v25 = vadd.f32 %v3831_v34, %v1658_v45  ;;  %v3921_v36 = vld [vmem:[#allocation6 + $0x70] sm:$0xff]  }
 0x508   : > { %v1660_v27 = vpop.f32.mrf.mxu0  ;;  %v3840_v62 = vunpack.c.h.bf16 %v3921_v36 }
 0x509   : > { %v1661_v53 = vadd.f32 %v5791_v54, %v1660_v27  ;;  %v6069_v1 = vadd.f32 %v3836_v56, %v1669_v24  ;;  %v1642_v56 = vadd.f32 %v5791_v54, %v1641_v10  ;;  %v3823_v24 = vunpack.c.l.bf16 %v3917_v20  ;;  %v3922_v10 = vld [vmem:[#allocation6 + $0x78] sm:$0xff]  }
 0x50a   : > { %v1666_v27 = vadd.f32 %v4315_v23, %v5791_v54  ;;  %v4319_v15 = vpop.f32.mrf.mxu0  ;;  %v3843_v23 = vunpack.c.l.bf16 %v3922_v10  ;;  %v3844_v3 = vunpack.c.h.bf16 %v3922_v10 }
 0x50b   : > { %1759 = vmax.xlane.f32.xlu1 %v6069_v1  ;;  %v6072_v30 = vadd.f32 %v3832_v19, %v1661_v53  ;;  %v6087_v53 = vadd.f32 %v3823_v24, %v1642_v56  ;;  %v3835_v19 = vunpack.c.l.bf16 %v3920_v59  ;;  %v1682_v20 = vadd.f32 %v4319_v15, %v5791_v54 }
 0x50c   : > { %v1673_v31 = vpop.f32.mrf.mxu0  ;;  %v3839_v59 = vunpack.c.l.bf16 %v3921_v36 }
 0x50d   : > { %v6091_v18 = vadd.f32 %v3835_v19, %v1666_v27  ;;  %v1674_v24 = vadd.f32 %v5791_v54, %v1673_v31  ;;  %v6100_v27 = vadd.f32 %v3843_v23, %v1682_v20  ;;  %v1898_v20 = vpop.permute.xlu1 %1897 }
 0x50e   : > { %v4320_v56 = vpop.f32.mrf.mxu0 }
 0x50f   : > { %1755 = vmax.xlane.f32.xlu1 %v6072_v30  ;;  %v1685_v29 = vadd.f32 %v4320_v56, %v5791_v54  ;;  %v6106_v34 = vadd.f32 %v3839_v59, %v1674_v24 }
 0x510   : > { %v1676_v19 = vpop.f32.mrf.mxu0 }
 0x511   : > { %v1677_v15 = vadd.f32 %v5791_v54, %v1676_v19  ;;  %v6104_v45 = vadd.f32 %v3844_v3, %v1685_v29 }
 0x513   : > { %v6110_v31 = vadd.f32 %v3840_v62, %v1677_v15 }
 0x515   : > { %1899 = vrot.lane.b32.xlu0 %v5761_v49, %s5384_s30 }
 0x520   : > { %2046 = vrot.lane.b32.xlu1 %v5683_v0, %s5385_s8 }
 0x524   : > { %2042 = vrot.lane.b32.xlu1 %v5709_v16, %s5385_s8 }
 0x534   : > { %1749 = vmax.xlane.f32.xlu0 %v6083_v7 }
 0x538   : > { %1745 = vmax.xlane.f32.xlu0 %v6087_v53 }
 0x53c   : > { %1757 = vmax.xlane.f32.xlu0 %v6091_v18 }
 0x540   : > { %1753 = vmax.xlane.f32.xlu0 %v6095_v25 }
 0x544   : > { %1765 = vmax.xlane.f32.xlu0 %v6100_v27 }
 0x548   : > { %1767 = vmax.xlane.f32.xlu1 %v6104_v45  ;;  %1761 = vmax.xlane.f32.xlu0 %v6106_v34 }
 0x54c   : > { %1763 = vmax.xlane.f32.xlu1 %v6110_v31 }
 0x55e   : > { %2048 = vrot.lane.b32.xlu0 %v5679_v60, %s5385_s8 }
 0x562   : > { %2044 = vrot.lane.b32.xlu0 %v5699_v8, %s5385_s8 }
 0x566   : > { %2040 = vrot.lane.b32.xlu0 %v5715_v22, %s5385_s8 }
 0x580   : > { %v1742_v54 = vpop.xlane.xlu0 %1741 }
 0x581   : > { %v1771_v10 = vsub.f32 %v6045_v21, %v1742_v54 }
 0x583   : > { %v1789_v23 = vmul.f32 1.442695, %v1771_v10 }
 0x584   : > { %v1738_v36 = vpop.xlane.xlu0 %1737 }
 0x585   : > { %4894 = vpow2.f32 %v1789_v23  ;;  %v1769_v62 = vsub.f32 %v6050_v9, %v1738_v36 }
 0x586   : > { %v1740_v56 = vpop.xlane.xlu1 %1739 }
 0x587   : > { %v1785_v59 = vmul.f32 1.442695, %v1769_v62  ;;  %v1770_v29 = vsub.f32 %v6053_v13, %v1740_v56 }
 0x588   : > { %v1744_v24 = vpop.xlane.xlu0 %1743 }
 0x589   : > { %4896 = vpow2.f32 %v1785_v59  ;;  %v1772_v3 = vsub.f32 %v6056_v5, %v1744_v24  ;;  %v1787_v63 = vmul.f32 1.442695, %v1770_v29 }
 0x58b   : > { %v1791_v19 = vmul.f32 1.442695, %v1772_v3 }
 0x58c   : > { %v1900_v15 = vpop.permute.xlu0 %1899  ;;  %v1752_v54 = vpop.xlane.xlu1 %1751 }
 0x58d   : > { %4898 = vpow2.f32 %v1791_v19  ;;  %4333 = vmatprep.subr.bf16.mxu1 %v1900_v15  ;;  %v1776_v56 = vsub.f32 %v6061_v58, %v1752_v54 }
 0x58e   : > { %4334 = vmatpush3.bf16.msra.mxu1 %v1900_v15  ;;  %4900 = vpow2.f32 %v1787_v63 }
 0x58f   : > { %4335 = vmatprep.subr.bf16.mxu1 %v1898_v20  ;;  %v1799_v15 = vmul.f32 1.442695, %v1776_v56 }
 0x590   : > { %v1748_v63 = vpop.xlane.xlu1 %1747 }
 0x592   : > { %v6123_v21 = vpop.eup %4894  ;;  %4336 = vmatpush3.bf16.msra.mxu1 %v1898_v20  ;;  %v1774_v20 = vsub.f32 %v6064_v32, %v1748_v63 }
 0x593   : > { %1821 = vadd.xlane.f32.xlu1 %v6123_v21 }
 0x594   : > { %v1760_v10 = vpop.xlane.xlu1 %1759  ;;  %v1795_v59 = vmul.f32 1.442695, %v1774_v20 }
 0x596   : > { %v6126_v9 = vpop.eup %4896 }
 0x597   : > { %1817 = vadd.xlane.f32.xlu1 %v6126_v9 }
 0x598   : > { %v1756_v24 = vpop.xlane.xlu1 %1755 }
 0x59a   : > { %v6129_v13 = vpop.eup %4898 }
 0x59b   : > { %1823 = vadd.xlane.f32.xlu1 %v6129_v13  ;;  %v6132_v5 = vpop.eup %4900 }
 0x59c   : > { %v6142_v32 = vpop.permute.xlu1 %2046 }
 0x59f   : > { %1819 = vadd.xlane.f32.xlu1 %v6132_v5 }
 0x5b0   : > { %2038 = vrot.lane.b32.xlu1 %v5723_v28, %s5385_s8 }
 0x5bd   : > { %v1750_v23 = vpop.xlane.xlu0 %1749 }
 0x5be   : > { %v1775_v36 = vsub.f32 %v6083_v7, %v1750_v23  ;;  %v1780_v7 = vsub.f32 %v6069_v1, %v1760_v10 }
 0x5c0   : > { %v1797_v62 = vmul.f32 1.442695, %v1775_v36  ;;  %v1807_v23 = vmul.f32 1.442695, %v1780_v7 }
 0x5c1   : > { %v1746_v29 = vpop.xlane.xlu0 %1745 }
 0x5c2   : > { %4902 = vpow2.f32 %v1797_v62  ;;  %v1773_v3 = vsub.f32 %v6087_v53, %v1746_v29  ;;  %v6146_v53 = vpop.permute.xlu1 %2042  ;;  %v1778_v62 = vsub.f32 %v6072_v30, %v1756_v24 }
 0x5c3   : > { %4904 = vpow2.f32 %v1795_v59 }
 0x5c4   : > { %v1793_v19 = vmul.f32 1.442695, %v1773_v3 }
 0x5c5   : > { %v1758_v40 = vpop.xlane.xlu0 %1757 }
 0x5c6   : > { %4906 = vpow2.f32 %v1793_v19  ;;  %v1779_v55 = vsub.f32 %v6091_v18, %v1758_v40 }
 0x5c7   : > { %4908 = vpow2.f32 %v1799_v15 }
 0x5c8   : > { %v1805_v63 = vmul.f32 1.442695, %v1779_v55 }
 0x5c9   : > { %v1754_v58 = vpop.xlane.xlu0 %1753 }
 0x5ca   : > { %4910 = vpow2.f32 %v1805_v63  ;;  %v1777_v54 = vsub.f32 %v6095_v25, %v1754_v58  ;;  %v1803_v25 = vmul.f32 1.442695, %v1778_v62 }
 0x5cc   : > { %v1801_v20 = vmul.f32 1.442695, %v1777_v54 }
 0x5cd   : > { %v1766_v36 = vpop.xlane.xlu0 %1765 }
 0x5ce   : > { %4912 = vpow2.f32 %v1801_v20  ;;  %v1783_v40 = vsub.f32 %v6100_v27, %v1766_v36 }
 0x5cf   : > { %v6150_v18 = vpop.eup %4902  ;;  %4914 = vpow2.f32 %v1807_v23 }
 0x5d0   : > { %v1813_v55 = vmul.f32 1.442695, %v1783_v40  ;;  %1829 = vadd.xlane.f32.xlu0 %v6150_v18  ;;  %v6153_v56 = vpop.eup %4904 }
 0x5d1   : > { %v1768_v1 = vpop.xlane.xlu1 %1767  ;;  %v1762_v10 = vpop.xlane.xlu0 %1761 }
 0x5d2   : > { %4916 = vpow2.f32 %v1813_v55  ;;  %v1781_v59 = vsub.f32 %v6106_v34, %v1762_v10  ;;  %v1784_v30 = vsub.f32 %v6104_v45, %v1768_v1 }
 0x5d3   : > { %v6156_v29 = vpop.eup %4906  ;;  %4918 = vpow2.f32 %v1803_v25 }
 0x5d4   : > { %v1809_v24 = vmul.f32 1.442695, %v1781_v59  ;;  %1827 = vadd.xlane.f32.xlu1 %v6153_v56  ;;  %1825 = vadd.xlane.f32.xlu0 %v6156_v29  ;;  %v6163_v19 = vpop.eup %4908  ;;  %v1815_v63 = vmul.f32 1.442695, %v1784_v30 }
 0x5d5   : > { %v1764_v27 = vpop.xlane.xlu1 %1763  ;;  %v6161_v3 = vpop.permute.xlu0 %2048 }
 0x5d6   : > { %v1782_v15 = vsub.f32 %v6110_v31, %v1764_v27  ;;  %4529 = vmatprep.subr.msk.bf16.mxu1 %vm1052_vm0, %v6161_v3  ;;  %4920 = vpow2.f32 %v1809_v24 }
 0x5d7   : > { %v6168_v34 = vpop.eup %4910 }
 0x5d8   : > { %v1811_v45 = vmul.f32 1.442695, %v1782_v15  ;;  %1831 = vadd.xlane.f32.xlu0 %v6163_v19  ;;  %1837 = vadd.xlane.f32.xlu1 %v6168_v34 }
 0x5da   : > { %4922 = vpow2.f32 %v1811_v45 }
 0x5db   : > { %v6172_v7 = vpop.eup %4912  ;;  %4924 = vpow2.f32 %v1815_v63 }
 0x5dc   : > { %1833 = vadd.xlane.f32.xlu1 %v6172_v7  ;;  %v6175_v58 = vpop.eup %4914 }
 0x5df   : > { %v6177_v31 = vpop.eup %4916 }
 0x5e0   : > { %1839 = vadd.xlane.f32.xlu1 %v6175_v58  ;;  %1845 = vadd.xlane.f32.xlu0 %v6177_v31  ;;  %v6181_v54 = vpop.eup %4918 }
 0x5e3   : > { %v6183_v20 = vpop.eup %4920 }
 0x5e4   : > { %1835 = vadd.xlane.f32.xlu1 %v6181_v54  ;;  %1841 = vadd.xlane.f32.xlu0 %v6183_v20 }
 0x5e7   : > { %v6187_v23 = vpop.eup %4922 }
 0x5e8   : > { %v6189_v36 = vpop.eup %4924  ;;  %1843 = vadd.xlane.f32.xlu1 %v6187_v23 }
 0x5e9   : > { %1847 = vadd.xlane.f32.xlu0 %v6189_v36 }
 0x5f9   : > { %2034 = vrot.lane.b32.xlu1 %v5665_v37, %s5385_s8 }
 0x5fd   : > { %2020 = vrot.lane.b32.xlu1 %v5671_v47, %s5385_s8 }
 0x5ff   : > { %2036 = vrot.lane.b32.xlu0 %v5663_v35, %s5385_s8 }
 0x601   : > { %2024 = vrot.lane.b32.xlu1 %v5677_v57, %s5385_s8 }
 0x603   : > { %2018 = vrot.lane.b32.xlu0 %v5673_v50, %s5385_s8 }
 0x605   : > { %2028 = vrot.lane.b32.xlu1 %v5695_v4, %s5385_s8 }
 0x607   : > { %2022 = vrot.lane.b32.xlu0 %v5681_v61, %s5385_s8 }
 0x609   : > { %2032 = vrot.lane.b32.xlu1 %v5705_v12, %s5385_s8 }
 0x60b   : > { %2026 = vrot.lane.b32.xlu0 %v5697_v6, %s5385_s8 }
 0x60d   : > { %2408 = vrot.lane.b32.xlu1 %v5736_v41, %s5385_s8 }
 0x60f   : > { %2030 = vrot.lane.b32.xlu0 %v5707_v14, %s5385_s8 }
 0x611   : > { %2400 = vrot.lane.b32.xlu1 %v5757_v48, %s5385_s8 }
 0x613   : > { %2410 = vrot.lane.b32.xlu0 %v5733_v39, %s5385_s8 }
 0x615   : > { %2396 = vrot.lane.b32.xlu1 %v5769_v51, %s5385_s8 }
 0x617   : > { %2406 = vrot.lane.b32.xlu0 %v5741_v43, %s5385_s8 }
 0x61b   : > { %2404 = vrot.lane.b32.xlu0 %v5747_v44, %s5385_s8 }
 0x61c   : > { %v1822_v62 = vpop.xlane.xlu1 %1821 }
 0x61f   : > { %2402 = vrot.lane.b32.xlu0 %v5753_v46, %s5385_s8 }
 0x620   : > { %v1818_v40 = vpop.xlane.xlu1 %1817 }
 0x624   : > { %v1824_v55 = vpop.xlane.xlu1 %1823 }
 0x625   : > { %4926 = vrcp.f32 %v1824_v55 }
 0x626   : > { %4928 = vrcp.f32 %v1818_v40  ;;  %v2045_v40 = vpop.permute.xlu0 %2044 }
 0x627   : > { %4930 = vrcp.f32 %v1822_v62  ;;  %v2096_v62 = vsel %vm1052_vm0, %v6161_v3, 0 }
 0x628   : > { %v1820_v1 = vpop.xlane.xlu1 %1819 }
 0x629   : > { %4932 = vrcp.f32 %v1820_v1 }
 0x632   : > { %v4927_v10 = vpop.eup %4926 }
 0x633   : > { %v4929_v25 = vpop.eup %4928  ;;  %v1868_v24 = vmul.f32 %v4927_v10, %v6129_v13  ;;  %v2093_v13 = vsel %vm1052_vm0, %v6142_v32, 0 }
 0x634   : > { %v4931_v59 = vpop.eup %4930  ;;  %v1865_v27 = vmul.f32 %v4929_v25, %v6126_v9  ;;  %v2041_v9 = vpop.permute.xlu0 %2040 }
 0x635   : > { %v1867_v63 = vmul.f32 %v4931_v59, %v6123_v21  ;;  %v2090_v21 = vsel %vm1052_vm0, %v2045_v40, 0 }
 0x636   : > { %v4933_v30 = vpop.eup %4932 }
 0x637   : > { %v1866_v15 = vmul.f32 %v4933_v30, %v6132_v5  ;;  %v1882_v42 = vpack.c.bf16 %v1868_v24, %v1867_v63  ;;  %v2039_v5 = vpop.permute.xlu1 %2038 }
 0x639   : > { %v1881_v45 = vpack.c.bf16 %v1866_v15, %v1865_v27 }
 0x63b   : > { %4337 = vmatprep.mubr.bf16.mxu1 %v1881_v45 }
 0x63c   : > { %4338 = vmatmul.mubr.bf16.vlgmr.msra.gmra.mxu1 %v1882_v42  ;;  %v2087_v42 = vsel %vm1052_vm0, %v6146_v53, 0 }
 0x63d   : > { %4354 = vmatpush3.bf16.xpose.msra.mxu1 %v2096_v62 }
 0x63e   : > { %4530 = vmatprep.subr.msk.bf16.mxu1 %vm1052_vm0, %v6142_v32  ;;  %v2084_v32 = vsel %vm1052_vm0, %v2041_v9, 0 }
 0x645   : > { %4356 = vmatpush3.bf16.xpose.msra.mxu1 %v2093_v13 }
 0x646   : > { %4531 = vmatprep.subr.msk.bf16.mxu1 %vm1052_vm0, %v2045_v40 }
 0x64d   : > { %4358 = vmatpush3.bf16.xpose.msra.mxu1 %v2090_v21 }
 0x64e   : > { %4532 = vmatprep.subr.msk.bf16.mxu1 %vm1052_vm0, %v6146_v53  ;;  %v2081_v53 = vsel %vm1052_vm0, %v2039_v5, 0 }
 0x655   : > { %4360 = vmatpush3.bf16.xpose.msra.mxu1 %v2087_v42 }
 0x656   : > { %4533 = vmatprep.subr.msk.bf16.mxu1 %vm1052_vm0, %v2041_v9 }
 0x659   : > { %v1830_v3 = vpop.xlane.xlu0 %1829 }
 0x65d   : > { %4362 = vmatpush3.bf16.xpose.msra.mxu1 %v2084_v32  ;;  %v1828_v55 = vpop.xlane.xlu1 %1827  ;;  %v1826_v1 = vpop.xlane.xlu0 %1825 }
 0x65e   : > { %4934 = vrcp.f32 %v1828_v55  ;;  %4534 = vmatprep.subr.msk.bf16.mxu1 %vm1052_vm0, %v2039_v5 }
 0x65f   : > { %4936 = vrcp.f32 %v1826_v1 }
 0x660   : > { %4938 = vrcp.f32 %v1830_v3 }
 0x661   : > { %v1838_v10 = vpop.xlane.xlu1 %1837  ;;  %v1832_v25 = vpop.xlane.xlu0 %1831 }
 0x662   : > { %4940 = vrcp.f32 %v1832_v25 }
 0x665   : > { %4364 = vmatpush3.bf16.xpose.msra.mxu1 %v2081_v53  ;;  %v1834_v59 = vpop.xlane.xlu1 %1833 }
 0x669   : > { %v1840_v30 = vpop.xlane.xlu1 %1839  ;;  %v1846_v24 = vpop.xlane.xlu0 %1845 }
 0x66a   : > { %4942 = vrcp.f32 %v1840_v30 }
 0x66b   : > { %v4935_v27 = vpop.eup %4934  ;;  %4944 = vrcp.f32 %v1834_v59 }
 0x66c   : > { %v4937_v15 = vpop.eup %4936  ;;  %v1870_v63 = vmul.f32 %v4935_v27, %v6153_v56  ;;  %4946 = vrcp.f32 %v1838_v10 }
 0x66d   : > { %v1836_v45 = vpop.xlane.xlu1 %1835  ;;  %v1869_v62 = vmul.f32 %v4937_v15, %v6156_v29  ;;  %v4939_v13 = vpop.eup %4938 }
 0x66e   : > { %4948 = vrcp.f32 %v1836_v45  ;;  %v1842_v40 = vpop.xlane.xlu0 %1841  ;;  %v1871_v5 = vmul.f32 %v4939_v13, %v6150_v18 }
 0x66f   : > { %v1883_v21 = vpack.c.bf16 %v1870_v63, %v1869_v62  ;;  %v4941_v42 = vpop.eup %4940  ;;  %4950 = vrcp.f32 %v1842_v40 }
 0x670   : > { %v1872_v3 = vmul.f32 %v4941_v42, %v6163_v19 }
 0x671   : > { %4341 = vmatprep.mubr.bf16.mxu1 %v1883_v21  ;;  %v1844_v9 = vpop.xlane.xlu1 %1843 }
 0x672   : > { %4952 = vrcp.f32 %v1844_v9  ;;  %v1848_v32 = vpop.xlane.xlu0 %1847  ;;  %v1884_v56 = vpack.c.bf16 %v1872_v3, %v1871_v5 }
 0x673   : > { %4954 = vrcp.f32 %v1848_v32 }
 0x674   : > { %4956 = vrcp.f32 %v1846_v24  ;;  %4342 = vmatmul.mubr.bf16.gmra.mxu1 %v1884_v56 }
 0x675   : > { %v2035_v55 = vpop.permute.xlu1 %2034 }
 0x676   : > { %v2037_v29 = vpop.permute.xlu0 %2036  ;;  %v2075_v21 = vsel %vm1052_vm0, %v2035_v55, 0 }
 0x677   : > { %4535 = vmatprep.subr.msk.bf16.mxu1 %vm1052_vm0, %v2037_v29  ;;  %v2078_v1 = vsel %vm1052_vm0, %v2037_v29, 0  ;;  %v4943_v10 = vpop.eup %4942 }
 0x678   : > { %4366 = vmatpush3.bf16.xpose.msra.mxu1 %v2078_v1  ;;  %v4945_v25 = vpop.eup %4944  ;;  %v1876_v30 = vmul.f32 %v4943_v10, %v6175_v58 }
 0x679   : > { %4536 = vmatprep.subr.msk.bf16.mxu1 %vm1052_vm0, %v2035_v55  ;;  %v2021_v18 = vpop.permute.xlu1 %2020  ;;  %v4947_v53 = vpop.eup %4946  ;;  %v1873_v24 = vmul.f32 %v4945_v25, %v6172_v7 }
 0x67a   : > { %v2019_v19 = vpop.permute.xlu0 %2018  ;;  %v1875_v45 = vmul.f32 %v4947_v53, %v6168_v34 }
 0x67b   : > { %v4949_v59 = vpop.eup %4948 }
 0x67c   : > { %v1874_v27 = vmul.f32 %v4949_v59, %v6181_v54  ;;  %v4951_v15 = vpop.eup %4950  ;;  %v1886_v42 = vpack.c.bf16 %v1876_v30, %v1875_v45 }
 0x67d   : > { %v2025_v63 = vpop.permute.xlu1 %2024  ;;  %v1877_v5 = vmul.f32 %v4951_v15, %v6183_v20 }
 0x67e   : > { %v2023_v62 = vpop.permute.xlu0 %2022  ;;  %v1885_v13 = vpack.c.bf16 %v1874_v27, %v1873_v24 }
 0x67f   : > { %v4953_v40 = vpop.eup %4952 }
 0x680   : > { %v4955_v9 = vpop.eup %4954  ;;  %4368 = vmatpush3.bf16.xpose.msra.mxu1 %v2075_v21  ;;  %4345 = vmatprep.mubr.bf16.mxu1 %v1885_v13  ;;  %v1878_v58 = vmul.f32 %v4953_v40, %v6187_v23 }
 0x681   : > { %v2029_v7 = vpop.permute.xlu1 %2028  ;;  %4346 = vmatmul.mubr.bf16.gmra.mxu1 %v1886_v42  ;;  %v4957_v54 = vpop.eup %4956  ;;  %v1880_v34 = vmul.f32 %v4955_v9, %v6189_v36 }
 0x682   : > { %v2027_v3 = vpop.permute.xlu0 %2026  ;;  %v1887_v32 = vpack.c.bf16 %v1878_v58, %v1877_v5  ;;  %v1879_v56 = vmul.f32 %v4957_v54, %v6177_v31 }
 0x684   : > { %4349 = vmatprep.mubr.bf16.mxu1 %v1887_v32  ;;  %v1888_v1 = vpack.c.bf16 %v1880_v34, %v1879_v56  ;;  %v3923_v32 = vld [vmem:[#allocation6 + $0x88] sm:$0xff]  }
 0x685   : > { %v2033_v29 = vpop.permute.xlu1 %2032  ;;  %v3852_v45 = vunpack.c.h.bf16 %v3923_v32 }
 0x686   : > { %v2031_v55 = vpop.permute.xlu0 %2030 }
 0x689   : > { %4350 = vmatmul.mubr.bf16.gmra.mxu1 %v1888_v1  ;;  %v2409_v20 = vpop.permute.xlu1 %2408 }
 0x68a   : > { %v2411_v10 = vpop.permute.xlu0 %2410  ;;  %4369 = vmatprep.mubr.msk.bf16.mxu1 %vm1052_vm0, %v2019_v19 }
 0x68b   : > { %4385 = vmatprep.subr.bf16.mxu0 %v2411_v10 }
 0x68c   : > { %4386 = vmatpush3.bf16.msra.mxu0 %v2411_v10  ;;  %v3846_v10 = vld [vmem:[#allocation6 + $0x80] sm:$0xff]  }
 0x68d   : > { %4387 = vmatprep.subr.bf16.mxu0 %v2409_v20  ;;  %v2401_v25 = vpop.permute.xlu1 %2400  ;;  %v3847_v58 = vunpack.c.l.bf16 %v3846_v10  ;;  %v3848_v13 = vunpack.c.h.bf16 %v3846_v10 }
 0x68e   : > { %v2407_v23 = vpop.permute.xlu0 %2406 }
 0x690   : > { %4388 = vmatpush3.bf16.msra.mxu0 %v2409_v20  ;;  %v6321_v20 = vld [vmem:[%s387_s16] ss:$0 sm:$0xff] }
 0x691   : > { %4389 = vmatprep.subr.bf16.mxu0 %v2407_v23  ;;  %4370 = vmatmul.mubr.msk.bf16.vlgmr.msra.gmra.mxu1 %vm1052_vm0, %v2021_v18 }
 0x692   : > { %v2405_v36 = vpop.permute.xlu0 %2404  ;;  %4373 = vmatprep.mubr.msk.bf16.mxu1 %vm1052_vm0, %v2023_v62 }
 0x694   : > { %4390 = vmatpush3.bf16.msra.mxu0 %v2407_v23 }
 0x695   : > { %4391 = vmatprep.subr.bf16.mxu0 %v2405_v36 }
 0x696   : > { %v2403_v31 = vpop.permute.xlu0 %2402 }
 0x698   : > { %4392 = vmatpush3.bf16.msra.mxu0 %v2405_v36 }
 0x699   : > { %4393 = vmatprep.subr.bf16.mxu0 %v2403_v31  ;;  %4374 = vmatmul.mubr.msk.bf16.gmra.mxu1 %vm1052_vm0, %v2025_v63 }
 0x69a   : > { %4377 = vmatprep.mubr.msk.bf16.mxu1 %vm1052_vm0, %v2027_v3 }
 0x69c   : > { %4394 = vmatpush3.bf16.msra.mxu0 %v2403_v31 }
 0x69d   : > { %4395 = vmatprep.subr.bf16.mxu0 %v2401_v25 }
 0x6a0   : > { %4396 = vmatpush3.bf16.msra.mxu0 %v2401_v25 }
 0x6a1   : > { %4378 = vmatmul.mubr.msk.bf16.gmra.mxu1 %vm1052_vm0, %v2029_v7 }
 0x6a2   : > { %4381 = vmatprep.mubr.msk.bf16.mxu1 %vm1052_vm0, %v2031_v55  ;;  %v3851_v55 = vunpack.c.l.bf16 %v3923_v32  ;;  %v3924_v32 = vld [vmem:[#allocation6 + $0x90] sm:$0xff]  }
 0x6a9   : > { %4382 = vmatmul.mubr.msk.bf16.gmra.mxu1 %vm1052_vm0, %v2033_v29 }
 0x6fc   : > { %v6271_v18 = vpop.f32.mrf.mxu1 }
 0x6fe   : > { %v6273_v53 = vpop.f32.mrf.mxu1 }
 0x700   : > { %v6275_v19 = vpop.f32.mrf.mxu1 }
 0x702   : > { %v6279_v30 = vpop.f32.mrf.mxu1 }
 0x734   : > { %v6283_v27 = vpop.f32.mrf.mxu1 }
 0x736   : > { %v6285_v15 = vpop.f32.mrf.mxu1 }
 0x738   : > { %v6287_v63 = vpop.f32.mrf.mxu1 }
 0x73a   : > { %v6291_v62 = vpop.f32.mrf.mxu1 }
 0x741   : > { %v6295_v40 = vpop.f32.mrf.mxu1 }
 0x743   : > { %v6297_v21 = vpop.f32.mrf.mxu1 }
 0x745   : > { %v6299_v42 = vpop.f32.mrf.mxu1 }
 0x747   : > { %v6303_v5 = vpop.f32.mrf.mxu1 }
 0x749   : > { %v6307_v7 = vpop.f32.mrf.mxu1 }
 0x74a   : > { %7026 = vst [vmem:[#allocation44_spill] sm:$0xff] %v6307_v7 }
 0x74b   : > { %v6309_v54 = vpop.f32.mrf.mxu1 }
 0x74c   : > { %7027 = vst [vmem:[#allocation45_spill] sm:$0xff] %v6309_v54 }
 0x74d   : > { %v6311_v3 = vpop.f32.mrf.mxu1 }
 0x74f   : > { %v6315_v56 = vpop.f32.mrf.mxu1 }
 0x750   : > { %7028 = vst [vmem:[#allocation46_spill] sm:$0xff] %v6315_v56 }
 0x751   : > { %v4371_v1 = vpop.f32.mrf.mxu1 }
 0x752   : > { %v2141_v23 = vadd.f32 %v6321_v20, %v4371_v1 }
 0x753   : > { %v2132_v36 = vpop.f32.mrf.mxu1 }
 0x754   : > { %v6324_v31 = vadd.f32 %v3851_v55, %v2141_v23  ;;  %v2133_v25 = vadd.f32 %v6321_v20, %v2132_v36  ;;  %v3925_v55 = vld [vmem:[#allocation6 + $0x98] sm:$0xff]  }
 0x755   : > { %v4372_v34 = vpop.f32.mrf.mxu1  ;;  %v3860_v10 = vunpack.c.h.bf16 %v3925_v55 }
 0x756   : > { %2248 = vmax.xlane.f32.xlu0 %v6324_v31  ;;  %v6328_v29 = vadd.f32 %v3847_v58, %v2133_v25  ;;  %v2144_v9 = vadd.f32 %v6321_v20, %v4372_v34 }
 0x757   : > { %v2135_v24 = vpop.f32.mrf.mxu1 }
 0x758   : > { %v2136_v59 = vadd.f32 %v6321_v20, %v2135_v24  ;;  %v6335_v36 = vadd.f32 %v3852_v45, %v2144_v9  ;;  %v3927_v45 = vld [vmem:[#allocation6 + $0xa8] sm:$0xff]  }
 0x759   : > { %v4375_v17 = vpop.f32.mrf.mxu1  ;;  %v3868_v11 = vunpack.c.h.bf16 %v3927_v45 }
 0x75a   : > { %v6332_v1 = vadd.f32 %v3848_v13, %v2136_v59  ;;  %2244 = vmax.xlane.f32.xlu0 %v6328_v29  ;;  %v3856_v13 = vunpack.c.h.bf16 %v3924_v32 }
 0x75b   : > { %v2148_v23 = vpop.f32.mrf.mxu1 }
 0x75c   : > { %2246 = vmax.xlane.f32.xlu1 %v6332_v1 }
 0x75d   : > { %v4376_v33 = vpop.f32.mrf.mxu1 }
 0x75e   : > { %v2160_v58 = vadd.f32 %v6321_v20, %v4376_v33  ;;  %2250 = vmax.xlane.f32.xlu0 %v6335_v36 }
 0x75f   : > { %v2151_v34 = vpop.f32.mrf.mxu1 }
 0x760   : > { %v6340_v24 = vadd.f32 %v3860_v10, %v2160_v58  ;;  %v2152_v59 = vadd.f32 %v6321_v20, %v2151_v34  ;;  %v3864_v34 = vunpack.c.h.bf16 %v3926_v2 }
 0x761   : > { %v4379_v25 = vpop.f32.mrf.mxu1 }
 0x762   : > { %2258 = vmax.xlane.f32.xlu1 %v6340_v24  ;;  %v6344_v52 = vadd.f32 %v3856_v13, %v2152_v59  ;;  %v2149_v59 = vadd.f32 %v6321_v20, %v2148_v23  ;;  %v3855_v13 = vunpack.c.l.bf16 %v3924_v32 }
 0x763   : > { %v2164_v9 = vpop.f32.mrf.mxu1 }
 0x765   : > { %v4380_v38 = vpop.f32.mrf.mxu1 }
 0x766   : > { %v2176_v33 = vadd.f32 %v6321_v20, %v4380_v38  ;;  %2254 = vmax.xlane.f32.xlu1 %v6344_v52  ;;  %v3859_v38 = vunpack.c.l.bf16 %v3925_v55  ;;  %v3929_v55 = vld [vmem:[#allocation6 + $0xb8] sm:$0xff]  }
 0x767   : > { %v2167_v26 = vpop.f32.mrf.mxu1 }
 0x768   : > { %v6348_v10 = vadd.f32 %v3868_v11, %v2176_v33  ;;  %v2168_v58 = vadd.f32 %v6321_v20, %v2167_v26  ;;  %v2157_v11 = vadd.f32 %v6321_v20, %v4375_v17  ;;  %v6366_v33 = vadd.f32 %v3855_v13, %v2149_v59  ;;  %v3928_v59 = vld [vmem:[#allocation6 + $0xb0] sm:$0xff]  }
 0x769   : > { %v4383_v56 = vpop.f32.mrf.mxu1  ;;  %v3863_v17 = vunpack.c.l.bf16 %v3926_v2  ;;  %v3872_v7 = vunpack.c.h.bf16 %v3928_v59 }
 0x76a   : > { %2266 = vmax.xlane.f32.xlu1 %v6348_v10  ;;  %v6352_v54 = vadd.f32 %v3864_v34, %v2168_v58  ;;  %v6362_v26 = vadd.f32 %v3859_v38, %v2157_v11  ;;  %v2173_v58 = vadd.f32 %v6321_v20, %v4379_v25  ;;  %v3867_v34 = vunpack.c.l.bf16 %v3927_v45 }
 0x76b   : > { %v2180_v11 = vpop.f32.mrf.mxu1  ;;  %v2189_v32 = vadd.f32 %v6321_v20, %v4383_v56  ;;  %v3875_v38 = vunpack.c.l.bf16 %v3929_v55  ;;  %v3871_v45 = vunpack.c.l.bf16 %v3928_v59 }
 0x76d   : > { %v4384_v25 = vpop.f32.mrf.mxu1  ;;  %v6378_v13 = vadd.f32 %v3875_v38, %v2189_v32  ;;  %v2397_v38 = vpop.permute.xlu1 %2396 }
 0x76e   : > { %2262 = vmax.xlane.f32.xlu1 %v6352_v54  ;;  %v2192_v2 = vadd.f32 %v6321_v20, %v4384_v25 }
 0x774   : > { %2398 = vrot.lane.b32.xlu0 %v5761_v49, %s5385_s8 }
 0x77f   : > { %2545 = vrot.lane.b32.xlu1 %v5683_v0, %s5386_s15  ;;  %v6370_v0 = vadd.f32 %v3867_v34, %v2173_v58  ;;  %v2181_v58 = vadd.f32 %v6321_v20, %v2180_v11  ;;  %v2183_v34 = vpop.f32.mrf.mxu1 }
 0x780   : > { %v2184_v56 = vadd.f32 %v6321_v20, %v2183_v34 }
 0x782   : > { %v6390_v32 = vadd.f32 %v3872_v7, %v2184_v56 }
 0x783   : > { %2541 = vrot.lane.b32.xlu1 %v5709_v16, %s5386_s15  ;;  %v2165_v16 = vadd.f32 %v6321_v20, %v2164_v9  ;;  %v3876_v9 = vunpack.c.h.bf16 %v3929_v55 }
 0x785   : > { %v6374_v23 = vadd.f32 %v3863_v17, %v2165_v16  ;;  %v6383_v16 = vadd.f32 %v3871_v45, %v2181_v58  ;;  %v6385_v17 = vadd.f32 %v3876_v9, %v2192_v2 }
 0x793   : > { %2256 = vmax.xlane.f32.xlu0 %v6362_v26 }
 0x797   : > { %2252 = vmax.xlane.f32.xlu0 %v6366_v33 }
 0x79b   : > { %2264 = vmax.xlane.f32.xlu0 %v6370_v0 }
 0x79f   : > { %2260 = vmax.xlane.f32.xlu0 %v6374_v23 }
 0x7a3   : > { %2272 = vmax.xlane.f32.xlu0 %v6378_v13 }
 0x7a7   : > { %2274 = vmax.xlane.f32.xlu1 %v6385_v17  ;;  %2268 = vmax.xlane.f32.xlu0 %v6383_v16 }
 0x7ab   : > { %2270 = vmax.xlane.f32.xlu1 %v6390_v32 }
 0x7bd   : > { %2547 = vrot.lane.b32.xlu0 %v5679_v60, %s5386_s15 }
 0x7c1   : > { %2543 = vrot.lane.b32.xlu0 %v5699_v8, %s5386_s15 }
 0x7c5   : > { %2539 = vrot.lane.b32.xlu0 %v5715_v22, %s5386_s15 }
 0x7df   : > { %v2249_v55 = vpop.xlane.xlu0 %2248 }
 0x7e0   : > { %v2278_v11 = vsub.f32 %v6324_v31, %v2249_v55 }
 0x7e2   : > { %v2296_v59 = vmul.f32 1.442695, %v2278_v11 }
 0x7e3   : > { %v2245_v25 = vpop.xlane.xlu0 %2244 }
 0x7e4   : > { %4958 = vpow2.f32 %v2296_v59  ;;  %v2276_v7 = vsub.f32 %v6328_v29, %v2245_v25 }
 0x7e5   : > { %v2247_v45 = vpop.xlane.xlu1 %2246 }
 0x7e6   : > { %v2292_v58 = vmul.f32 1.442695, %v2276_v7  ;;  %v2277_v60 = vsub.f32 %v6332_v1, %v2247_v45 }
 0x7e7   : > { %v2251_v2 = vpop.xlane.xlu0 %2250 }
 0x7e8   : > { %4960 = vpow2.f32 %v2292_v58  ;;  %v2279_v8 = vsub.f32 %v6335_v36, %v2251_v2  ;;  %v2294_v22 = vmul.f32 1.442695, %v2277_v60 }
 0x7ea   : > { %v2298_v9 = vmul.f32 1.442695, %v2279_v8 }
 0x7eb   : > { %v2399_v34 = vpop.permute.xlu0 %2398  ;;  %v2259_v56 = vpop.xlane.xlu1 %2258 }
 0x7ec   : > { %4962 = vpow2.f32 %v2298_v9  ;;  %4397 = vmatprep.subr.bf16.mxu0 %v2399_v34  ;;  %v2283_v45 = vsub.f32 %v6340_v24, %v2259_v56 }
 0x7ed   : > { %4398 = vmatpush3.bf16.msra.mxu0 %v2399_v34  ;;  %4964 = vpow2.f32 %v2294_v22 }
 0x7ee   : > { %4399 = vmatprep.subr.bf16.mxu0 %v2397_v38  ;;  %v2306_v34 = vmul.f32 1.442695, %v2283_v45 }
 0x7ef   : > { %v2255_v55 = vpop.xlane.xlu1 %2254 }
 0x7f1   : > { %v6403_v31 = vpop.eup %4958  ;;  %4400 = vmatpush3.bf16.msra.mxu0 %v2397_v38  ;;  %v2281_v38 = vsub.f32 %v6344_v52, %v2255_v55 }
 0x7f2   : > { %2328 = vadd.xlane.f32.xlu1 %v6403_v31 }
 0x7f3   : > { %v2267_v11 = vpop.xlane.xlu1 %2266  ;;  %v2302_v58 = vmul.f32 1.442695, %v2281_v38 }
 0x7f5   : > { %v6406_v29 = vpop.eup %4960 }
 0x7f6   : > { %2324 = vadd.xlane.f32.xlu1 %v6406_v29 }
 0x7f7   : > { %v2263_v2 = vpop.xlane.xlu1 %2262 }
 0x7f9   : > { %v6409_v1 = vpop.eup %4962 }
 0x7fa   : > { %2330 = vadd.xlane.f32.xlu1 %v6409_v1  ;;  %v6412_v36 = vpop.eup %4964 }
 0x7fb   : > { %v6422_v52 = vpop.permute.xlu1 %2545 }
 0x7fe   : > { %2326 = vadd.xlane.f32.xlu1 %v6412_v36 }
 0x80f   : > { %2537 = vrot.lane.b32.xlu1 %v5723_v28, %s5386_s15 }
 0x81c   : > { %v2257_v59 = vpop.xlane.xlu0 %2256 }
 0x81d   : > { %v2282_v25 = vsub.f32 %v6362_v26, %v2257_v59  ;;  %v2287_v26 = vsub.f32 %v6348_v10, %v2267_v11 }
 0x81f   : > { %v2304_v7 = vmul.f32 1.442695, %v2282_v25  ;;  %v2314_v59 = vmul.f32 1.442695, %v2287_v26 }
 0x820   : > { %v2253_v60 = vpop.xlane.xlu0 %2252 }
 0x821   : > { %4966 = vpow2.f32 %v2304_v7  ;;  %v2280_v8 = vsub.f32 %v6366_v33, %v2253_v60  ;;  %v6426_v33 = vpop.permute.xlu1 %2541  ;;  %v2285_v7 = vsub.f32 %v6352_v54, %v2263_v2 }
 0x822   : > { %4968 = vpow2.f32 %v2302_v58 }
 0x823   : > { %v2300_v9 = vmul.f32 1.442695, %v2280_v8 }
 0x824   : > { %v2265_v28 = vpop.xlane.xlu0 %2264 }
 0x825   : > { %4970 = vpow2.f32 %v2300_v9  ;;  %v2286_v22 = vsub.f32 %v6370_v0, %v2265_v28 }
 0x826   : > { %4972 = vpow2.f32 %v2306_v34 }
 0x827   : > { %v2312_v55 = vmul.f32 1.442695, %v2286_v22 }
 0x828   : > { %v2261_v24 = vpop.xlane.xlu0 %2260 }
 0x829   : > { %4974 = vpow2.f32 %v2312_v55  ;;  %v2284_v56 = vsub.f32 %v6374_v23, %v2261_v24  ;;  %v2310_v23 = vmul.f32 1.442695, %v2285_v7 }
 0x82b   : > { %v2308_v38 = vmul.f32 1.442695, %v2284_v56 }
 0x82c   : > { %v2273_v25 = vpop.xlane.xlu0 %2272 }
 0x82d   : > { %4976 = vpow2.f32 %v2308_v38  ;;  %v2290_v0 = vsub.f32 %v6378_v13, %v2273_v25 }
 0x82e   : > { %v6430_v45 = vpop.eup %4966  ;;  %4978 = vpow2.f32 %v2314_v59 }
 0x82f   : > { %v2320_v58 = vmul.f32 1.442695, %v2290_v0  ;;  %2336 = vadd.xlane.f32.xlu0 %v6430_v45  ;;  %v6433_v60 = vpop.eup %4968 }
 0x830   : > { %v2275_v10 = vpop.xlane.xlu1 %2274  ;;  %v2269_v11 = vpop.xlane.xlu0 %2268 }
 0x831   : > { %4980 = vpow2.f32 %v2320_v58  ;;  %v2288_v8 = vsub.f32 %v6383_v16, %v2269_v11  ;;  %v2291_v54 = vsub.f32 %v6385_v17, %v2275_v10  ;;  %v2592_v58 = vsel %vm1052_vm0, %v6422_v52, 0 }
 0x832   : > { %v6436_v9 = vpop.eup %4970  ;;  %4982 = vpow2.f32 %v2310_v23 }
 0x833   : > { %v2316_v2 = vmul.f32 1.442695, %v2288_v8  ;;  %2334 = vadd.xlane.f32.xlu1 %v6433_v60  ;;  %2332 = vadd.xlane.f32.xlu0 %v6436_v9  ;;  %v6441_v28 = vpop.eup %4972  ;;  %v2322_v16 = vmul.f32 1.442695, %v2291_v54 }
 0x834   : > { %v2271_v13 = vpop.xlane.xlu1 %2270  ;;  %v2548_v34 = vpop.permute.xlu0 %2547 }
 0x835   : > { %v2289_v22 = vsub.f32 %v6390_v32, %v2271_v13  ;;  %4537 = vmatprep.subr.msk.bf16.mxu0 %vm1052_vm0, %v2548_v34  ;;  %4984 = vpow2.f32 %v2316_v2  ;;  %v2595_v0 = vsel %vm1052_vm0, %v2548_v34, 0 }
 0x836   : > { %v6445_v55 = vpop.eup %4974 }
 0x837   : > { %v2318_v26 = vmul.f32 1.442695, %v2289_v22  ;;  %2338 = vadd.xlane.f32.xlu0 %v6441_v28  ;;  %2344 = vadd.xlane.f32.xlu1 %v6445_v55 }
 0x839   : > { %4986 = vpow2.f32 %v2318_v26 }
 0x83a   : > { %v6449_v17 = vpop.eup %4976  ;;  %4988 = vpow2.f32 %v2322_v16 }
 0x83b   : > { %2340 = vadd.xlane.f32.xlu1 %v6449_v17  ;;  %v6452_v24 = vpop.eup %4978 }
 0x83e   : > { %v6454_v32 = vpop.eup %4980 }
 0x83f   : > { %2346 = vadd.xlane.f32.xlu1 %v6452_v24  ;;  %2352 = vadd.xlane.f32.xlu0 %v6454_v32  ;;  %v6458_v56 = vpop.eup %4982 }
 0x842   : > { %v6460_v38 = vpop.eup %4984 }
 0x843   : > { %2342 = vadd.xlane.f32.xlu1 %v6458_v56  ;;  %2348 = vadd.xlane.f32.xlu0 %v6460_v38 }
 0x846   : > { %v6464_v59 = vpop.eup %4986 }
 0x847   : > { %v6466_v25 = vpop.eup %4988  ;;  %2350 = vadd.xlane.f32.xlu1 %v6464_v59 }
 0x848   : > { %2354 = vadd.xlane.f32.xlu0 %v6466_v25 }
 0x858   : > { %2533 = vrot.lane.b32.xlu1 %v5665_v37, %s5386_s15 }
 0x85c   : > { %2519 = vrot.lane.b32.xlu1 %v5671_v47, %s5386_s15 }
 0x85e   : > { %2535 = vrot.lane.b32.xlu0 %v5663_v35, %s5386_s15 }
 0x860   : > { %2523 = vrot.lane.b32.xlu1 %v5677_v57, %s5386_s15 }
 0x862   : > { %2517 = vrot.lane.b32.xlu0 %v5673_v50, %s5386_s15 }
 0x864   : > { %2527 = vrot.lane.b32.xlu1 %v5695_v4, %s5386_s15 }
 0x866   : > { %2521 = vrot.lane.b32.xlu0 %v5681_v61, %s5386_s15 }
 0x868   : > { %2531 = vrot.lane.b32.xlu1 %v5705_v12, %s5386_s15 }
 0x86a   : > { %2525 = vrot.lane.b32.xlu0 %v5697_v6, %s5386_s15 }
 0x86c   : > { %2907 = vrot.lane.b32.xlu1 %v5736_v41, %s5386_s15 }
 0x86e   : > { %2529 = vrot.lane.b32.xlu0 %v5707_v14, %s5386_s15 }
 0x872   : > { %2909 = vrot.lane.b32.xlu0 %v5733_v39, %s5386_s15 }
 0x876   : > { %2905 = vrot.lane.b32.xlu0 %v5741_v43, %s5386_s15 }
 0x87b   : > { %v2329_v35 = vpop.xlane.xlu1 %2328 }
 0x87f   : > { %v2325_v37 = vpop.xlane.xlu1 %2324 }
 0x883   : > { %v2331_v47 = vpop.xlane.xlu1 %2330 }
 0x884   : > { %4990 = vrcp.f32 %v2331_v47 }
 0x885   : > { %4992 = vrcp.f32 %v2325_v37 }
 0x886   : > { %4994 = vrcp.f32 %v2329_v35 }
 0x887   : > { %v2327_v50 = vpop.xlane.xlu1 %2326 }
 0x888   : > { %4996 = vrcp.f32 %v2327_v50 }
 0x88b   : > { %v2538_v10 = vpop.permute.xlu1 %2537 }
 0x891   : > { %v4991_v57 = vpop.eup %4990 }
 0x892   : > { %v4993_v61 = vpop.eup %4992  ;;  %v2375_v12 = vmul.f32 %v4991_v57, %v6409_v1  ;;  %v2544_v1 = vpop.permute.xlu0 %2543 }
 0x893   : > { %v4995_v4 = vpop.eup %4994  ;;  %v2372_v14 = vmul.f32 %v4993_v61, %v6406_v29  ;;  %v2589_v29 = vsel %vm1052_vm0, %v2544_v1, 0 }
 0x894   : > { %v2374_v41 = vmul.f32 %v4995_v4, %v6403_v31  ;;  %v2586_v31 = vsel %vm1052_vm0, %v6426_v33, 0 }
 0x895   : > { %v4997_v6 = vpop.eup %4996 }
 0x896   : > { %v2373_v39 = vmul.f32 %v4997_v6, %v6412_v36  ;;  %v2389_v7 = vpack.c.bf16 %v2375_v12, %v2374_v41  ;;  %v2540_v36 = vpop.permute.xlu0 %2539 }
 0x898   : > { %v2388_v43 = vpack.c.bf16 %v2373_v39, %v2372_v14 }
 0x89a   : > { %4401 = vmatprep.mubr.bf16.mxu0 %v2388_v43 }
 0x89b   : > { %4402 = vmatmul.mubr.bf16.vlgmr.msra.gmra.mxu0 %v2389_v7 }
 0x89c   : > { %4418 = vmatpush3.bf16.xpose.msra.mxu0 %v2595_v0 }
 0x89d   : > { %4538 = vmatprep.subr.msk.bf16.mxu0 %vm1052_vm0, %v6422_v52  ;;  %v2583_v52 = vsel %vm1052_vm0, %v2540_v36, 0 }
 0x8a4   : > { %4420 = vmatpush3.bf16.xpose.msra.mxu0 %v2592_v58 }
 0x8a5   : > { %4539 = vmatprep.subr.msk.bf16.mxu0 %vm1052_vm0, %v2544_v1 }
 0x8ac   : > { %4422 = vmatpush3.bf16.xpose.msra.mxu0 %v2589_v29 }
 0x8ad   : > { %4540 = vmatprep.subr.msk.bf16.mxu0 %vm1052_vm0, %v6426_v33  ;;  %v2580_v33 = vsel %vm1052_vm0, %v2538_v10, 0 }
 0x8b4   : > { %4424 = vmatpush3.bf16.xpose.msra.mxu0 %v2586_v31 }
 0x8b5   : > { %4541 = vmatprep.subr.msk.bf16.mxu0 %vm1052_vm0, %v2540_v36 }
 0x8b8   : > { %v2337_v11 = vpop.xlane.xlu0 %2336 }
 0x8bc   : > { %4426 = vmatpush3.bf16.xpose.msra.mxu0 %v2583_v52  ;;  %v2335_v23 = vpop.xlane.xlu1 %2334  ;;  %v2333_v8 = vpop.xlane.xlu0 %2332 }
 0x8bd   : > { %4998 = vrcp.f32 %v2335_v23  ;;  %4542 = vmatprep.subr.msk.bf16.mxu0 %vm1052_vm0, %v2538_v10 }
 0x8be   : > { %5000 = vrcp.f32 %v2333_v8 }
 0x8bf   : > { %5002 = vrcp.f32 %v2337_v11 }
 0x8c0   : > { %v2345_v54 = vpop.xlane.xlu1 %2344  ;;  %v2339_v2 = vpop.xlane.xlu0 %2338 }
 0x8c1   : > { %5004 = vrcp.f32 %v2339_v2 }
 0x8c4   : > { %4428 = vmatpush3.bf16.xpose.msra.mxu0 %v2580_v33  ;;  %v2341_v13 = vpop.xlane.xlu1 %2340 }
 0x8c8   : > { %v2347_v34 = vpop.xlane.xlu1 %2346  ;;  %v2353_v22 = vpop.xlane.xlu0 %2352 }
 0x8c9   : > { %5006 = vrcp.f32 %v2347_v34 }
 0x8ca   : > { %v4999_v16 = vpop.eup %4998  ;;  %5008 = vrcp.f32 %v2341_v13 }
 0x8cb   : > { %v5001_v26 = vpop.eup %5000  ;;  %v2377_v35 = vmul.f32 %v4999_v16, %v6433_v60  ;;  %5010 = vrcp.f32 %v2345_v54 }
 0x8cc   : > { %v2343_v37 = vpop.xlane.xlu1 %2342  ;;  %v2376_v47 = vmul.f32 %v5001_v26, %v6436_v9  ;;  %v5003_v50 = vpop.eup %5002 }
 0x8cd   : > { %5012 = vrcp.f32 %v2343_v37  ;;  %v2349_v57 = vpop.xlane.xlu0 %2348  ;;  %v2378_v12 = vmul.f32 %v5003_v50, %v6430_v45 }
 0x8ce   : > { %v2390_v61 = vpack.c.bf16 %v2377_v35, %v2376_v47  ;;  %v5005_v4 = vpop.eup %5004  ;;  %5014 = vrcp.f32 %v2349_v57 }
 0x8cf   : > { %v2379_v14 = vmul.f32 %v5005_v4, %v6441_v28 }
 0x8d0   : > { %4405 = vmatprep.mubr.bf16.mxu0 %v2390_v61  ;;  %v2351_v6 = vpop.xlane.xlu1 %2350 }
 0x8d1   : > { %5016 = vrcp.f32 %v2351_v6  ;;  %v2355_v39 = vpop.xlane.xlu0 %2354  ;;  %v2391_v60 = vpack.c.bf16 %v2379_v14, %v2378_v12 }
 0x8d2   : > { %5018 = vrcp.f32 %v2355_v39 }
 0x8d3   : > { %5020 = vrcp.f32 %v2353_v22  ;;  %4406 = vmatmul.mubr.bf16.gmra.mxu0 %v2391_v60 }
 0x8d4   : > { %v2534_v41 = vpop.permute.xlu1 %2533 }
 0x8d5   : > { %v2536_v9 = vpop.permute.xlu0 %2535  ;;  %v2574_v2 = vsel %vm1052_vm0, %v2534_v41, 0 }
 0x8d6   : > { %v2577_v43 = vsel %vm1052_vm0, %v2536_v9, 0  ;;  %4543 = vmatprep.subr.msk.bf16.mxu0 %vm1052_vm0, %v2536_v9  ;;  %v5007_v7 = vpop.eup %5006  ;;  %v3935_v9 = vld [vmem:[#allocation6 + $0xf0] sm:$0xff]  }
 0x8d7   : > { %4430 = vmatpush3.bf16.xpose.msra.mxu0 %v2577_v43  ;;  %v5009_v0 = vpop.eup %5008  ;;  %v2383_v29 = vmul.f32 %v5007_v7, %v6452_v24 }
 0x8d8   : > { %4544 = vmatprep.subr.msk.bf16.mxu0 %vm1052_vm0, %v2534_v41  ;;  %v2520_v45 = vpop.permute.xlu1 %2519  ;;  %v5011_v58 = vpop.eup %5010  ;;  %v2380_v31 = vmul.f32 %v5009_v0, %v6449_v17 }
 0x8d9   : > { %v2518_v28 = vpop.permute.xlu0 %2517  ;;  %v2382_v52 = vmul.f32 %v5011_v58, %v6445_v55 }
 0x8da   : > { %v5013_v1 = vpop.eup %5012 }
 0x8db   : > { %v2381_v36 = vmul.f32 %v5013_v1, %v6458_v56  ;;  %v5015_v10 = vpop.eup %5014  ;;  %v2393_v33 = vpack.c.bf16 %v2383_v29, %v2382_v52 }
 0x8dc   : > { %v2524_v11 = vpop.permute.xlu1 %2523  ;;  %v2384_v34 = vmul.f32 %v5015_v10, %v6460_v38 }
 0x8dd   : > { %v2522_v23 = vpop.permute.xlu0 %2521  ;;  %v2392_v8 = vpack.c.bf16 %v2381_v36, %v2380_v31  ;;  %v3930_v36 = vld [vmem:[#allocation6 + $0xc8] sm:$0xff]  }
 0x8de   : > { %v5017_v54 = vpop.eup %5016 }
 0x8df   : > { %v5019_v13 = vpop.eup %5018  ;;  %4432 = vmatpush3.bf16.xpose.msra.mxu0 %v2574_v2  ;;  %4409 = vmatprep.mubr.bf16.mxu0 %v2392_v8  ;;  %v2385_v24 = vmul.f32 %v5017_v54, %v6464_v59  ;;  %v3878_v54 = vld [vmem:[#allocation6 + $0xc0] sm:$0xff]  }
 0x8e0   : > { %v2528_v17 = vpop.permute.xlu1 %2527  ;;  %4410 = vmatmul.mubr.bf16.gmra.mxu0 %v2393_v33  ;;  %v5021_v56 = vpop.eup %5020  ;;  %v2387_v55 = vmul.f32 %v5019_v13, %v6466_v25 }
 0x8e1   : > { %v2526_v22 = vpop.permute.xlu0 %2525  ;;  %v2394_v16 = vpack.c.bf16 %v2385_v24, %v2384_v34  ;;  %v2386_v26 = vmul.f32 %v5021_v56, %v6454_v32  ;;  %v3879_v24 = vunpack.c.l.bf16 %v3878_v54  ;;  %v3880_v56 = vunpack.c.h.bf16 %v3878_v54  ;;  %v3931_v54 = vld [vmem:[#allocation6 + $0xd0] sm:$0xff]  }
 0x8e3   : > { %4413 = vmatprep.mubr.bf16.mxu0 %v2394_v16  ;;  %v2395_v47 = vpack.c.bf16 %v2387_v55, %v2386_v26  ;;  %v3884_v26 = vunpack.c.h.bf16 %v3930_v36 }
 0x8e4   : > { %v2532_v35 = vpop.permute.xlu1 %2531 }
 0x8e5   : > { %v2530_v37 = vpop.permute.xlu0 %2529 }
 0x8e8   : > { %4414 = vmatmul.mubr.bf16.gmra.mxu0 %v2395_v47  ;;  %v2908_v38 = vpop.permute.xlu1 %2907  ;;  %v3932_v47 = vld [vmem:[#allocation6 + $0xd8] sm:$0xff]  }
 0x8e9   : > { %v2910_v50 = vpop.permute.xlu0 %2909  ;;  %4433 = vmatprep.mubr.msk.bf16.mxu0 %vm1052_vm0, %v2518_v28 }
 0x8ea   : > { %4449 = vmatprep.subr.bf16.mxu1 %v2910_v50 }
 0x8eb   : > { %4450 = vmatpush3.bf16.msra.mxu1 %v2910_v50 }
 0x8ec   : > { %4451 = vmatprep.subr.bf16.mxu1 %v2908_v38 }
 0x8ed   : > { %v2906_v59 = vpop.permute.xlu0 %2905 }
 0x8ef   : > { %4452 = vmatpush3.bf16.msra.mxu1 %v2908_v38 }
 0x8f0   : > { %4453 = vmatprep.subr.bf16.mxu1 %v2906_v59  ;;  %4434 = vmatmul.mubr.msk.bf16.vlgmr.msra.gmra.mxu0 %vm1052_vm0, %v2520_v45 }
 0x8f1   : > { %4437 = vmatprep.mubr.msk.bf16.mxu0 %vm1052_vm0, %v2522_v23  ;;  %v3883_v23 = vunpack.c.l.bf16 %v3930_v36 }
 0x8f3   : > { %4454 = vmatpush3.bf16.msra.mxu1 %v2906_v59 }
 0x8f8   : > { %4438 = vmatmul.mubr.msk.bf16.gmra.mxu0 %vm1052_vm0, %v2524_v11 }
 0x8f9   : > { %4441 = vmatprep.mubr.msk.bf16.mxu0 %vm1052_vm0, %v2526_v22 }
 0x900   : > { %4442 = vmatmul.mubr.msk.bf16.gmra.mxu0 %vm1052_vm0, %v2528_v17 }
 0x901   : > { %4445 = vmatprep.mubr.msk.bf16.mxu0 %vm1052_vm0, %v2530_v37 }
 0x908   : > { %4446 = vmatmul.mubr.msk.bf16.gmra.mxu0 %vm1052_vm0, %v2532_v35 }
 0x95b   : > { %v6539_v32 = vpop.f32.mrf.mxu0 }
 0x95d   : > { %v6541_v25 = vpop.f32.mrf.mxu0 }
 0x95f   : > { %v6543_v57 = vpop.f32.mrf.mxu0 }
 0x960   : > { %v4685_v61 = vpack.i.bf16 %v6543_v57, %v6539_v32  ;;  %v7031_v57 = vpack.i.bf16 %v6299_v42, %v6295_v40  ;;  %v7035_v42 = vpack.i.bf16 %v6303_v5, %v6297_v21 }
 0x961   : > { %v6547_v4 = vpop.f32.mrf.mxu0 }
 0x962   : > { %v4680_v6 = vpack.i.bf16 %v6547_v4, %v6541_v25  ;;  %v7033_v4 = vpack.i.bf16 %v6291_v62, %v6285_v15 }
 0x993   : > { %v6551_v12 = vpop.f32.mrf.mxu0 }
 0x995   : > { %v6553_v14 = vpop.f32.mrf.mxu0 }
 0x997   : > { %v6555_v39 = vpop.f32.mrf.mxu0 }
 0x998   : > { %v4705_v60 = vpack.i.bf16 %v6555_v39, %v6551_v12 }
 0x999   : > { %v6559_v41 = vpop.f32.mrf.mxu0 }
 0x99a   : > { %v7034_v40 = vpack.i.bf16 %v6559_v41, %v6553_v14 }
 0x9a0   : > { %v6563_v43 = vpop.f32.mrf.mxu0 }
 0x9a2   : > { %v6565_v7 = vpop.f32.mrf.mxu0 }
 0x9a4   : > { %v6567_v0 = vpop.f32.mrf.mxu0 }
 0x9a6   : > { %v6571_v58 = vpop.f32.mrf.mxu0 }
 0x9a8   : > { %v6575_v1 = vpop.f32.mrf.mxu0 }
 0x9aa   : > { %v6577_v29 = vpop.f32.mrf.mxu0 }
 0x9ac   : > { %v6579_v31 = vpop.f32.mrf.mxu0 }
 0x9ae   : > { %v6583_v11 = vpop.f32.mrf.mxu0 }
 0x9b0   : > { %v4435_v8 = vpop.f32.mrf.mxu0 }
 0x9b1   : > { %v2640_v2 = vadd.f32 %v6321_v20, %v4435_v8  ;;  %v3891_v8 = vunpack.c.l.bf16 %v3932_v47 }
 0x9b2   : > { %v2631_v33 = vpop.f32.mrf.mxu0 }
 0x9b3   : > { %v6588_v13 = vadd.f32 %v3883_v23, %v2640_v2  ;;  %v2632_v34 = vadd.f32 %v6321_v20, %v2631_v33  ;;  %v3892_v2 = vunpack.c.h.bf16 %v3932_v47 }
 0x9b4   : > { %v4436_v17 = vpop.f32.mrf.mxu0 }
 0x9b5   : > { %2747 = vmax.xlane.f32.xlu0 %v6588_v13  ;;  %v6592_v16 = vadd.f32 %v3879_v24, %v2632_v34  ;;  %v2643_v55 = vadd.f32 %v6321_v20, %v4436_v17  ;;  %v3887_v34 = vunpack.c.l.bf16 %v3931_v54  ;;  %v3888_v17 = vunpack.c.h.bf16 %v3931_v54 }
 0x9b6   : > { %v2634_v22 = vpop.f32.mrf.mxu0 }
 0x9b7   : > { %v2635_v35 = vadd.f32 %v6321_v20, %v2634_v22  ;;  %v6599_v59 = vadd.f32 %v3884_v26, %v2643_v55 }
 0x9b8   : > { %v4439_v37 = vpop.f32.mrf.mxu0 }
 0x9b9   : > { %v6596_v50 = vadd.f32 %v3880_v56, %v2635_v35  ;;  %2743 = vmax.xlane.f32.xlu0 %v6592_v16  ;;  %v2656_v23 = vadd.f32 %v6321_v20, %v4439_v37  ;;  %v3934_v35 = vld [vmem:[#allocation6 + $0xe8] sm:$0xff]  }
 0x9ba   : > { %v2647_v38 = vpop.f32.mrf.mxu0  ;;  %v3899_v47 = vunpack.c.l.bf16 %v3934_v35 }
 0x9bb   : > { %2745 = vmax.xlane.f32.xlu1 %v6596_v50  ;;  %v6605_v56 = vadd.f32 %v3891_v8, %v2656_v23  ;;  %v2648_v22 = vadd.f32 %v6321_v20, %v2647_v38  ;;  %v3933_v8 = vld [vmem:[#allocation6 + $0xe0] sm:$0xff]   ;;  %v3900_v38 = vunpack.c.h.bf16 %v3934_v35  ;;  %v3936_v35 = vld [vmem:[#allocation6 + $0xf8] sm:$0xff]  }
 0x9bc   : > { %v4440_v33 = vpop.f32.mrf.mxu0  ;;  %v3896_v28 = vunpack.c.h.bf16 %v3933_v8 }
 0x9bd   : > { %v2659_v36 = vadd.f32 %v6321_v20, %v4440_v33  ;;  %2749 = vmax.xlane.f32.xlu0 %v6599_v59  ;;  %v6613_v52 = vadd.f32 %v3887_v34, %v2648_v22 }
 0x9be   : > { %v2650_v24 = vpop.f32.mrf.mxu0 }
 0x9bf   : > { %v6608_v55 = vadd.f32 %v3892_v2, %v2659_v36  ;;  %v2651_v26 = vadd.f32 %v6321_v20, %v2650_v24  ;;  %v3895_v36 = vunpack.c.l.bf16 %v3933_v8 }
 0x9c0   : > { %v4443_v37 = vpop.f32.mrf.mxu0 }
 0x9c1   : > { %2755 = vmax.xlane.f32.xlu0 %v6605_v56  ;;  %2757 = vmax.xlane.f32.xlu1 %v6608_v55  ;;  %v6615_v10 = vadd.f32 %v3888_v17, %v2651_v26  ;;  %v2672_v23 = vadd.f32 %v6321_v20, %v4443_v37 }
 0x9c2   : > { %v2663_v33 = vpop.f32.mrf.mxu0 }
 0x9c3   : > { %v6621_v45 = vadd.f32 %v3899_v47, %v2672_v23  ;;  %v2664_v34 = vadd.f32 %v6321_v20, %v2663_v33  ;;  %v3907_v47 = vunpack.c.l.bf16 %v3936_v35 }
 0x9c4   : > { %v4444_v54 = vpop.f32.mrf.mxu0 }
 0x9c5   : > { %v2675_v2 = vadd.f32 %v6321_v20, %v4444_v54  ;;  %2753 = vmax.xlane.f32.xlu1 %v6615_v10  ;;  %2751 = vmax.xlane.f32.xlu0 %v6613_v52  ;;  %v6629_v37 = vadd.f32 %v3895_v36, %v2664_v34  ;;  %v3908_v34 = vunpack.c.h.bf16 %v3936_v35 }
 0x9c6   : > { %v2666_v24 = vpop.f32.mrf.mxu0 }
 0x9c7   : > { %v6624_v17 = vadd.f32 %v3900_v38, %v2675_v2  ;;  %v2667_v22 = vadd.f32 %v6321_v20, %v2666_v24  ;;  %v3903_v2 = vunpack.c.l.bf16 %v3935_v9 }
 0x9c8   : > { %v4447_v26 = vpop.f32.mrf.mxu0 }
 0x9c9   : > { %2763 = vmax.xlane.f32.xlu0 %v6621_v45  ;;  %2765 = vmax.xlane.f32.xlu1 %v6624_v17  ;;  %v6631_v54 = vadd.f32 %v3896_v28, %v2667_v22  ;;  %v2688_v8 = vadd.f32 %v6321_v20, %v4447_v26 }
 0x9ca   : > { %v2679_v23 = vpop.f32.mrf.mxu0 }
 0x9cb   : > { %v6636_v33 = vadd.f32 %v3907_v47, %v2688_v8  ;;  %v2680_v38 = vadd.f32 %v6321_v20, %v2679_v23  ;;  %v3904_v47 = vunpack.c.h.bf16 %v3935_v9 }
 0x9cc   : > { %v4448_v28 = vpop.f32.mrf.mxu0 }
 0x9cd   : > { %2761 = vmax.xlane.f32.xlu1 %v6631_v54  ;;  %2759 = vmax.xlane.f32.xlu0 %v6629_v37  ;;  %v6640_v36 = vadd.f32 %v3903_v2, %v2680_v38  ;;  %v2691_v24 = vadd.f32 %v6321_v20, %v4448_v28 }
 0x9ce   : > { %v2682_v22 = vpop.f32.mrf.mxu0 }
 0x9cf   : > { %v6648_v26 = vadd.f32 %v3908_v34, %v2691_v24  ;;  %v2683_v8 = vadd.f32 %v6321_v20, %v2682_v22 }
 0x9d1   : > { %2771 = vmax.xlane.f32.xlu0 %v6636_v33  ;;  %v6652_v23 = vadd.f32 %v3904_v47, %v2683_v8 }
 0x9d5   : > { %2767 = vmax.xlane.f32.xlu0 %v6640_v36 }
 0x9de   : > { %2901 = vrot.lane.b32.xlu1 %v5753_v46, %s5386_s15 }
 0x9eb   : > { %2903 = vrot.lane.b32.xlu0 %v5747_v44, %s5386_s15 }
 0xa02   : > { %2773 = vmax.xlane.f32.xlu1 %v6648_v26 }
 0xa06   : > { %2769 = vmax.xlane.f32.xlu1 %v6652_v23 }
 0xa17   : > { %2899 = vrot.lane.b32.xlu1 %v5757_v48, %s5386_s15 }
 0xa3e   : > { %v2748_v44 = vpop.xlane.xlu0 %2747 }
 0xa3f   : > { %v2777_v46 = vsub.f32 %v6588_v13, %v2748_v44 }
 0xa41   : > { %v2795_v38 = vmul.f32 1.442695, %v2777_v46 }
 0xa42   : > { %v2744_v35 = vpop.xlane.xlu0 %2743 }
 0xa43   : > { %5022 = vpow2.f32 %v2795_v38  ;;  %v2775_v2 = vsub.f32 %v6592_v16, %v2744_v35 }
 0xa44   : > { %v2746_v28 = vpop.xlane.xlu1 %2745 }
 0xa45   : > { %v2791_v20 = vmul.f32 1.442695, %v2775_v2  ;;  %v2776_v24 = vsub.f32 %v6596_v50, %v2746_v28 }
 0xa46   : > { %v2750_v9 = vpop.xlane.xlu0 %2749 }
 0xa47   : > { %5024 = vpow2.f32 %v2791_v20  ;;  %v2778_v34 = vsub.f32 %v6599_v59, %v2750_v9  ;;  %v2793_v48 = vmul.f32 1.442695, %v2776_v24 }
 0xa49   : > { %v2797_v22 = vmul.f32 1.442695, %v2778_v34 }
 0xa4a   : > { %v2758_v8 = vpop.xlane.xlu1 %2757  ;;  %v2756_v47 = vpop.xlane.xlu0 %2755 }
 0xa4b   : > { %5026 = vpow2.f32 %v2797_v22  ;;  %v2781_v13 = vsub.f32 %v6605_v56, %v2756_v47  ;;  %v2782_v50 = vsub.f32 %v6608_v55, %v2758_v8 }
 0xa4c   : > { %5028 = vpow2.f32 %v2793_v48 }
 0xa4d   : > { %v2803_v44 = vmul.f32 1.442695, %v2781_v13  ;;  %v2805_v34 = vmul.f32 1.442695, %v2782_v50 }
 0xa4e   : > { %v2754_v46 = vpop.xlane.xlu1 %2753  ;;  %v2752_v38 = vpop.xlane.xlu0 %2751 }
 0xa4f   : > { %v2780_v16 = vsub.f32 %v6615_v10, %v2754_v46  ;;  %v2779_v35 = vsub.f32 %v6613_v52, %v2752_v38  ;;  %5030 = vpow2.f32 %v2803_v44 }
 0xa50   : > { %v6664_v2 = vpop.eup %5022 }
 0xa51   : > { %v2801_v59 = vmul.f32 1.442695, %v2780_v16  ;;  %v2799_v28 = vmul.f32 1.442695, %v2779_v35  ;;  %2827 = vadd.xlane.f32.xlu1 %v6664_v2 }
 0xa52   : > { %v2764_v20 = vpop.xlane.xlu0 %2763  ;;  %v2766_v56 = vpop.xlane.xlu1 %2765 }
 0xa53   : > { %5032 = vpow2.f32 %v2801_v59  ;;  %v2785_v9 = vsub.f32 %v6621_v45, %v2764_v20  ;;  %v2786_v8 = vsub.f32 %v6624_v17, %v2766_v56 }
 0xa54   : > { %v6669_v24 = vpop.eup %5024  ;;  %5034 = vpow2.f32 %v2799_v28 }
 0xa55   : > { %2823 = vadd.xlane.f32.xlu1 %v6669_v24  ;;  %v2811_v52 = vmul.f32 1.442695, %v2785_v9  ;;  %5036 = vpow2.f32 %v2805_v34  ;;  %v2813_v46 = vmul.f32 1.442695, %v2786_v8  ;;  %v7029_v8 = vpack.i.bf16 %v6275_v19, %v6271_v18 }
 0xa56   : > { %v2760_v10 = vpop.xlane.xlu0 %2759  ;;  %v2762_v47 = vpop.xlane.xlu1 %2761  ;;  %v7030_v18 = vpack.i.bf16 %v6287_v63, %v6283_v27 }
 0xa57   : > { %v2783_v55 = vsub.f32 %v6629_v37, %v2760_v10  ;;  %5038 = vpow2.f32 %v2811_v52  ;;  %v2784_v38 = vsub.f32 %v6631_v54, %v2762_v47 }
 0xa58   : > { %v6673_v22 = vpop.eup %5026 }
 0xa59   : > { %v2807_v48 = vmul.f32 1.442695, %v2783_v55  ;;  %2829 = vadd.xlane.f32.xlu1 %v6673_v22  ;;  %v6678_v44 = vpop.eup %5028 }
 0xa5a   : > { %v2772_v45 = vpop.xlane.xlu0 %2771  ;;  %v2902_v20 = vpop.permute.xlu1 %2901 }
 0xa5b   : > { %v2789_v13 = vsub.f32 %v6636_v33, %v2772_v45  ;;  %5040 = vpow2.f32 %v2807_v48  ;;  %v2809_v33 = vmul.f32 1.442695, %v2784_v38 }
 0xa5c   : > { %v6681_v37 = vpop.eup %5030 }
 0xa5d   : > { %v2819_v16 = vmul.f32 1.442695, %v2789_v13  ;;  %2825 = vadd.xlane.f32.xlu1 %v6678_v44  ;;  %2835 = vadd.xlane.f32.xlu0 %v6681_v37 }
 0xa5e   : > { %v2768_v17 = vpop.xlane.xlu0 %2767 }
 0xa5f   : > { %5042 = vpow2.f32 %v2819_v16  ;;  %v2787_v35 = vsub.f32 %v6640_v36, %v2768_v17 }
 0xa60   : > { %v6686_v50 = vpop.eup %5032  ;;  %5044 = vpow2.f32 %v2813_v46 }
 0xa61   : > { %v6688_v59 = vpop.eup %5034  ;;  %v2815_v28 = vmul.f32 1.442695, %v2787_v35  ;;  %2833 = vadd.xlane.f32.xlu1 %v6686_v50 }
 0xa62   : > { %2831 = vadd.xlane.f32.xlu0 %v6688_v59  ;;  %v2904_v54 = vpop.permute.xlu0 %2903  ;;  %v6692_v56 = vpop.eup %5036 }
 0xa63   : > { %5046 = vpow2.f32 %v2815_v28  ;;  %4455 = vmatprep.subr.bf16.mxu1 %v2904_v54 }
 0xa64   : > { %5048 = vpow2.f32 %v2809_v33  ;;  %4456 = vmatpush3.bf16.msra.mxu1 %v2904_v54  ;;  %v6695_v36 = vpop.eup %5038 }
 0xa65   : > { %4457 = vmatprep.subr.bf16.mxu1 %v2902_v20 }
 0xa66   : > { %2837 = vadd.xlane.f32.xlu0 %v6692_v56 }
 0xa68   : > { %4458 = vmatpush3.bf16.msra.mxu1 %v2902_v20  ;;  %v6697_v9 = vpop.eup %5040 }
 0xa69   : > { %2839 = vadd.xlane.f32.xlu1 %v6697_v9 }
 0xa6a   : > { %2843 = vadd.xlane.f32.xlu0 %v6695_v36 }
 0xa6c   : > { %v6701_v34 = vpop.eup %5042 }
 0xa6d   : > { %v6703_v10 = vpop.eup %5044  ;;  %2851 = vadd.xlane.f32.xlu1 %v6701_v34 }
 0xa6e   : > { %2845 = vadd.xlane.f32.xlu0 %v6703_v10 }
 0xa70   : > { %v6707_v52 = vpop.eup %5046 }
 0xa71   : > { %v6709_v55 = vpop.eup %5048  ;;  %2847 = vadd.xlane.f32.xlu1 %v6707_v52 }
 0xa72   : > { %2841 = vadd.xlane.f32.xlu0 %v6709_v55 }
 0xa82   : > { %2895 = vrot.lane.b32.xlu1 %v5769_v51, %s5386_s15 }
 0xa86   : > { %4676 = vrot.lane.b32.xlu1 %v7029_v8, %s5386_s15 }
 0xa88   : > { %2897 = vrot.lane.b32.xlu0 %v5761_v49, %s5386_s15 }
 0xa8a   : > { %4681 = vrot.lane.b32.xlu1 %v4680_v6, %s5385_s8 }
 0xa8b   : > { %v2774_v47 = vpop.xlane.xlu1 %2773 }
 0xa8c   : > { %v2790_v19 = vsub.f32 %v6648_v26, %v2774_v47 }
 0xa8e   : > { %4686 = vrot.lane.b32.xlu1 %v4685_v61, %s5385_s8  ;;  %v2821_v32 = vmul.f32 1.442695, %v2790_v19  ;;  %v7032_v61 = vpack.i.bf16 %v6279_v30, %v6273_v53 }
 0xa8f   : > { %v2770_v51 = vpop.xlane.xlu1 %2769 }
 0xa90   : > { %v2788_v48 = vsub.f32 %v6652_v23, %v2770_v51 }
 0xa92   : > { %4696 = vrot.lane.b32.xlu1 %v7030_v18, %s5386_s15  ;;  %v2817_v25 = vmul.f32 1.442695, %v2788_v48 }
 0xa93   : > { %v2900_v49 = vpop.permute.xlu1 %2899 }
 0xa94   : > { %4459 = vmatprep.subr.bf16.mxu1 %v2900_v49  ;;  %5050 = vpow2.f32 %v2817_v25 }
 0xa95   : > { %4460 = vmatpush3.bf16.msra.mxu1 %v2900_v49  ;;  %5052 = vpow2.f32 %v2821_v32 }
 0xa96   : > { %4706 = vrot.lane.b32.xlu1 %v4705_v60, %s5385_s8 }
 0xa9a   : > { %4716 = vrot.lane.b32.xlu1 %v7031_v57, %s5386_s15 }
 0xaa1   : > { %v6743_v27 = vpop.eup %5050 }
 0xaa2   : > { %v6746_v63 = vpop.eup %5052 }
 0xaa7   : > { %2849 = vadd.xlane.f32.xlu0 %v6743_v27 }
 0xaab   : > { %2853 = vadd.xlane.f32.xlu0 %v6746_v63 }
 0xac1   : > { %4671 = vrot.lane.b32.xlu0 %v7032_v61, %s5386_s15 }
 0xac5   : > { %4691 = vrot.lane.b32.xlu0 %v7033_v4, %s5386_s15 }
 0xac9   : > { %4701 = vrot.lane.b32.xlu0 %v7034_v40, %s5385_s8 }
 0xacd   : > { %4711 = vrot.lane.b32.xlu0 %v7035_v42, %s5386_s15 }
 0xada   : > { %v2828_v6 = vpop.xlane.xlu1 %2827 }
 0xade   : > { %v2824_v12 = vpop.xlane.xlu1 %2823 }
 0xadf   : > { %5054 = vrcp.f32 %v2824_v12 }
 0xae2   : > { %v2830_v39 = vpop.xlane.xlu1 %2829 }
 0xae6   : > { %v2826_v53 = vpop.xlane.xlu1 %2825  ;;  %v2836_v30 = vpop.xlane.xlu0 %2835 }
 0xae7   : > { %5056 = vrcp.f32 %v2826_v53 }
 0xae8   : > { %5058 = vrcp.f32 %v2830_v39 }
 0xaea   : > { %v2834_v15 = vpop.xlane.xlu1 %2833 }
 0xaeb   : > { %v2832_v60 = vpop.xlane.xlu0 %2831  ;;  %5060 = vrcp.f32 %v2834_v15 }
 0xaec   : > { %v5055_v26 = vpop.eup %5054  ;;  %5062 = vrcp.f32 %v2832_v60 }
 0xaed   : > { %5064 = vrcp.f32 %v2828_v6  ;;  %v2871_v21 = vmul.f32 %v5055_v26, %v6669_v24  ;;  %v4823_v26 = vld [vmem:[#allocation13 + $0x30] sm:$0xff]  }
 0xaef   : > { %v2838_v62 = vpop.xlane.xlu0 %2837 }
 0xaf0   : > { %5066 = vrcp.f32 %v2838_v62  ;;  %v4822_v62 = vld [vmem:[#allocation13 + $0x38] sm:$0xff]  }
 0xaf1   : > { %5068 = vrcp.f32 %v2836_v30 }
 0xaf2   : > { %v2840_v14 = vpop.xlane.xlu1 %2839 }
 0xaf3   : > { %v2844_v41 = vpop.xlane.xlu0 %2843  ;;  %5070 = vrcp.f32 %v2840_v14  ;;  %v4824_v14 = vld [vmem:[#allocation13 + $0x28] sm:$0xff]  }
 0xaf4   : > { %v5057_v23 = vpop.eup %5056 }
 0xaf5   : > { %v2872_v5 = vmul.f32 %v5057_v23, %v6678_v44  ;;  %v5059_v17 = vpop.eup %5058 }
 0xaf6   : > { %v2852_v45 = vpop.xlane.xlu1 %2851  ;;  %v2874_v24 = vmul.f32 %v5059_v17, %v6673_v22  ;;  %v7036_v17 = vpack.i.bf16 %v6567_v0, %v6563_v43 }
 0xaf7   : > { %v2846_v13 = vpop.xlane.xlu0 %2845  ;;  %v2887_v46 = vpack.c.bf16 %v2872_v5, %v2871_v21 }
 0xaf8   : > { %v5061_v35 = vpop.eup %5060 }
 0xaf9   : > { %4465 = vmatprep.mubr.bf16.mxu1 %v2887_v46  ;;  %v5063_v28 = vpop.eup %5062  ;;  %v2876_v8 = vmul.f32 %v5061_v35, %v6686_v50 }
 0xafa   : > { %v2848_v38 = vpop.xlane.xlu1 %2847  ;;  %v5065_v54 = vpop.eup %5064  ;;  %v2875_v44 = vmul.f32 %v5063_v28, %v6688_v59  ;;  %v7037_v28 = vpack.i.bf16 %v6571_v58, %v6565_v7 }
 0xafb   : > { %v2842_v16 = vpop.xlane.xlu0 %2841  ;;  %v2873_v47 = vmul.f32 %v5065_v54, %v6664_v2 }
 0xafc   : > { %5072 = vrcp.f32 %v2842_v16  ;;  %v2889_v18 = vpack.c.bf16 %v2876_v8, %v2875_v44  ;;  %v7038_v8 = vld [vmem:[#allocation44_spill] sm:$0xff] }
 0xafd   : > { %5074 = vrcp.f32 %v2846_v13  ;;  %v2888_v51 = vpack.c.bf16 %v2874_v24, %v2873_v47  ;;  %v5067_v48 = vpop.eup %5066  ;;  %v7039_v43 = vpack.i.bf16 %v6311_v3, %v7038_v8  ;;  %v7044_v3 = vpack.i.bf16 %v6583_v11, %v6577_v29 }
 0xafe   : > { %v2896_v20 = vpop.permute.xlu1 %2895  ;;  %5076 = vrcp.f32 %v2844_v41  ;;  %v5069_v49 = vpop.eup %5068  ;;  %v2878_v32 = vmul.f32 %v5067_v48, %v6692_v56  ;;  %v4827_v41 = vld [vmem:[#allocation13 + $0x10] sm:$0xff]   ;;  %v7041_v48 = vld [vmem:[#allocation45_spill] sm:$0xff] }
 0xaff   : > { %v2898_v33 = vpop.permute.xlu0 %2897  ;;  %v2877_v59 = vmul.f32 %v5069_v49, %v6681_v37  ;;  %5078 = vrcp.f32 %v2848_v38  ;;  %v7043_v49 = vpack.i.bf16 %v6579_v31, %v6575_v1 }
 0xb00   : > { %4461 = vmatprep.subr.bf16.mxu1 %v2898_v33  ;;  %v5071_v19 = vpop.eup %5070 }
 0xb01   : > { %4462 = vmatpush3.bf16.msra.mxu1 %v2898_v33  ;;  %v2879_v50 = vmul.f32 %v5071_v19, %v6697_v9  ;;  %v2890_v57 = vpack.c.bf16 %v2878_v32, %v2877_v59 }
 0xb02   : > { %4463 = vmatprep.subr.bf16.mxu1 %v2896_v20 }
 0xb05   : > { %4464 = vmatpush3.bf16.msra.mxu1 %v2896_v20 }
 0xb06   : > { %4481 = vmatprep.subr.bf16.mxu1 %v4822_v62 }
 0xb08   : > { %4466 = vmatmul.mubr.bf16.vlgmr.msra.gmra.mxu1 %v2888_v51  ;;  %v7040_v51 = vld [vmem:[#allocation46_spill] sm:$0xff] }
 0xb09   : > { %4469 = vmatprep.mubr.bf16.mxu1 %v2889_v18  ;;  %v5073_v25 = vpop.eup %5072  ;;  %4482 = vmatpush3.bf16.msra.mxu1 %v4822_v62  ;;  %v7042_v7 = vpack.i.bf16 %v7040_v51, %v7041_v48  ;;  %v7047_v62 = vld [vmem:[#allocation30_spill] sm:$0xff] }
 0xb0a   : > { %v2880_v22 = vmul.f32 %v5073_v25, %v6709_v55  ;;  %v5075_v61 = vpop.eup %5074  ;;  %4483 = vmatprep.subr.bf16.mxu1 %v4823_v26 }
 0xb0b   : > { %v5077_v4 = vpop.eup %5076  ;;  %v2882_v40 = vmul.f32 %v5075_v61, %v6703_v10 }
 0xb0c   : > { %v2891_v2 = vpack.c.bf16 %v2880_v22, %v2879_v50  ;;  %v2881_v42 = vmul.f32 %v5077_v4, %v6695_v36  ;;  %v5079_v37 = vpop.eup %5078 }
 0xb0d   : > { %v2883_v12 = vmul.f32 %v5079_v37, %v6707_v52  ;;  %4484 = vmatpush3.bf16.msra.mxu1 %v4823_v26  ;;  %v4825_v52 = vld [vmem:[#allocation13 + $0x20] sm:$0xff]  }
 0xb0e   : > { %v2892_v6 = vpack.c.bf16 %v2882_v40, %v2881_v42  ;;  %4485 = vmatprep.subr.bf16.mxu1 %v4824_v14 }
 0xb10   : > { %4470 = vmatmul.mubr.bf16.gmra.mxu1 %v2890_v57  ;;  %v4677_v57 = vpop.permute.xlu1 %4676 }
 0xb11   : > { %4473 = vmatprep.mubr.bf16.mxu1 %v2891_v2  ;;  %4486 = vmatpush3.bf16.msra.mxu1 %v4824_v14  ;;  %v7048_v14 = vld [vmem:[#allocation28_spill] sm:$0xff] }
 0xb12   : > { %4487 = vmatprep.subr.bf16.mxu1 %v4825_v52 }
 0xb14   : > { %v4682_v61 = vpop.permute.xlu1 %4681 }
 0xb15   : > { %4488 = vmatpush3.bf16.msra.mxu1 %v4825_v52 }
 0xb18   : > { %4474 = vmatmul.mubr.bf16.gmra.mxu1 %v2892_v6  ;;  %v4687_v2 = vpop.permute.xlu1 %4686 }
 0xb1c   : > { %v4697_v31 = vpop.permute.xlu1 %4696 }
 0xb20   : > { %v4707_v40 = vpop.permute.xlu1 %4706 }
 0xb24   : > { %v6813_v29 = vpop.permute.xlu1 %4716 }
 0xb30   : > { %v2850_v56 = vpop.xlane.xlu0 %2849 }
 0xb31   : > { %5080 = vrcp.f32 %v2850_v56  ;;  %v4679_v56 = vunpack.i.h.bf16 %v4677_v57 }
 0xb32   : > { %5082 = vrcp.f32 %v2852_v45 }
 0xb33   : > { %v3211_v26 = vsel %vm1052_vm0, %v7047_v62, %v4679_v56 }
 0xb34   : > { %v2854_v55 = vpop.xlane.xlu0 %2853 }
 0xb35   : > { %5084 = vrcp.f32 %v2854_v55  ;;  %v4678_v55 = vunpack.i.l.bf16 %v4677_v57  ;;  %v7052_v57 = vld [vmem:[#allocation33_spill] sm:$0xff] }
 0xb37   : > { %v3210_v52 = vsel %vm1052_vm0, %v7048_v14, %v4678_v55 }
 0xb38   : > { %v4672_v1 = vpop.permute.xlu0 %4671 }
 0xb39   : > { %v4674_v11 = vunpack.i.h.bf16 %v4672_v1  ;;  %v4673_v6 = vunpack.i.l.bf16 %v4672_v1 }
 0xb3c   : > { %v4692_v4 = vpop.permute.xlu0 %4691 }
 0xb3d   : > { %v4694_v8 = vunpack.i.h.bf16 %v4692_v4 }
 0xb3e   : > { %v5081_v9 = vpop.eup %5080 }
 0xb3f   : > { %v2884_v39 = vmul.f32 %v5081_v9, %v6743_v27  ;;  %v5083_v53 = vpop.eup %5082  ;;  %v4826_v27 = vld [vmem:[#allocation13 + $0x18] sm:$0xff]   ;;  %v4689_v9 = vunpack.i.h.bf16 %v4687_v2 }
 0xb40   : > { %v2885_v36 = vmul.f32 %v5083_v53, %v6701_v34  ;;  %4489 = vmatprep.subr.bf16.mxu1 %v4826_v27  ;;  %v4828_v34 = vld [vmem:[#allocation13 + $0x8] sm:$0xff]   ;;  %v4702_v42 = vpop.permute.xlu0 %4701 }
 0xb41   : > { %v2893_v30 = vpack.c.bf16 %v2884_v39, %v2883_v12  ;;  %4490 = vmatpush3.bf16.msra.mxu1 %v4826_v27  ;;  %v4688_v12 = vunpack.i.l.bf16 %v4687_v2  ;;  %v7045_v39 = vld [vmem:[#allocation31_spill] sm:$0xff]  ;;  %v4684_v27 = vunpack.i.h.bf16 %v4682_v61  ;;  %v4703_v51 = vunpack.i.l.bf16 %v4702_v42 }
 0xb42   : > { %v5085_v60 = vpop.eup %5084  ;;  %4491 = vmatprep.subr.bf16.mxu1 %v4827_v41  ;;  %v3209_v53 = vsel %vm1052_vm0, %v7045_v39, %v4674_v11 }
 0xb43   : > { %4477 = vmatprep.mubr.bf16.mxu1 %v2893_v30  ;;  %v2886_v10 = vmul.f32 %v5085_v60, %v6746_v63  ;;  %v4829_v63 = vld [vmem:[#allocation13] sm:$0xff]   ;;  %v7046_v60 = vld [vmem:[#allocation29_spill] sm:$0xff] }
 0xb44   : > { %v6815_v37 = vpop.permute.xlu0 %4711 }
 0xb45   : > { %v2894_v15 = vpack.c.bf16 %v2886_v10, %v2885_v36  ;;  %4492 = vmatpush3.bf16.msra.mxu1 %v4827_v41  ;;  %v3208_v36 = vsel %vm1052_vm0, %v7046_v60, %v4673_v6  ;;  %v4683_v41 = vunpack.i.l.bf16 %v4682_v61  ;;  %v4719_v6 = vunpack.i.h.bf16 %v6813_v29 }
 0xb46   : > { %4493 = vmatprep.subr.bf16.mxu1 %v4828_v34  ;;  %v4713_v39 = vunpack.i.l.bf16 %v6815_v37 }
 0xb47   : > { %4478 = vmatmul.mubr.bf16.gmra.mxu1 %v2894_v15 }
 0xb49   : > { %4494 = vmatpush3.bf16.msra.mxu1 %v4828_v34 }
 0xb4a   : > { %4495 = vmatprep.subr.bf16.mxu1 %v4829_v63 }
 0xb4d   : > { %4496 = vmatpush3.bf16.msra.mxu1 %v4829_v63  ;;  %v3227_v63 = vsel %vm3224_vm1, %v3210_v52, %v4688_v12  ;;  %v4714_v12 = vunpack.i.h.bf16 %v6815_v37 }
 0xbc8   : > { %v4467_v23 = vpop.f32.mrf.mxu1 }
 0xbca   : > { %v2953_v21 = vpop.f32.mrf.mxu1 }
 0xbcc   : > { %v4468_v5 = vpop.f32.mrf.mxu1 }
 0xbcd   : > { %v4720_v45 = vpack.i.bf16 %v4468_v5, %v4467_v23  ;;  %v3228_v23 = vsel %vm3224_vm1, %v3211_v26, %v4689_v9  ;;  %v4718_v9 = vunpack.i.l.bf16 %v6813_v29  ;;  %v7054_v29 = vld [vmem:[#allocation36_spill] sm:$0xff] }
 0xbce   : > { %v2956_v13 = vpop.f32.mrf.mxu1 }
 0xbcf   : > { %v4725_v46 = vpack.i.bf16 %v2956_v13, %v2953_v21  ;;  %4721 = vrot.lane.b32.xlu1 %v4720_v45, %s5384_s30 }
 0xbd0   : > { %v4471_v38 = vpop.f32.mrf.mxu1 }
 0xbd1   : > { %4726 = vrot.lane.b32.xlu0 %v4725_v46, %s5384_s30 }
 0xbd2   : > { %v2969_v16 = vpop.f32.mrf.mxu1 }
 0xbd3   : > { %4736 = vrot.lane.b32.xlu1 %v7036_v17, %s5385_s8  ;;  %v4699_v17 = vunpack.i.h.bf16 %v4697_v31 }
 0xbd4   : > { %v4472_v35 = vpop.f32.mrf.mxu1 }
 0xbd5   : > { %v4740_v33 = vpack.i.bf16 %v4472_v35, %v4471_v38  ;;  %4731 = vrot.lane.b32.xlu0 %v7037_v28, %s5385_s8  ;;  %v3225_v38 = vsel %vm3224_vm1, %v3208_v36, %v4683_v41  ;;  %v4698_v35 = vunpack.i.l.bf16 %v4697_v31 }
 0xbd6   : > { %v2972_v54 = vpop.f32.mrf.mxu1 }
 0xbd7   : > { %v4745_v20 = vpack.i.bf16 %v2972_v54, %v2969_v16  ;;  %4741 = vrot.lane.b32.xlu1 %v4740_v33, %s5384_s30  ;;  %v3226_v16 = vsel %vm3224_vm1, %v3209_v53, %v4684_v27  ;;  %v4709_v54 = vunpack.i.h.bf16 %v4707_v40  ;;  %v7053_v27 = vld [vmem:[#allocation38_spill] sm:$0xff] }
 0xbd8   : > { %v4475_v24 = vpop.f32.mrf.mxu1  ;;  %v3219_v41 = vsel %vm1052_vm0, %v7053_v27, %v4719_v6 }
 0xbd9   : > { %4746 = vrot.lane.b32.xlu0 %v4745_v20, %s5384_s30  ;;  %v4708_v20 = vunpack.i.l.bf16 %v4707_v40 }
 0xbda   : > { %v2985_v44 = vpop.f32.mrf.mxu1 }
 0xbdb   : > { %4756 = vrot.lane.b32.xlu1 %v7039_v43, %s5386_s15  ;;  %v4693_v43 = vunpack.i.l.bf16 %v4692_v4 }
 0xbdc   : > { %v4476_v0 = vpop.f32.mrf.mxu1 }
 0xbdd   : > { %v4760_v47 = vpack.i.bf16 %v4476_v0, %v4475_v24  ;;  %4751 = vrot.lane.b32.xlu0 %v7042_v7, %s5386_s15  ;;  %v7049_v7 = vld [vmem:[#allocation34_spill] sm:$0xff]  ;;  %v3212_v61 = vsel %vm1052_vm0, %v7052_v57, %v4693_v43 }
 0xbde   : > { %v2988_v58 = vpop.f32.mrf.mxu1  ;;  %v3229_v31 = vsel %vm3224_vm1, %v3212_v61, %v4703_v51  ;;  %v7060_v61 = vld [vmem:[#allocation41_spill] sm:$0xff] }
 0xbdf   : > { %v4765_v18 = vpack.i.bf16 %v2988_v58, %v2985_v44  ;;  %4761 = vrot.lane.b32.xlu1 %v4760_v47, %s5384_s30  ;;  %v4704_v47 = vunpack.i.h.bf16 %v4702_v42  ;;  %v3215_v58 = vsel %vm1052_vm0, %v7049_v7, %v4699_v17 }
 0xbe1   : > { %4766 = vrot.lane.b32.xlu0 %v4765_v18, %s5384_s30  ;;  %v7050_v18 = vld [vmem:[#allocation32_spill] sm:$0xff] }
 0xbe3   : > { %4776 = vrot.lane.b32.xlu1 %v7043_v49, %s5385_s8  ;;  %v3214_v49 = vsel %vm1052_vm0, %v7050_v18, %v4698_v35 }
 0xbe5   : > { %4771 = vrot.lane.b32.xlu0 %v7044_v3, %s5385_s8 }
 0xc07   : > { %v4479_v19 = vpop.f32.mrf.mxu1 }
 0xc09   : > { %v3001_v25 = vpop.f32.mrf.mxu1 }
 0xc0b   : > { %v4480_v32 = vpop.f32.mrf.mxu1 }
 0xc0c   : > { %v4785_v22 = vpack.i.bf16 %v4480_v32, %v4479_v19  ;;  %v3232_v32 = vsel %vm3224_vm1, %v3215_v58, %v4709_v54 }
 0xc0d   : > { %v3004_v59 = vpop.f32.mrf.mxu1 }
 0xc0e   : > { %v4780_v50 = vpack.i.bf16 %v3004_v59, %v3001_v25  ;;  %4786 = vrot.lane.b32.xlu1 %v4785_v22, %s5384_s30  ;;  %v3231_v25 = vsel %vm3224_vm1, %v3214_v49, %v4708_v20  ;;  %v7051_v59 = vld [vmem:[#allocation35_spill] sm:$0xff] }
 0xc10   : > { %4781 = vrot.lane.b32.xlu0 %v4780_v50, %s5384_s30  ;;  %v3213_v50 = vsel %vm1052_vm0, %v7051_v59, %v4694_v8 }
 0xc11   : > { %v3230_v4 = vsel %vm3224_vm1, %v3213_v50, %v4704_v47  ;;  %v7059_v50 = vld [vmem:[#allocation43_spill] sm:$0xff] }
 0xc41   : > { %v4722_v30 = vpop.permute.xlu1 %4721 }
 0xc42   : > { %v4724_v10 = vunpack.i.h.bf16 %v4722_v30  ;;  %v4723_v15 = vunpack.i.l.bf16 %v4722_v30 }
 0xc43   : > { %v4727_v34 = vpop.permute.xlu0 %4726 }
 0xc44   : > { %v4729_v21 = vunpack.i.h.bf16 %v4727_v34  ;;  %v4728_v5 = vunpack.i.l.bf16 %v4727_v34  ;;  %v3245_v45 = vsel %vm3241_vm2, %v3228_v23, %v4724_v10  ;;  %v3244_v13 = vsel %vm3241_vm2, %v3227_v63, %v4723_v15  ;;  %v7055_v63 = vld [vmem:[#allocation39_spill] sm:$0xff]  ;;  %v7056_v23 = vld [vmem:[#allocation37_spill] sm:$0xff] }
 0xc45   : > { %v4737_v46 = vpop.permute.xlu1 %4736  ;;  %v3259_v0 = vpack.c.bf16 %v3245_v45, %v3244_v13  ;;  %v3218_v34 = vsel %vm1052_vm0, %v7054_v29, %v4718_v9  ;;  %v3217_v37 = vsel %vm1052_vm0, %v7055_v63, %v4714_v12 }
 0xc46   : > { %v3242_v33 = vsel %vm3241_vm2, %v3225_v38, %v4728_v5  ;;  %v3243_v28 = vsel %vm3241_vm2, %v3226_v16, %v4729_v21  ;;  %v4739_v60 = vunpack.i.h.bf16 %v4737_v46  ;;  %v4738_v36 = vunpack.i.l.bf16 %v4737_v46 }
 0xc47   : > { %v4732_v24 = vpop.permute.xlu0 %4731  ;;  %v3258_v44 = vpack.c.bf16 %v3243_v28, %v3242_v33  ;;  %v3216_v21 = vsel %vm1052_vm0, %v7056_v23, %v4713_v39 }
 0xc48   : > { %v4734_v15 = vunpack.i.h.bf16 %v4732_v24  ;;  %v4733_v62 = vunpack.i.l.bf16 %v4732_v24  ;;  %v3236_v45 = vsel %vm3224_vm1, %v3219_v41, %v4739_v60  ;;  %v3235_v13 = vsel %vm3224_vm1, %v3218_v34, %v4738_v36 }
 0xc49   : > { %v4742_v48 = vpop.permute.xlu1 %4741  ;;  %4497 = vmatprep.mubr.bf16.mxu1 %v3258_v44 }
 0xc4a   : > { %v4744_v3 = vunpack.i.h.bf16 %v4742_v48  ;;  %v4743_v19 = vunpack.i.l.bf16 %v4742_v48  ;;  %4498 = vmatmul.mubr.bf16.vlgmr.msra.gmra.mxu1 %v3259_v0  ;;  %v3233_v16 = vsel %vm3224_vm1, %v3216_v21, %v4733_v62  ;;  %v3234_v17 = vsel %vm3224_vm1, %v3217_v37, %v4734_v15 }
 0xc4b   : > { %v4747_v22 = vpop.permute.xlu0 %4746 }
 0xc4c   : > { %v4749_v2 = vunpack.i.h.bf16 %v4747_v22  ;;  %v4748_v1 = vunpack.i.l.bf16 %v4747_v22  ;;  %v3248_v42 = vsel %vm3241_vm2, %v3231_v25, %v4743_v19  ;;  %v3249_v11 = vsel %vm3241_vm2, %v3232_v32, %v4744_v3  ;;  %v7057_v3 = vld [vmem:[#allocation42_spill] sm:$0xff]  ;;  %v7058_v25 = vld [vmem:[#allocation40_spill] sm:$0xff] }
 0xc4d   : > { %v4757_v40 = vpop.permute.xlu1 %4756  ;;  %v3261_v10 = vpack.c.bf16 %v3249_v11, %v3248_v42 }
 0xc4e   : > { %v3246_v56 = vsel %vm3241_vm2, %v3229_v31, %v4748_v1  ;;  %v3247_v55 = vsel %vm3241_vm2, %v3230_v4, %v4749_v2  ;;  %v4759_v8 = vunpack.i.h.bf16 %v4757_v40  ;;  %v4758_v43 = vunpack.i.l.bf16 %v4757_v40 }
 0xc4f   : > { %v4752_v53 = vpop.permute.xlu0 %4751  ;;  %v3260_v30 = vpack.c.bf16 %v3247_v55, %v3246_v56 }
 0xc50   : > { %v4754_v47 = vunpack.i.h.bf16 %v4752_v53  ;;  %v4753_v51 = vunpack.i.l.bf16 %v4752_v53  ;;  %v3223_v19 = vsel %vm1052_vm0, %v7057_v3, %v4759_v8  ;;  %v3222_v32 = vsel %vm1052_vm0, %v7058_v25, %v4758_v43 }
 0xc51   : > { %v4762_v26 = vpop.permute.xlu1 %4761  ;;  %4501 = vmatprep.mubr.bf16.mxu1 %v3260_v30 }
 0xc52   : > { %v4764_v14 = vunpack.i.h.bf16 %v4762_v26  ;;  %v4763_v52 = vunpack.i.l.bf16 %v4762_v26  ;;  %4502 = vmatmul.mubr.bf16.gmra.mxu1 %v3261_v10  ;;  %v3221_v57 = vsel %vm1052_vm0, %v7059_v50, %v4754_v47  ;;  %v3220_v2 = vsel %vm1052_vm0, %v7060_v61, %v4753_v51 }
 0xc53   : > { %v4767_v5 = vpop.permute.xlu0 %4766 }
 0xc54   : > { %v4769_v46 = vunpack.i.h.bf16 %v4767_v5  ;;  %v4768_v38 = vunpack.i.l.bf16 %v4767_v5  ;;  %v3252_v35 = vsel %vm3241_vm2, %v3235_v13, %v4763_v52  ;;  %v3253_v33 = vsel %vm3241_vm2, %v3236_v45, %v4764_v14 }
 0xc55   : > { %v3263_v24 = vpack.c.bf16 %v3253_v33, %v3252_v35  ;;  %v4777_v44 = vpop.permute.xlu1 %4776 }
 0xc56   : > { %v3250_v28 = vsel %vm3241_vm2, %v3233_v16, %v4768_v38  ;;  %v3251_v54 = vsel %vm3241_vm2, %v3234_v17, %v4769_v46  ;;  %v4779_v48 = vunpack.i.h.bf16 %v4777_v44  ;;  %v4778_v7 = vunpack.i.l.bf16 %v4777_v44 }
 0xc57   : > { %v3262_v20 = vpack.c.bf16 %v3251_v54, %v3250_v28  ;;  %v4772_v0 = vpop.permute.xlu0 %4771 }
 0xc58   : > { %v4774_v58 = vunpack.i.h.bf16 %v4772_v0  ;;  %v4773_v18 = vunpack.i.l.bf16 %v4772_v0  ;;  %v3240_v1 = vsel %vm3224_vm1, %v3223_v19, %v4779_v48  ;;  %v3239_v31 = vsel %vm3224_vm1, %v3222_v32, %v4778_v7 }
 0xc59   : > { %4505 = vmatprep.mubr.bf16.mxu1 %v3262_v20 }
 0xc5a   : > { %4506 = vmatmul.mubr.bf16.gmra.mxu1 %v3263_v24  ;;  %v3237_v56 = vsel %vm3224_vm1, %v3220_v2, %v4773_v18  ;;  %v3238_v55 = vsel %vm3224_vm1, %v3221_v57, %v4774_v58 }
 0xc80   : > { %v4787_v49 = vpop.permute.xlu1 %4786 }
 0xc81   : > { %v4789_v22 = vunpack.i.h.bf16 %v4787_v49  ;;  %v4788_v59 = vunpack.i.l.bf16 %v4787_v49 }
 0xc82   : > { %v4782_v4 = vpop.permute.xlu0 %4781 }
 0xc83   : > { %v4784_v40 = vunpack.i.h.bf16 %v4782_v4  ;;  %v4783_v42 = vunpack.i.l.bf16 %v4782_v4  ;;  %v3256_v11 = vsel %vm3241_vm2, %v3239_v31, %v4788_v59  ;;  %v3257_v6 = vsel %vm3241_vm2, %v3240_v1, %v4789_v22 }
 0xc84   : > { %v3265_v9 = vpack.c.bf16 %v3257_v6, %v3256_v11 }
 0xc85   : > { %v3254_v12 = vsel %vm3241_vm2, %v3237_v56, %v4783_v42  ;;  %v3255_v39 = vsel %vm3241_vm2, %v3238_v55, %v4784_v40 }
 0xc86   : > { %v3264_v53 = vpack.c.bf16 %v3255_v39, %v3254_v12 }
 0xc88   : > { %4509 = vmatprep.mubr.bf16.mxu1 %v3264_v53 }
 0xc89   : > { %4510 = vmatmul.mubr.bf16.gmra.mxu1 %v3265_v9 }
 0xd0a   : > { %v4499_v30 = vpop.f32.mrf.mxu1 }
 0xd0b   : > { %3496 = vst [vmem:[%s6886_s17 + $0x10] sm:$0xff] %v4499_v30 }
 0xd0c   : > { %v3380_v60 = vpop.f32.mrf.mxu1 }
 0xd0d   : > { %3494 = vst [vmem:[%s6886_s17] sm:$0xff] %v3380_v60 }
 0xd0e   : > { %v4500_v36 = vpop.f32.mrf.mxu1 }
 0xd0f   : > { %3497 = vst [vmem:[%s6886_s17 + $0x18] sm:$0xff] %v4500_v36 }
 0xd10   : > { %v3383_v10 = vpop.f32.mrf.mxu1 }
 0xd11   : > { %3495 = vst [vmem:[%s6886_s17 + $0x8] sm:$0xff] %v3383_v10 }
 0xd12   : > { %v4503_v15 = vpop.f32.mrf.mxu1 }
 0xd13   : > { %3500 = vst [vmem:[%s6886_s17 + $0x30] sm:$0xff] %v4503_v15 }
 0xd14   : > { %v3396_v62 = vpop.f32.mrf.mxu1 }
 0xd15   : > { %3498 = vst [vmem:[%s6886_s17 + $0x20] sm:$0xff] %v3396_v62 }
 0xd16   : > { %v4504_v26 = vpop.f32.mrf.mxu1 }
 0xd17   : > { %3501 = vst [vmem:[%s6886_s17 + $0x38] sm:$0xff] %v4504_v26 }
 0xd18   : > { %v3399_v14 = vpop.f32.mrf.mxu1 }
 0xd19   : > { %3499 = vst [vmem:[%s6886_s17 + $0x28] sm:$0xff] %v3399_v14 }
 0xd1a   : > { %v4507_v52 = vpop.f32.mrf.mxu1 }
 0xd1b   : > { %3504 = vst [vmem:[%s6886_s17 + $0x50] sm:$0xff] %v4507_v52 }
 0xd1c   : > { %v3412_v27 = vpop.f32.mrf.mxu1 }
 0xd1d   : > { %3502 = vst [vmem:[%s6886_s17 + $0x40] sm:$0xff] %v3412_v27 }
 0xd1e   : > { %v4508_v41 = vpop.f32.mrf.mxu1 }
 0xd1f   : > { %3505 = vst [vmem:[%s6886_s17 + $0x58] sm:$0xff] %v4508_v41 }
 0xd20   : > { %v3415_v29 = vpop.f32.mrf.mxu1 }
 0xd21   : > { %3503 = vst [vmem:[%s6886_s17 + $0x48] sm:$0xff] %v3415_v29 }
 0xd49   : > { %v4511_v34 = vpop.f32.mrf.mxu1 }
 0xd4a   : > { %3508 = vst [vmem:[%s6886_s17 + $0x70] sm:$0xff] %v4511_v34 }
 0xd4b   : > { %v3428_v63 = vpop.f32.mrf.mxu1 }
 0xd4c   : > { %3506 = vst [vmem:[%s6886_s17 + $0x60] sm:$0xff] %v3428_v63 }
 0xd4d   : > { %v4512_v37 = vpop.f32.mrf.mxu1 }
 0xd4e   : > { %3509 = vst [vmem:[%s6886_s17 + $0x78] sm:$0xff] %v4512_v37 }
 0xd4f   : > { %v3431_v23 = vpop.f32.mrf.mxu1 }
 0xd50   : > { %3507 = vst [vmem:[%s6886_s17 + $0x68] sm:$0xff] %v3431_v23 }
 0xd51   : > { %5286 = shalt.err (!%p5283_p0)
}
 0xd52   : > { %s5287_s21 = scalar_lea.hbm %s6907_s12, 2048  ;;  %s5291_s26 = scalar_lea.hbm %s6966_s7, 4096 }
 0xd53   : > { %p5288_p3 = scmp.ne.s32.totalorder %s6907_s12, %s5287_s21  ;;  %p5292_p7 = scmp.lt.s32.totalorder %s6907_s12, %s6966_s7 }
 0xd54   : > { %p5293_p8 = scmp.lt.s32.totalorder %s5291_s26, %s5287_s21 }
 0xd55   : > { %p5289_p10 = pnand %p5288_p3, %p7061_p12 }
 0xd56   : > { %p5294_p1 = por %p5293_p8, %p5292_p7 }
 0xd57   : > { %p5290_p5 = pneg %p5289_p10 }
 0xd59   : > { %p5295_p11 = pnand %p5294_p1, %p5290_p5 }
 0xd5b   : > { %5298 = shalt.err (!%p5295_p11)
}
 0xd5c   : > { %s5388_s8 = smov 128   ;;  %s5389_s15 = smov 8  }
 0xd5d   : > { %4569 = dma.vmem_to_hbm [thread:$0]  (%p7061_p12), %s6909_s1, 2048, %s6907_s12, %s3511_s14, %s5388_s8, %s5388_s8, %s5389_s15  }
 0xd5e PF: > { %s7062_s23 = sld [smem:[#allocation27_spill]]  ;;  %s3539_s9 = sand.u32 1, %s5353_s24  }
 0xd5f   : > { %s7063_s17 = sld [smem:[#allocation24_spill]]  ;;  %s3540_s4 = scalar_lea.sflag [#allocation5], %s3539_s9 }
 0xd64   : > { %p7064_p2 = scmp.ne.s32.totalorder %s7062_s23, 0 }
 0xd65   : > { %p7065_p13 = scmp.ge.s32.totalorder %s7063_s17, 2 }
 0xd67   : > { %p4595_p4 = pnand %p7065_p13, %p7064_p2 }
 0xd69   : > { %p4596_p9 = pneg %p4595_p4 }
 0xd6b   : > { %5348 = dma.done.wait (%p4596_p9), %s3540_s4, 2048  }
 0xd6c   : > { %5350 = vsyncadd (%p4596_p9), %s3540_s4, 4294965248  ;;  %s26_s29 = sadd.s32 1, %s7063_s17   ;;  %s7066_s13 = sld [smem:[#allocation23_spill]] }
 0xd6d   : > { %p23_p6 = scmp.ge.s32.totalorder %s26_s29, 4   ;;  %s7067_s26 = sld [smem:[#allocation26_spill]] }
 0xd6e   : > { %s7068_s18 = sld [smem:[#allocation25_spill]]  ;;  %s7069_s24 = smov %s5357_s25 }
 0xd6f   : > { %s7071_s27 = smov %s5369_s28 }
 0xd70   :  { %25 = sbr.rel (!%p23_p6) target bundleno = 12 (0xc), region = 140 }
 0xd72   : > { %s7070_s25 = smov %s7066_s13 }
 0xd74   : > { %s7072_s28 = smov %s7068_s18 }
 0xd75   :  { %3545 = vsyncpa [#allocation4], 1 }
 0xd76   :  { %3547 = vsyncpa [#allocation4 + $0x1], 1 }
 0xd77   :  { %3548 = vsyncpa [#allocation7], 1 }
 0xd78   :  { %3549 = vsyncpa [#allocation11], 1 }
 0xd79   :  { %3550 = vsyncpa [#allocation14], 1 }
 0xd7a   :  { %3551 = vsyncpa [#allocation5], 1 }
 0xd7b   :  { %3553 = vsyncpa [#allocation5 + $0x1], 1 }

</bundles_post_ra>
